<compile_context>
chip_gen: v5e
topology: v5e:2x2
jax: 0.10.0
libtpu: 0.0.40
codegen_flags: <defaults>
</compile_context>

<pallas_src>
import functools
import math

import jax
import jax.numpy as jnp
from jax import lax
from jax.experimental import pallas as pl
from jax.experimental.pallas import tpu as pltpu


# ----------------------------------------------------------------------------
# helpers
# ----------------------------------------------------------------------------

def _layer_norm(x, g, b, eps):
    # Two-pass LayerNorm (matches torch.nn.LayerNorm numerics more closely).
    inv_d = 1.0 / x.shape[-1]
    mean = jnp.sum(x, axis=-1, keepdims=True) * inv_d
    xc = x - mean
    var = jnp.sum(xc * xc, axis=-1, keepdims=True) * inv_d
    return xc * lax.rsqrt(var + eps) * g + b


def _pick_batch_block(batch, max_block=8):
    """Largest divisor of `batch` that is <= max_block.

    v5e/v6e (1 TC): bigger is better (weight-DMA amortization, MXU fill).
    On v7x (2 TCs) keep >= 2 batch blocks by lowering max_block if needed.
    """
    for bt in range(min(batch, max_block), 0, -1):
        if batch % bt == 0:
            return bt
    return 1


# ----------------------------------------------------------------------------
# Kernel 1: whole per-modality encoder (embed + all layers + final LN) in ONE
# pallas_call.  grid = (batch_blocks, depth); the (Bt*T, E) token slab is
# VMEM-resident across the depth axis (output-accumulator pattern).
# ----------------------------------------------------------------------------

def _encoder_kernel(x_ref, ew_ref, eb_ref, cls_ref, pos_ref,
                    ln1g_ref, ln1b_ref, qkvw_ref, qkvb_ref,
                    projw_ref, projb_ref,
                    ln2g_ref, ln2b_ref, m1w_ref, m1b_ref, m2w_ref, m2b_ref,
                    lnfg_ref, lnfb_ref,
                    o_ref, att_ref, *, num_heads, eps):
    d = pl.program_id(1)
    T, E = pos_ref.shape
    S = T - 1
    M = o_ref.shape[0]                 # Bt * T  (flattened token slab rows)
    Bt = M // T
    hd = E // num_heads

    # ---- d == 0: feature embed + CLS token + positional embedding ----------
    # Folded into the encoder: no tok0 HBM buffer, no separate pallas_call.
    @pl.when(d == 0)
    def _():
        x = x_ref[...].astype(jnp.bfloat16)                      # (Bt*S, din)
        emb = jnp.dot(x, ew_ref[...],
                      preferred_element_type=jnp.float32) + eb_ref[...]
        cls_row = cls_ref[...] + pos_ref[0:1, :]                 # (1, E)
        pos_tok = pos_ref[1:, :]                                 # (S, E)
        for b in range(Bt):           # disjoint row-slice stores, no sublane concat
            r0 = b * T
            o_ref[r0:r0 + 1, :] = cls_row.astype(o_ref.dtype)
            o_ref[r0 + 1:r0 + T, :] = (emb[b * S:(b + 1) * S, :]
                                       + pos_tok).astype(o_ref.dtype)

    tok = o_ref[...]                                             # (M, E) f32 residual

    # ---- MHSA sub-block (pre-LN) -------------------------------------------
    h1 = _layer_norm(tok, ln1g_ref[...], ln1b_ref[...], eps)
    qkv = jnp.dot(h1.astype(jnp.bfloat16), qkvw_ref[...],
                  preferred_element_type=jnp.float32) + qkvb_ref[...]   # (M, 3E)
    pw = projw_ref[...]                                          # (E, E) bf16
    for b in range(Bt):                        # attention stays within a sequence
        r0 = b * T
        att_b = None
        for h in range(num_heads):
            lo = h * hd
            # NOTE: 1/sqrt(hd) is folded into the Q columns of qkv_w at init.
            q = qkv[r0:r0 + T, lo:lo + hd].astype(jnp.bfloat16)
            k = qkv[r0:r0 + T, E + lo:E + lo + hd].astype(jnp.bfloat16)
            v = qkv[r0:r0 + T, 2 * E + lo:2 * E + lo + hd].astype(jnp.bfloat16)
            # contract last axes directly -> no explicit k.T (no XLU transpose)
            s = lax.dot_general(q, k, (((1,), (1,)), ((), ())),
                                preferred_element_type=jnp.float32)      # (T, T)
            m = jnp.max(s, axis=-1, keepdims=True)
            p = jnp.exp(s - m)
            p = p * pl.reciprocal(jnp.sum(p, axis=-1, keepdims=True),
                                  approx=True)                   # EUP slot, ~free
            o_h = jnp.dot(p.astype(jnp.bfloat16), v,
                          preferred_element_type=jnp.float32)            # (T, hd)
            # per-head partial projection, accumulated -> no lane concat of heads
            part = jnp.dot(o_h.astype(jnp.bfloat16), pw[lo:lo + hd, :],
                           preferred_element_type=jnp.float32)           # (T, E)
            att_b = part if att_b is None else att_b + part
        att_ref[r0:r0 + T, :] = att_b
    tok = tok + att_ref[...] + projb_ref[...]

    # ---- MLP sub-block (pre-LN, GELU fused) --------------------------------
    h2 = _layer_norm(tok, ln2g_ref[...], ln2b_ref[...], eps)
    mid = jnp.dot(h2.astype(jnp.bfloat16), m1w_ref[...],
                  preferred_element_type=jnp.float32) + m1b_ref[...]
    # TODO(synk): PyTorch nn.GELU defaults to exact erf GELU; tanh approx used.
    mid = jax.nn.gelu(mid, approximate=True)
    mlp = jnp.dot(mid.astype(jnp.bfloat16), m2w_ref[...],
                  preferred_element_type=jnp.float32) + m2b_ref[...]
    tok = tok + mlp

    # ---- single store; final LayerNorm on the in-register slab at the end --
    last = pl.num_programs(1) - 1

    @pl.when(d < last)
    def _():
        o_ref[...] = tok.astype(o_ref.dtype)

    @pl.when(d == last)
    def _():
        o_ref[...] = _layer_norm(tok, lnfg_ref[...], lnfb_ref[...],
                                 eps).astype(o_ref.dtype)


def _encoder_vmem_bytes(Bt, S, T, din, E, Hm):
    bf16, f32 = 2, 4
    w_layer = (E * 3 * E + E * E + 2 * E * Hm) * bf16 \
              + (3 * E + E + Hm + E + 4 * E) * f32          # biases + LN params
    shared = din * E * bf16 + (2 * E + T * E + 2 * E) * f32  # embed w/b, cls, pos, lnf
    tok = Bt * T * E * f32
    x_in = Bt * S * din * f32
    act = Bt * T * (3 * E + Hm + 2 * E) * f32                # qkv, mlp mid, att, slack
    return 2 * w_layer + shared + 2 * tok + 2 * x_in + act   # 2x: double-buffering


def pallas_encoder(x, params, num_heads, *, eps=1e-5, max_batch_block=8):
    """Per-modality transformer encoder: embed + depth x (MHSA + MLP) + LN."""
    B, S, din = x.shape
    E = params["embed"]["w"].shape[1]
    T = S + 1
    layers = params["layers"]
    depth = layers["qkv_w"].shape[0]
    Hm = layers["mlp1_w"].shape[-1]

    Bt = _pick_batch_block(B, max_batch_block)
    nb = B // Bt
    # Host-side batch packing: every grid step sees a (Bt*T, E) token slab,
    # so layer weights are streamed once per Bt sequences and matmul M = Bt*T.
    x_blk = x.reshape(nb, Bt * S, din)

    kern = functools.partial(_encoder_kernel, num_heads=num_heads, eps=eps)

    def blk_spec(rows, cols):
        return pl.BlockSpec((None, rows, cols), lambda bi, di: (bi, 0, 0))

    def layer_spec(*dims):
        return pl.BlockSpec((None,) + dims,
                            lambda bi, di: (di,) + (0,) * len(dims))

    def shared_spec(*dims):
        return pl.BlockSpec(dims, lambda bi, di: (0,) * len(dims))

    # Explicit VMEM budget (mandatory at real sizes, esp. v5e's 16 MiB default
    # scoped VMEM); clamp to 64 MiB so the same plan fits v7x's smaller VMEM.
    # TODO(synk): if 2x double-buffered layer weights approach ~48 MiB on v7x,
    # chunk the MLP hidden dim or use pipeline_mode=pl.Buffered(1) on MLP w.
    vmem_limit = int(min(64 * 2 ** 20,
                         max(32 * 2 ** 20,
                             2 * _encoder_vmem_bytes(Bt, S, T, din, E, Hm))))

    out = pl.pallas_call(
        kern,
        out_shape=jax.ShapeDtypeStruct((nb, Bt * T, E), jnp.float32),
        grid=(nb, depth),
        in_specs=[
            blk_spec(Bt * S, din),                              # raw features
            shared_spec(din, E), shared_spec(1, E),             # embed w / b
            shared_spec(1, E), shared_spec(T, E),               # cls, pos
            layer_spec(1, E), layer_spec(1, E),                 # ln1 gamma/beta
            layer_spec(E, 3 * E), layer_spec(1, 3 * E),         # qkv w / b
            layer_spec(E, E), layer_spec(1, E),                 # proj w / b
            layer_spec(1, E), layer_spec(1, E),                 # ln2 gamma/beta
            layer_spec(E, Hm), layer_spec(1, Hm),               # mlp1 w / b
            layer_spec(Hm, E), layer_spec(1, E),                # mlp2 w / b
            shared_spec(1, E), shared_spec(1, E),               # final LN gamma/beta
        ],
        out_specs=blk_spec(Bt * T, E),
        scratch_shapes=[pltpu.VMEM((Bt * T, E), jnp.float32)],  # attention accum
        compiler_params=pltpu.CompilerParams(
            dimension_semantics=("parallel", "arbitrary"),
            vmem_limit_bytes=vmem_limit),
    )(x_blk,
      params["embed"]["w"], params["embed"]["b"], params["cls"], params["pos"],
      layers["ln1_g"], layers["ln1_b"], layers["qkv_w"], layers["qkv_b"],
      layers["proj_w"], layers["proj_b"], layers["ln2_g"], layers["ln2_b"],
      layers["mlp1_w"], layers["mlp1_b"], layers["mlp2_w"], layers["mlp2_b"],
      params["lnf_g"], params["lnf_b"])
    return out.reshape(B, T, E)


# ----------------------------------------------------------------------------
# Kernel 2: classification heads + ConcatFusion, fused into one call.
# Outputs are lane-dense (classes padded to a multiple of 128, sliced outside).
# ----------------------------------------------------------------------------

def _heads_kernel(fa_ref, fv_ref, wa_ref, ba_ref, wv_ref, bv_ref,
                  wfa_ref, wfv_ref, bf_ref, out_ref, outa_ref, outv_ref):
    fa = fa_ref[...].astype(jnp.bfloat16)
    fv = fv_ref[...].astype(jnp.bfloat16)
    outa_ref[...] = (jnp.dot(fa, wa_ref[...], preferred_element_type=jnp.float32)
                     + ba_ref[...]).astype(outa_ref.dtype)
    outv_ref[...] = (jnp.dot(fv, wv_ref[...], preferred_element_type=jnp.float32)
                     + bv_ref[...]).astype(outv_ref.dtype)
    # ConcatFusion: concat([fa, fv]) @ Wf == fa @ Wf[:E] + fv @ Wf[E:]
    fused = (jnp.dot(fa, wfa_ref[...], preferred_element_type=jnp.float32)
             + jnp.dot(fv, wfv_ref[...], preferred_element_type=jnp.float32)
             + bf_ref[...])
    out_ref[...] = fused.astype(out_ref.dtype)


def _pad_classes(w, b, c_pad):
    c = w.shape[1]
    if c == c_pad:
        return w, b
    return (jnp.pad(w, ((0, 0), (0, c_pad - c))),
            jnp.pad(b, ((0, 0), (0, c_pad - c))))


def pallas_fusion_heads(fa, fv, a_head, v_head, fusion):
    B, E = fa.shape
    C = a_head["w"].shape[1]
    Cp = ((C + 127) // 128) * 128          # lane-dense output stores
    wa, ba = _pad_classes(a_head["w"], a_head["b"], Cp)
    wv, bv = _pad_classes(v_head["w"], v_head["b"], Cp)
    wf, bf = _pad_classes(fusion["w"], fusion["b"], Cp)
    wfa, wfv = wf[:E, :], wf[E:, :]

    def spec(*dims):
        return pl.BlockSpec(dims, lambda i: (0,) * len(dims))

    out, out_a, out_v = pl.pallas_call(
        _heads_kernel,
        out_shape=(jax.ShapeDtypeStruct((B, Cp), jnp.float32),) * 3,
        grid=(1,),
        in_specs=[spec(B, E), spec(B, E),
                  spec(E, Cp), spec(1, Cp),
                  spec(E, Cp), spec(1, Cp),
                  spec(E, Cp), spec(E, Cp), spec(1, Cp)],
        out_specs=[spec(B, Cp)] * 3,
    )(fa, fv, wa, ba, wv, bv, wfa, wfv, bf)
    return out[:, :C], out_a[:, :C], out_v[:, :C]


def _single_head_kernel(f_ref, w_ref, b_ref, o_ref):
    f = f_ref[...].astype(jnp.bfloat16)
    o_ref[...] = (jnp.dot(f, w_ref[...], preferred_element_type=jnp.float32)
                  + b_ref[...]).astype(o_ref.dtype)


def pallas_head(f, head):
    B, E = f.shape
    C = head["w"].shape[1]
    Cp = ((C + 127) // 128) * 128
    w, b = _pad_classes(head["w"], head["b"], Cp)

    def spec(*dims):
        return pl.BlockSpec(dims, lambda i: (0,) * len(dims))

    out = pl.pallas_call(
        _single_head_kernel,
        out_shape=jax.ShapeDtypeStruct((B, Cp), jnp.float32),
        grid=(1,),
        in_specs=[spec(B, E), spec(E, Cp), spec(1, Cp)],
        out_specs=spec(B, Cp),
    )(f, w, b)
    return out[:, :C]


# ----------------------------------------------------------------------------
# Parameter init (deterministic, synthetic).  Matmul weights in bf16.
# ----------------------------------------------------------------------------

def init_linear(key, din, dout, scale=0.02):
    return {"w": (scale * jax.random.normal(key, (din, dout), jnp.float32)
                  ).astype(jnp.bfloat16),
            "b": jnp.zeros((1, dout), jnp.float32)}


def init_encoder(key, din, seq, edim, depth, mlp_hidden, num_heads):
    head_dim = edim // num_heads
    ks = jax.random.split(key, 3 + 4 * depth)
    embed = init_linear(ks[0], din, edim)
    cls = 0.02 * jax.random.normal(ks[1], (1, edim), jnp.float32)
    pos = 0.02 * jax.random.normal(ks[2], (seq + 1, edim), jnp.float32)

    def w(i, off, shape):
        return 0.02 * jax.random.normal(ks[3 + 4 * i + off], shape, jnp.float32)

    def qkv_w(i):
        wq = w(i, 0, (edim, 3 * edim))
        # Fold the 1/sqrt(head_dim) attention scale into the Q columns
        # (Q bias is zero here; it would need the same scaling otherwise).
        wq = wq.at[:, :edim].multiply(1.0 / math.sqrt(head_dim))
        return wq.astype(jnp.bfloat16)

    layers = {
        "ln1_g": jnp.ones((depth, 1, edim), jnp.float32),
        "ln1_b": jnp.zeros((depth, 1, edim), jnp.float32),
        "qkv_w": jnp.stack([qkv_w(i) for i in range(depth)]),
        "qkv_b": jnp.zeros((depth, 1, 3 * edim), jnp.float32),
        "proj_w": jnp.stack([w(i, 1, (edim, edim)).astype(jnp.bfloat16)
                             for i in range(depth)]),
        "proj_b": jnp.zeros((depth, 1, edim), jnp.float32),
        "ln2_g": jnp.ones((depth, 1, edim), jnp.float32),
        "ln2_b": jnp.zeros((depth, 1, edim), jnp.float32),
        "mlp1_w": jnp.stack([w(i, 2, (edim, mlp_hidden)).astype(jnp.bfloat16)
                             for i in range(depth)]),
        "mlp1_b": jnp.zeros((depth, 1, mlp_hidden), jnp.float32),
        "mlp2_w": jnp.stack([w(i, 3, (mlp_hidden, edim)).astype(jnp.bfloat16)
                             for i in range(depth)]),
        "mlp2_b": jnp.zeros((depth, 1, edim), jnp.float32),
    }
    return {"embed": embed, "cls": cls, "pos": pos, "layers": layers,
            "lnf_g": jnp.ones((1, edim), jnp.float32),
            "lnf_b": jnp.zeros((1, edim), jnp.float32)}


def init_params(key, da, dv, seq_a, seq_v, edim, depth, mlp_hidden, n_classes,
                num_heads):
    k_ea, k_ev, k_ah, k_vh, k_fu = jax.random.split(key, 5)
    return {
        "enc_a": init_encoder(k_ea, da, seq_a, edim, depth, mlp_hidden, num_heads),
        "enc_v": init_encoder(k_ev, dv, seq_v, edim, depth, mlp_hidden, num_heads),
        "a_head": init_linear(k_ah, edim, n_classes),
        "v_head": init_linear(k_vh, edim, n_classes),
        "fusion": init_linear(k_fu, 2 * edim, n_classes),   # ConcatFusion fc_out
    }


# ----------------------------------------------------------------------------
# MMTransformerBase forward
# ----------------------------------------------------------------------------

def mm_transformer_base_forward(params, a, v, num_heads, fusion="concat"):
    token_a = pallas_encoder(a, params["enc_a"], num_heads)
    token_v = pallas_encoder(v, params["enc_v"], num_heads)

    if fusion == "uni_A":
        fa = token_a[:, 0, :]
        out_a = pallas_head(fa, params["a_head"])
        # NOTE: the reference returns token_a for 'token_v' in both uni branches.
        return {"token_a": token_a, "token_v": token_a,
                "out": out_a, "out_a": out_a, "out_v": out_a}
    if fusion == "uni_V":
        fv = token_v[:, 0, :]
        out_v = pallas_head(fv, params["v_head"])
        return {"token_a": token_a, "token_v": token_a,
                "out": out_v, "out_a": out_v, "out_v": out_v}

    # 'concat' path.  .detach().clone() on the head inputs only affects
    # gradients; forward values are identical (forward-only kernels here).
    fa = token_a[:, 0, :]
    fv = token_v[:, 0, :]
    out, out_a, out_v = pallas_fusion_heads(fa, fv, params["a_head"],
                                            params["v_head"], params["fusion"])
    # TODO(synk): 'sum' fusion_method (SumFusion) not implemented (no spec given).
    return {"token_a": token_a, "token_v": token_v, "fa": fa, "fv": fv,
            "out": out, "out_a": out_a, "out_v": out_v}


# ----------------------------------------------------------------------------
# Demo
# ----------------------------------------------------------------------------

if __name__ == "__main__":
    B = 2
    Sa, Sv = 8, 8          # per-modality sequence lengths
    da, dv = 24, 40        # per-modality raw feature dims
    edim = 32              # args.edim
    num_heads = 4
    depth = 2
    mlp_hidden = 64
    n_classes = 8

    key = jax.random.PRNGKey(0)
    ka, kv, kp = jax.random.split(key, 3)
    a = jax.random.normal(ka, (B, Sa, da), jnp.float32)
    v = jax.random.normal(kv, (B, Sv, dv), jnp.float32)

    params = init_params(kp, da, dv, Sa, Sv, edim, depth, mlp_hidden,
                         n_classes, num_heads)

    fwd = jax.jit(functools.partial(mm_transformer_base_forward,
                                    num_heads=num_heads, fusion="concat"))
    out = fwd(params, a, v)
    jax.block_until_ready(out)

    assert out["token_a"].shape == (B, Sa + 1, edim)
    assert out["token_v"].shape == (B, Sv + 1, edim)
    assert out["out"].shape == (B, n_classes)
    assert out["out_a"].shape == (B, n_classes)
    assert out["out_v"].shape == (B, n_classes)
    assert bool(jnp.all(jnp.isfinite(out["out"])))
    print("KERNEL_OK")
</pallas_src>

<mosaic_0001>
module attributes {stable_mosaic.version = 11 : i64} {
  func.func @_encoder_kernel(%arg0: i32, %arg1: i32, %arg2: memref<1x16x24xf32, #tpu.memory_space<vmem>>, %arg3: memref<24x32xbf16, #tpu.memory_space<vmem>>, %arg4: memref<1x32xf32, #tpu.memory_space<vmem>>, %arg5: memref<1x32xf32, #tpu.memory_space<vmem>>, %arg6: memref<9x32xf32, #tpu.memory_space<vmem>>, %arg7: memref<1x1x32xf32, #tpu.memory_space<vmem>>, %arg8: memref<1x1x32xf32, #tpu.memory_space<vmem>>, %arg9: memref<1x32x96xbf16, #tpu.memory_space<vmem>>, %arg10: memref<1x1x96xf32, #tpu.memory_space<vmem>>, %arg11: memref<1x32x32xbf16, #tpu.memory_space<vmem>>, %arg12: memref<1x1x32xf32, #tpu.memory_space<vmem>>, %arg13: memref<1x1x32xf32, #tpu.memory_space<vmem>>, %arg14: memref<1x1x32xf32, #tpu.memory_space<vmem>>, %arg15: memref<1x32x64xbf16, #tpu.memory_space<vmem>>, %arg16: memref<1x1x64xf32, #tpu.memory_space<vmem>>, %arg17: memref<1x64x32xbf16, #tpu.memory_space<vmem>>, %arg18: memref<1x1x32xf32, #tpu.memory_space<vmem>>, %arg19: memref<1x32xf32, #tpu.memory_space<vmem>>, %arg20: memref<1x32xf32, #tpu.memory_space<vmem>>, %arg21: memref<1x18x32xf32, #tpu.memory_space<vmem>>, %arg22: memref<18x32xf32, #tpu.memory_space<vmem>>) attributes {dimension_semantics = [#tpu.dimension_semantics<parallel>, #tpu.dimension_semantics<arbitrary>], iteration_bounds = array<i64: 1, 2>, scalar_prefetch = 0 : i64, scratch_operands = 1 : i64, tpu.core_type = #tpu.core_type<tc>, window_params = [{transform_indices = @transform_0, window_bounds = array<i64: 1, 16, 24>}, {pipeline_mode = #tpu.pipeline_mode<synchronous>, transform_indices = @transform_1, window_bounds = array<i64: 24, 32>}, {pipeline_mode = #tpu.pipeline_mode<synchronous>, transform_indices = @transform_2, window_bounds = array<i64: 1, 32>}, {pipeline_mode = #tpu.pipeline_mode<synchronous>, transform_indices = @transform_3, window_bounds = array<i64: 1, 32>}, {pipeline_mode = #tpu.pipeline_mode<synchronous>, transform_indices = @transform_4, window_bounds = array<i64: 9, 32>}, {transform_indices = @transform_5, window_bounds = array<i64: 1, 1, 32>}, {transform_indices = @transform_6, window_bounds = array<i64: 1, 1, 32>}, {transform_indices = @transform_7, window_bounds = array<i64: 1, 32, 96>}, {transform_indices = @transform_8, window_bounds = array<i64: 1, 1, 96>}, {transform_indices = @transform_9, window_bounds = array<i64: 1, 32, 32>}, {transform_indices = @transform_10, window_bounds = array<i64: 1, 1, 32>}, {transform_indices = @transform_11, window_bounds = array<i64: 1, 1, 32>}, {transform_indices = @transform_12, window_bounds = array<i64: 1, 1, 32>}, {transform_indices = @transform_13, window_bounds = array<i64: 1, 32, 64>}, {transform_indices = @transform_14, window_bounds = array<i64: 1, 1, 64>}, {transform_indices = @transform_15, window_bounds = array<i64: 1, 64, 32>}, {transform_indices = @transform_16, window_bounds = array<i64: 1, 1, 32>}, {pipeline_mode = #tpu.pipeline_mode<synchronous>, transform_indices = @transform_17, window_bounds = array<i64: 1, 32>}, {pipeline_mode = #tpu.pipeline_mode<synchronous>, transform_indices = @transform_18, window_bounds = array<i64: 1, 32>}, {transform_indices = @transform_19, window_bounds = array<i64: 1, 18, 32>}]} {
    %c0_i32 = arith.constant 0 : i32
    %0 = arith.cmpi eq, %arg1, %c0_i32 : i32
    %1 = arith.extui %0 : i1 to i32
    %c0_i32_0 = arith.constant 0 : i32
    %2 = arith.cmpi ne, %1, %c0_i32_0 : i32
    scf.if %2 {
      %c0_103 = arith.constant 0 : index
      %c0_104 = arith.constant 0 : index
      %c0_105 = arith.constant 0 : index
      %289 = vector.load %arg2[%c0_103, %c0_104, %c0_105] : memref<1x16x24xf32, #tpu.memory_space<vmem>>, vector<1x16x24xf32>
      %290 = vector.shape_cast %289 : vector<1x16x24xf32> to vector<16x24xf32>
      %291 = arith.truncf %290 : vector<16x24xf32> to vector<16x24xbf16>
      %c0_106 = arith.constant 0 : index
      %c0_107 = arith.constant 0 : index
      %292 = vector.load %arg3[%c0_106, %c0_107] : memref<24x32xbf16, #tpu.memory_space<vmem>>, vector<24x32xbf16>
      %cst_108 = arith.constant dense<0.000000e+00> : vector<16x32xf32>
      %293 = tpu.matmul %291, %292, %cst_108 {dimension_numbers = #tpu.dot_dimension_numbers<[1], [0], [0], [1], [0, 0, 1, 1], [], []>} : vector<16x24xbf16>, vector<24x32xbf16>, vector<16x32xf32> -> vector<16x32xf32>
      %c0_109 = arith.constant 0 : index
      %c0_110 = arith.constant 0 : index
      %294 = vector.load %arg4[%c0_109, %c0_110] : memref<1x32xf32, #tpu.memory_space<vmem>>, vector<1x32xf32>
      %295 = vector.broadcast %294 : vector<1x32xf32> to vector<16x32xf32>
      %296 = arith.addf %293, %295 : vector<16x32xf32>
      %c0_111 = arith.constant 0 : index
      %c0_112 = arith.constant 0 : index
      %297 = vector.load %arg5[%c0_111, %c0_112] : memref<1x32xf32, #tpu.memory_space<vmem>>, vector<1x32xf32>
      %c0_113 = arith.constant 0 : index
      %c0_114 = arith.constant 0 : index
      %298 = vector.load %arg6[%c0_113, %c0_114] : memref<9x32xf32, #tpu.memory_space<vmem>>, vector<1x32xf32>
      %299 = arith.addf %297, %298 : vector<1x32xf32>
      %c1 = arith.constant 1 : index
      %c0_115 = arith.constant 0 : index
      %300 = vector.load %arg6[%c1, %c0_115] : memref<9x32xf32, #tpu.memory_space<vmem>>, vector<8x32xf32>
      %c0_116 = arith.constant 0 : index
      %c0_117 = arith.constant 0 : index
      %c0_118 = arith.constant 0 : index
      %301 = vector.load %arg21[%c0_116, %c0_117, %c0_118] : memref<1x18x32xf32, #tpu.memory_space<vmem>>, vector<1x1x32xf32>
      %302 = vector.shape_cast %301 : vector<1x1x32xf32> to vector<1x32xf32>
      %303 = vector.shape_cast %299 : vector<1x32xf32> to vector<1x1x32xf32>
      tpu.vector_store %arg21[%c0_116, %c0_117, %c0_118], %303 {strides = array<i32>} : memref<1x18x32xf32, #tpu.memory_space<vmem>>, vector<1x1x32xf32>,
      %304 = vector.extract_strided_slice %296 {offsets = [0, 0], sizes = [8, 32], strides = [1, 1]} : vector<16x32xf32> to vector<8x32xf32>
      %305 = arith.addf %304, %300 : vector<8x32xf32>
      %c0_119 = arith.constant 0 : index
      %c1_120 = arith.constant 1 : index
      %c0_121 = arith.constant 0 : index
      %306 = vector.load %arg21[%c0_119, %c1_120, %c0_121] : memref<1x18x32xf32, #tpu.memory_space<vmem>>, vector<1x8x32xf32>
      %307 = vector.shape_cast %306 : vector<1x8x32xf32> to vector<8x32xf32>
      %308 = vector.shape_cast %305 : vector<8x32xf32> to vector<1x8x32xf32>
      tpu.vector_store %arg21[%c0_119, %c1_120, %c0_121], %308 {strides = array<i32>} : memref<1x18x32xf32, #tpu.memory_space<vmem>>, vector<1x8x32xf32>,
      %c0_122 = arith.constant 0 : index
      %c9_123 = arith.constant 9 : index
      %c0_124 = arith.constant 0 : index
      %309 = vector.load %arg21[%c0_122, %c9_123, %c0_124] : memref<1x18x32xf32, #tpu.memory_space<vmem>>, vector<1x1x32xf32>
      %310 = vector.shape_cast %309 : vector<1x1x32xf32> to vector<1x32xf32>
      %311 = vector.shape_cast %299 : vector<1x32xf32> to vector<1x1x32xf32>
      tpu.vector_store %arg21[%c0_122, %c9_123, %c0_124], %311 {strides = array<i32>} : memref<1x18x32xf32, #tpu.memory_space<vmem>>, vector<1x1x32xf32>,
      %312 = vector.extract_strided_slice %296 {offsets = [8, 0], sizes = [8, 32], strides = [1, 1]} : vector<16x32xf32> to vector<8x32xf32>
      %313 = arith.addf %312, %300 : vector<8x32xf32>
      %c0_125 = arith.constant 0 : index
      %c10 = arith.constant 10 : index
      %c0_126 = arith.constant 0 : index
      %314 = vector.load %arg21[%c0_125, %c10, %c0_126] : memref<1x18x32xf32, #tpu.memory_space<vmem>>, vector<1x8x32xf32>
      %315 = vector.shape_cast %314 : vector<1x8x32xf32> to vector<8x32xf32>
      %316 = vector.shape_cast %313 : vector<8x32xf32> to vector<1x8x32xf32>
      tpu.vector_store %arg21[%c0_125, %c10, %c0_126], %316 {strides = array<i32>} : memref<1x18x32xf32, #tpu.memory_space<vmem>>, vector<1x8x32xf32>,
    } else {
    }
    %c0 = arith.constant 0 : index
    %c0_1 = arith.constant 0 : index
    %c0_2 = arith.constant 0 : index
    %3 = vector.load %arg21[%c0, %c0_1, %c0_2] : memref<1x18x32xf32, #tpu.memory_space<vmem>>, vector<1x18x32xf32>
    %4 = vector.shape_cast %3 : vector<1x18x32xf32> to vector<18x32xf32>
    %c0_3 = arith.constant 0 : index
    %c0_4 = arith.constant 0 : index
    %c0_5 = arith.constant 0 : index
    %5 = vector.load %arg7[%c0_3, %c0_4, %c0_5] : memref<1x1x32xf32, #tpu.memory_space<vmem>>, vector<1x1x32xf32>
    %6 = vector.shape_cast %5 : vector<1x1x32xf32> to vector<1x32xf32>
    %c0_6 = arith.constant 0 : index
    %c0_7 = arith.constant 0 : index
    %c0_8 = arith.constant 0 : index
    %7 = vector.load %arg8[%c0_6, %c0_7, %c0_8] : memref<1x1x32xf32, #tpu.memory_space<vmem>>, vector<1x1x32xf32>
    %8 = vector.shape_cast %7 : vector<1x1x32xf32> to vector<1x32xf32>
    %cst = arith.constant dense<0.000000e+00> : vector<18xf32>
    %9 = vector.multi_reduction <add>, %4, %cst [1] : vector<18x32xf32> to vector<18xf32>
    %10 = vector.shape_cast %9 : vector<18xf32> to vector<18x1xf32>
    %cst_9 = arith.constant 3.125000e-02 : f32
    %11 = vector.broadcast %cst_9 : f32 to vector<18x1xf32>
    %12 = arith.mulf %10, %11 : vector<18x1xf32>
    %13 = vector.broadcast %12 : vector<18x1xf32> to vector<18x32xf32>
    %14 = arith.subf %4, %13 : vector<18x32xf32>
    %15 = arith.mulf %14, %14 : vector<18x32xf32>
    %cst_10 = arith.constant dense<0.000000e+00> : vector<18xf32>
    %16 = vector.multi_reduction <add>, %15, %cst_10 [1] : vector<18x32xf32> to vector<18xf32>
    %17 = vector.shape_cast %16 : vector<18xf32> to vector<18x1xf32>
    %cst_11 = arith.constant 3.125000e-02 : f32
    %18 = vector.broadcast %cst_11 : f32 to vector<18x1xf32>
    %19 = arith.mulf %17, %18 : vector<18x1xf32>
    %cst_12 = arith.constant 9.99999974E-6 : f32
    %20 = vector.broadcast %cst_12 : f32 to vector<18x1xf32>
    %21 = arith.addf %19, %20 : vector<18x1xf32>
    %22 = math.rsqrt %21 : vector<18x1xf32>
    %23 = vector.broadcast %22 : vector<18x1xf32> to vector<18x32xf32>
    %24 = arith.mulf %14, %23 : vector<18x32xf32>
    %25 = vector.broadcast %6 : vector<1x32xf32> to vector<18x32xf32>
    %26 = arith.mulf %24, %25 : vector<18x32xf32>
    %27 = vector.broadcast %8 : vector<1x32xf32> to vector<18x32xf32>
    %28 = arith.addf %26, %27 : vector<18x32xf32>
    %29 = arith.truncf %28 : vector<18x32xf32> to vector<18x32xbf16>
    %c0_13 = arith.constant 0 : index
    %c0_14 = arith.constant 0 : index
    %c0_15 = arith.constant 0 : index
    %30 = vector.load %arg9[%c0_13, %c0_14, %c0_15] : memref<1x32x96xbf16, #tpu.memory_space<vmem>>, vector<1x32x96xbf16>
    %31 = vector.shape_cast %30 : vector<1x32x96xbf16> to vector<32x96xbf16>
    %cst_16 = arith.constant dense<0.000000e+00> : vector<18x96xf32>
    %32 = tpu.matmul %29, %31, %cst_16 {dimension_numbers = #tpu.dot_dimension_numbers<[1], [0], [0], [1], [0, 0, 1, 1], [], []>} : vector<18x32xbf16>, vector<32x96xbf16>, vector<18x96xf32> -> vector<18x96xf32>
    %c0_17 = arith.constant 0 : index
    %c0_18 = arith.constant 0 : index
    %c0_19 = arith.constant 0 : index
    %33 = vector.load %arg10[%c0_17, %c0_18, %c0_19] : memref<1x1x96xf32, #tpu.memory_space<vmem>>, vector<1x1x96xf32>
    %34 = vector.shape_cast %33 : vector<1x1x96xf32> to vector<1x96xf32>
    %35 = vector.broadcast %34 : vector<1x96xf32> to vector<18x96xf32>
    %36 = arith.addf %32, %35 : vector<18x96xf32>
    %c0_20 = arith.constant 0 : index
    %c0_21 = arith.constant 0 : index
    %c0_22 = arith.constant 0 : index
    %37 = vector.load %arg11[%c0_20, %c0_21, %c0_22] : memref<1x32x32xbf16, #tpu.memory_space<vmem>>, vector<1x32x32xbf16>
    %38 = vector.shape_cast %37 : vector<1x32x32xbf16> to vector<32x32xbf16>
    %39 = vector.extract_strided_slice %36 {offsets = [0, 0], sizes = [9, 8], strides = [1, 1]} : vector<18x96xf32> to vector<9x8xf32>
    %40 = arith.truncf %39 : vector<9x8xf32> to vector<9x8xbf16>
    %41 = vector.extract_strided_slice %36 {offsets = [0, 32], sizes = [9, 8], strides = [1, 1]} : vector<18x96xf32> to vector<9x8xf32>
    %42 = arith.truncf %41 : vector<9x8xf32> to vector<9x8xbf16>
    %43 = vector.extract_strided_slice %36 {offsets = [0, 64], sizes = [9, 8], strides = [1, 1]} : vector<18x96xf32> to vector<9x8xf32>
    %44 = arith.truncf %43 : vector<9x8xf32> to vector<9x8xbf16>
    %cst_23 = arith.constant dense<0.000000e+00> : vector<9x9xf32>
    %45 = tpu.matmul %40, %42, %cst_23 {dimension_numbers = #tpu.dot_dimension_numbers<[1], [1], [0], [0], [0, 0, 1, 0], [], []>} : vector<9x8xbf16>, vector<9x8xbf16>, vector<9x9xf32> -> vector<9x9xf32>
    %cst_24 = arith.constant dense<0xFF800000> : vector<9xf32>
    %46 = vector.multi_reduction <maximumf>, %45, %cst_24 [1] : vector<9x9xf32> to vector<9xf32>
    %47 = vector.shape_cast %46 : vector<9xf32> to vector<9x1xf32>
    %48 = vector.broadcast %47 : vector<9x1xf32> to vector<9x9xf32>
    %49 = arith.subf %45, %48 : vector<9x9xf32>
    %50 = math.exp %49 : vector<9x9xf32>
    %cst_25 = arith.constant dense<0.000000e+00> : vector<9xf32>
    %51 = vector.multi_reduction <add>, %50, %cst_25 [1] : vector<9x9xf32> to vector<9xf32>
    %52 = vector.shape_cast %51 : vector<9xf32> to vector<9x1xf32>
    %53 = tpu.reciprocal %52 {approx = true} : vector<9x1xf32> -> vector<9x1xf32>
    %54 = vector.broadcast %53 : vector<9x1xf32> to vector<9x9xf32>
    %55 = arith.mulf %50, %54 : vector<9x9xf32>
    %56 = arith.truncf %55 : vector<9x9xf32> to vector<9x9xbf16>
    %cst_26 = arith.constant dense<0.000000e+00> : vector<9x8xf32>
    %57 = tpu.matmul %56, %44, %cst_26 {dimension_numbers = #tpu.dot_dimension_numbers<[1], [0], [0], [1], [0, 0, 1, 1], [], []>} : vector<9x9xbf16>, vector<9x8xbf16>, vector<9x8xf32> -> vector<9x8xf32>
    %58 = arith.truncf %57 : vector<9x8xf32> to vector<9x8xbf16>
    %59 = vector.extract_strided_slice %38 {offsets = [0, 0], sizes = [8, 32], strides = [1, 1]} : vector<32x32xbf16> to vector<8x32xbf16>
    %cst_27 = arith.constant dense<0.000000e+00> : vector<9x32xf32>
    %60 = tpu.matmul %58, %59, %cst_27 {dimension_numbers = #tpu.dot_dimension_numbers<[1], [0], [0], [1], [0, 0, 1, 1], [], []>} : vector<9x8xbf16>, vector<8x32xbf16>, vector<9x32xf32> -> vector<9x32xf32>
    %61 = vector.extract_strided_slice %36 {offsets = [0, 8], sizes = [9, 8], strides = [1, 1]} : vector<18x96xf32> to vector<9x8xf32>
    %62 = arith.truncf %61 : vector<9x8xf32> to vector<9x8xbf16>
    %63 = vector.extract_strided_slice %36 {offsets = [0, 40], sizes = [9, 8], strides = [1, 1]} : vector<18x96xf32> to vector<9x8xf32>
    %64 = arith.truncf %63 : vector<9x8xf32> to vector<9x8xbf16>
    %65 = vector.extract_strided_slice %36 {offsets = [0, 72], sizes = [9, 8], strides = [1, 1]} : vector<18x96xf32> to vector<9x8xf32>
    %66 = arith.truncf %65 : vector<9x8xf32> to vector<9x8xbf16>
    %cst_28 = arith.constant dense<0.000000e+00> : vector<9x9xf32>
    %67 = tpu.matmul %62, %64, %cst_28 {dimension_numbers = #tpu.dot_dimension_numbers<[1], [1], [0], [0], [0, 0, 1, 0], [], []>} : vector<9x8xbf16>, vector<9x8xbf16>, vector<9x9xf32> -> vector<9x9xf32>
    %cst_29 = arith.constant dense<0xFF800000> : vector<9xf32>
    %68 = vector.multi_reduction <maximumf>, %67, %cst_29 [1] : vector<9x9xf32> to vector<9xf32>
    %69 = vector.shape_cast %68 : vector<9xf32> to vector<9x1xf32>
    %70 = vector.broadcast %69 : vector<9x1xf32> to vector<9x9xf32>
    %71 = arith.subf %67, %70 : vector<9x9xf32>
    %72 = math.exp %71 : vector<9x9xf32>
    %cst_30 = arith.constant dense<0.000000e+00> : vector<9xf32>
    %73 = vector.multi_reduction <add>, %72, %cst_30 [1] : vector<9x9xf32> to vector<9xf32>
    %74 = vector.shape_cast %73 : vector<9xf32> to vector<9x1xf32>
    %75 = tpu.reciprocal %74 {approx = true} : vector<9x1xf32> -> vector<9x1xf32>
    %76 = vector.broadcast %75 : vector<9x1xf32> to vector<9x9xf32>
    %77 = arith.mulf %72, %76 : vector<9x9xf32>
    %78 = arith.truncf %77 : vector<9x9xf32> to vector<9x9xbf16>
    %cst_31 = arith.constant dense<0.000000e+00> : vector<9x8xf32>
    %79 = tpu.matmul %78, %66, %cst_31 {dimension_numbers = #tpu.dot_dimension_numbers<[1], [0], [0], [1], [0, 0, 1, 1], [], []>} : vector<9x9xbf16>, vector<9x8xbf16>, vector<9x8xf32> -> vector<9x8xf32>
    %80 = arith.truncf %79 : vector<9x8xf32> to vector<9x8xbf16>
    %81 = vector.extract_strided_slice %38 {offsets = [8, 0], sizes = [8, 32], strides = [1, 1]} : vector<32x32xbf16> to vector<8x32xbf16>
    %cst_32 = arith.constant dense<0.000000e+00> : vector<9x32xf32>
    %82 = tpu.matmul %80, %81, %cst_32 {dimension_numbers = #tpu.dot_dimension_numbers<[1], [0], [0], [1], [0, 0, 1, 1], [], []>} : vector<9x8xbf16>, vector<8x32xbf16>, vector<9x32xf32> -> vector<9x32xf32>
    %83 = arith.addf %60, %82 : vector<9x32xf32>
    %84 = vector.extract_strided_slice %36 {offsets = [0, 16], sizes = [9, 8], strides = [1, 1]} : vector<18x96xf32> to vector<9x8xf32>
    %85 = arith.truncf %84 : vector<9x8xf32> to vector<9x8xbf16>
    %86 = vector.extract_strided_slice %36 {offsets = [0, 48], sizes = [9, 8], strides = [1, 1]} : vector<18x96xf32> to vector<9x8xf32>
    %87 = arith.truncf %86 : vector<9x8xf32> to vector<9x8xbf16>
    %88 = vector.extract_strided_slice %36 {offsets = [0, 80], sizes = [9, 8], strides = [1, 1]} : vector<18x96xf32> to vector<9x8xf32>
    %89 = arith.truncf %88 : vector<9x8xf32> to vector<9x8xbf16>
    %cst_33 = arith.constant dense<0.000000e+00> : vector<9x9xf32>
    %90 = tpu.matmul %85, %87, %cst_33 {dimension_numbers = #tpu.dot_dimension_numbers<[1], [1], [0], [0], [0, 0, 1, 0], [], []>} : vector<9x8xbf16>, vector<9x8xbf16>, vector<9x9xf32> -> vector<9x9xf32>
    %cst_34 = arith.constant dense<0xFF800000> : vector<9xf32>
    %91 = vector.multi_reduction <maximumf>, %90, %cst_34 [1] : vector<9x9xf32> to vector<9xf32>
    %92 = vector.shape_cast %91 : vector<9xf32> to vector<9x1xf32>
    %93 = vector.broadcast %92 : vector<9x1xf32> to vector<9x9xf32>
    %94 = arith.subf %90, %93 : vector<9x9xf32>
    %95 = math.exp %94 : vector<9x9xf32>
    %cst_35 = arith.constant dense<0.000000e+00> : vector<9xf32>
    %96 = vector.multi_reduction <add>, %95, %cst_35 [1] : vector<9x9xf32> to vector<9xf32>
    %97 = vector.shape_cast %96 : vector<9xf32> to vector<9x1xf32>
    %98 = tpu.reciprocal %97 {approx = true} : vector<9x1xf32> -> vector<9x1xf32>
    %99 = vector.broadcast %98 : vector<9x1xf32> to vector<9x9xf32>
    %100 = arith.mulf %95, %99 : vector<9x9xf32>
    %101 = arith.truncf %100 : vector<9x9xf32> to vector<9x9xbf16>
    %cst_36 = arith.constant dense<0.000000e+00> : vector<9x8xf32>
    %102 = tpu.matmul %101, %89, %cst_36 {dimension_numbers = #tpu.dot_dimension_numbers<[1], [0], [0], [1], [0, 0, 1, 1], [], []>} : vector<9x9xbf16>, vector<9x8xbf16>, vector<9x8xf32> -> vector<9x8xf32>
    %103 = arith.truncf %102 : vector<9x8xf32> to vector<9x8xbf16>
    %104 = vector.extract_strided_slice %38 {offsets = [16, 0], sizes = [8, 32], strides = [1, 1]} : vector<32x32xbf16> to vector<8x32xbf16>
    %cst_37 = arith.constant dense<0.000000e+00> : vector<9x32xf32>
    %105 = tpu.matmul %103, %104, %cst_37 {dimension_numbers = #tpu.dot_dimension_numbers<[1], [0], [0], [1], [0, 0, 1, 1], [], []>} : vector<9x8xbf16>, vector<8x32xbf16>, vector<9x32xf32> -> vector<9x32xf32>
    %106 = arith.addf %83, %105 : vector<9x32xf32>
    %107 = vector.extract_strided_slice %36 {offsets = [0, 24], sizes = [9, 8], strides = [1, 1]} : vector<18x96xf32> to vector<9x8xf32>
    %108 = arith.truncf %107 : vector<9x8xf32> to vector<9x8xbf16>
    %109 = vector.extract_strided_slice %36 {offsets = [0, 56], sizes = [9, 8], strides = [1, 1]} : vector<18x96xf32> to vector<9x8xf32>
    %110 = arith.truncf %109 : vector<9x8xf32> to vector<9x8xbf16>
    %111 = vector.extract_strided_slice %36 {offsets = [0, 88], sizes = [9, 8], strides = [1, 1]} : vector<18x96xf32> to vector<9x8xf32>
    %112 = arith.truncf %111 : vector<9x8xf32> to vector<9x8xbf16>
    %cst_38 = arith.constant dense<0.000000e+00> : vector<9x9xf32>
    %113 = tpu.matmul %108, %110, %cst_38 {dimension_numbers = #tpu.dot_dimension_numbers<[1], [1], [0], [0], [0, 0, 1, 0], [], []>} : vector<9x8xbf16>, vector<9x8xbf16>, vector<9x9xf32> -> vector<9x9xf32>
    %cst_39 = arith.constant dense<0xFF800000> : vector<9xf32>
    %114 = vector.multi_reduction <maximumf>, %113, %cst_39 [1] : vector<9x9xf32> to vector<9xf32>
    %115 = vector.shape_cast %114 : vector<9xf32> to vector<9x1xf32>
    %116 = vector.broadcast %115 : vector<9x1xf32> to vector<9x9xf32>
    %117 = arith.subf %113, %116 : vector<9x9xf32>
    %118 = math.exp %117 : vector<9x9xf32>
    %cst_40 = arith.constant dense<0.000000e+00> : vector<9xf32>
    %119 = vector.multi_reduction <add>, %118, %cst_40 [1] : vector<9x9xf32> to vector<9xf32>
    %120 = vector.shape_cast %119 : vector<9xf32> to vector<9x1xf32>
    %121 = tpu.reciprocal %120 {approx = true} : vector<9x1xf32> -> vector<9x1xf32>
    %122 = vector.broadcast %121 : vector<9x1xf32> to vector<9x9xf32>
    %123 = arith.mulf %118, %122 : vector<9x9xf32>
    %124 = arith.truncf %123 : vector<9x9xf32> to vector<9x9xbf16>
    %cst_41 = arith.constant dense<0.000000e+00> : vector<9x8xf32>
    %125 = tpu.matmul %124, %112, %cst_41 {dimension_numbers = #tpu.dot_dimension_numbers<[1], [0], [0], [1], [0, 0, 1, 1], [], []>} : vector<9x9xbf16>, vector<9x8xbf16>, vector<9x8xf32> -> vector<9x8xf32>
    %126 = arith.truncf %125 : vector<9x8xf32> to vector<9x8xbf16>
    %127 = vector.extract_strided_slice %38 {offsets = [24, 0], sizes = [8, 32], strides = [1, 1]} : vector<32x32xbf16> to vector<8x32xbf16>
    %cst_42 = arith.constant dense<0.000000e+00> : vector<9x32xf32>
    %128 = tpu.matmul %126, %127, %cst_42 {dimension_numbers = #tpu.dot_dimension_numbers<[1], [0], [0], [1], [0, 0, 1, 1], [], []>} : vector<9x8xbf16>, vector<8x32xbf16>, vector<9x32xf32> -> vector<9x32xf32>
    %129 = arith.addf %106, %128 : vector<9x32xf32>
    %c0_43 = arith.constant 0 : index
    %c0_44 = arith.constant 0 : index
    %130 = vector.load %arg22[%c0_43, %c0_44] : memref<18x32xf32, #tpu.memory_space<vmem>>, vector<9x32xf32>
    tpu.vector_store %arg22[%c0_43, %c0_44], %129 {strides = array<i32>} : memref<18x32xf32, #tpu.memory_space<vmem>>, vector<9x32xf32>,
    %131 = vector.extract_strided_slice %36 {offsets = [9, 0], sizes = [9, 8], strides = [1, 1]} : vector<18x96xf32> to vector<9x8xf32>
    %132 = arith.truncf %131 : vector<9x8xf32> to vector<9x8xbf16>
    %133 = vector.extract_strided_slice %36 {offsets = [9, 32], sizes = [9, 8], strides = [1, 1]} : vector<18x96xf32> to vector<9x8xf32>
    %134 = arith.truncf %133 : vector<9x8xf32> to vector<9x8xbf16>
    %135 = vector.extract_strided_slice %36 {offsets = [9, 64], sizes = [9, 8], strides = [1, 1]} : vector<18x96xf32> to vector<9x8xf32>
    %136 = arith.truncf %135 : vector<9x8xf32> to vector<9x8xbf16>
    %cst_45 = arith.constant dense<0.000000e+00> : vector<9x9xf32>
    %137 = tpu.matmul %132, %134, %cst_45 {dimension_numbers = #tpu.dot_dimension_numbers<[1], [1], [0], [0], [0, 0, 1, 0], [], []>} : vector<9x8xbf16>, vector<9x8xbf16>, vector<9x9xf32> -> vector<9x9xf32>
    %cst_46 = arith.constant dense<0xFF800000> : vector<9xf32>
    %138 = vector.multi_reduction <maximumf>, %137, %cst_46 [1] : vector<9x9xf32> to vector<9xf32>
    %139 = vector.shape_cast %138 : vector<9xf32> to vector<9x1xf32>
    %140 = vector.broadcast %139 : vector<9x1xf32> to vector<9x9xf32>
    %141 = arith.subf %137, %140 : vector<9x9xf32>
    %142 = math.exp %141 : vector<9x9xf32>
    %cst_47 = arith.constant dense<0.000000e+00> : vector<9xf32>
    %143 = vector.multi_reduction <add>, %142, %cst_47 [1] : vector<9x9xf32> to vector<9xf32>
    %144 = vector.shape_cast %143 : vector<9xf32> to vector<9x1xf32>
    %145 = tpu.reciprocal %144 {approx = true} : vector<9x1xf32> -> vector<9x1xf32>
    %146 = vector.broadcast %145 : vector<9x1xf32> to vector<9x9xf32>
    %147 = arith.mulf %142, %146 : vector<9x9xf32>
    %148 = arith.truncf %147 : vector<9x9xf32> to vector<9x9xbf16>
    %cst_48 = arith.constant dense<0.000000e+00> : vector<9x8xf32>
    %149 = tpu.matmul %148, %136, %cst_48 {dimension_numbers = #tpu.dot_dimension_numbers<[1], [0], [0], [1], [0, 0, 1, 1], [], []>} : vector<9x9xbf16>, vector<9x8xbf16>, vector<9x8xf32> -> vector<9x8xf32>
    %150 = arith.truncf %149 : vector<9x8xf32> to vector<9x8xbf16>
    %151 = vector.extract_strided_slice %38 {offsets = [0, 0], sizes = [8, 32], strides = [1, 1]} : vector<32x32xbf16> to vector<8x32xbf16>
    %cst_49 = arith.constant dense<0.000000e+00> : vector<9x32xf32>
    %152 = tpu.matmul %150, %151, %cst_49 {dimension_numbers = #tpu.dot_dimension_numbers<[1], [0], [0], [1], [0, 0, 1, 1], [], []>} : vector<9x8xbf16>, vector<8x32xbf16>, vector<9x32xf32> -> vector<9x32xf32>
    %153 = vector.extract_strided_slice %36 {offsets = [9, 8], sizes = [9, 8], strides = [1, 1]} : vector<18x96xf32> to vector<9x8xf32>
    %154 = arith.truncf %153 : vector<9x8xf32> to vector<9x8xbf16>
    %155 = vector.extract_strided_slice %36 {offsets = [9, 40], sizes = [9, 8], strides = [1, 1]} : vector<18x96xf32> to vector<9x8xf32>
    %156 = arith.truncf %155 : vector<9x8xf32> to vector<9x8xbf16>
    %157 = vector.extract_strided_slice %36 {offsets = [9, 72], sizes = [9, 8], strides = [1, 1]} : vector<18x96xf32> to vector<9x8xf32>
    %158 = arith.truncf %157 : vector<9x8xf32> to vector<9x8xbf16>
    %cst_50 = arith.constant dense<0.000000e+00> : vector<9x9xf32>
    %159 = tpu.matmul %154, %156, %cst_50 {dimension_numbers = #tpu.dot_dimension_numbers<[1], [1], [0], [0], [0, 0, 1, 0], [], []>} : vector<9x8xbf16>, vector<9x8xbf16>, vector<9x9xf32> -> vector<9x9xf32>
    %cst_51 = arith.constant dense<0xFF800000> : vector<9xf32>
    %160 = vector.multi_reduction <maximumf>, %159, %cst_51 [1] : vector<9x9xf32> to vector<9xf32>
    %161 = vector.shape_cast %160 : vector<9xf32> to vector<9x1xf32>
    %162 = vector.broadcast %161 : vector<9x1xf32> to vector<9x9xf32>
    %163 = arith.subf %159, %162 : vector<9x9xf32>
    %164 = math.exp %163 : vector<9x9xf32>
    %cst_52 = arith.constant dense<0.000000e+00> : vector<9xf32>
    %165 = vector.multi_reduction <add>, %164, %cst_52 [1] : vector<9x9xf32> to vector<9xf32>
    %166 = vector.shape_cast %165 : vector<9xf32> to vector<9x1xf32>
    %167 = tpu.reciprocal %166 {approx = true} : vector<9x1xf32> -> vector<9x1xf32>
    %168 = vector.broadcast %167 : vector<9x1xf32> to vector<9x9xf32>
    %169 = arith.mulf %164, %168 : vector<9x9xf32>
    %170 = arith.truncf %169 : vector<9x9xf32> to vector<9x9xbf16>
    %cst_53 = arith.constant dense<0.000000e+00> : vector<9x8xf32>
    %171 = tpu.matmul %170, %158, %cst_53 {dimension_numbers = #tpu.dot_dimension_numbers<[1], [0], [0], [1], [0, 0, 1, 1], [], []>} : vector<9x9xbf16>, vector<9x8xbf16>, vector<9x8xf32> -> vector<9x8xf32>
    %172 = arith.truncf %171 : vector<9x8xf32> to vector<9x8xbf16>
    %173 = vector.extract_strided_slice %38 {offsets = [8, 0], sizes = [8, 32], strides = [1, 1]} : vector<32x32xbf16> to vector<8x32xbf16>
    %cst_54 = arith.constant dense<0.000000e+00> : vector<9x32xf32>
    %174 = tpu.matmul %172, %173, %cst_54 {dimension_numbers = #tpu.dot_dimension_numbers<[1], [0], [0], [1], [0, 0, 1, 1], [], []>} : vector<9x8xbf16>, vector<8x32xbf16>, vector<9x32xf32> -> vector<9x32xf32>
    %175 = arith.addf %152, %174 : vector<9x32xf32>
    %176 = vector.extract_strided_slice %36 {offsets = [9, 16], sizes = [9, 8], strides = [1, 1]} : vector<18x96xf32> to vector<9x8xf32>
    %177 = arith.truncf %176 : vector<9x8xf32> to vector<9x8xbf16>
    %178 = vector.extract_strided_slice %36 {offsets = [9, 48], sizes = [9, 8], strides = [1, 1]} : vector<18x96xf32> to vector<9x8xf32>
    %179 = arith.truncf %178 : vector<9x8xf32> to vector<9x8xbf16>
    %180 = vector.extract_strided_slice %36 {offsets = [9, 80], sizes = [9, 8], strides = [1, 1]} : vector<18x96xf32> to vector<9x8xf32>
    %181 = arith.truncf %180 : vector<9x8xf32> to vector<9x8xbf16>
    %cst_55 = arith.constant dense<0.000000e+00> : vector<9x9xf32>
    %182 = tpu.matmul %177, %179, %cst_55 {dimension_numbers = #tpu.dot_dimension_numbers<[1], [1], [0], [0], [0, 0, 1, 0], [], []>} : vector<9x8xbf16>, vector<9x8xbf16>, vector<9x9xf32> -> vector<9x9xf32>
    %cst_56 = arith.constant dense<0xFF800000> : vector<9xf32>
    %183 = vector.multi_reduction <maximumf>, %182, %cst_56 [1] : vector<9x9xf32> to vector<9xf32>
    %184 = vector.shape_cast %183 : vector<9xf32> to vector<9x1xf32>
    %185 = vector.broadcast %184 : vector<9x1xf32> to vector<9x9xf32>
    %186 = arith.subf %182, %185 : vector<9x9xf32>
    %187 = math.exp %186 : vector<9x9xf32>
    %cst_57 = arith.constant dense<0.000000e+00> : vector<9xf32>
    %188 = vector.multi_reduction <add>, %187, %cst_57 [1] : vector<9x9xf32> to vector<9xf32>
    %189 = vector.shape_cast %188 : vector<9xf32> to vector<9x1xf32>
    %190 = tpu.reciprocal %189 {approx = true} : vector<9x1xf32> -> vector<9x1xf32>
    %191 = vector.broadcast %190 : vector<9x1xf32> to vector<9x9xf32>
    %192 = arith.mulf %187, %191 : vector<9x9xf32>
    %193 = arith.truncf %192 : vector<9x9xf32> to vector<9x9xbf16>
    %cst_58 = arith.constant dense<0.000000e+00> : vector<9x8xf32>
    %194 = tpu.matmul %193, %181, %cst_58 {dimension_numbers = #tpu.dot_dimension_numbers<[1], [0], [0], [1], [0, 0, 1, 1], [], []>} : vector<9x9xbf16>, vector<9x8xbf16>, vector<9x8xf32> -> vector<9x8xf32>
    %195 = arith.truncf %194 : vector<9x8xf32> to vector<9x8xbf16>
    %196 = vector.extract_strided_slice %38 {offsets = [16, 0], sizes = [8, 32], strides = [1, 1]} : vector<32x32xbf16> to vector<8x32xbf16>
    %cst_59 = arith.constant dense<0.000000e+00> : vector<9x32xf32>
    %197 = tpu.matmul %195, %196, %cst_59 {dimension_numbers = #tpu.dot_dimension_numbers<[1], [0], [0], [1], [0, 0, 1, 1], [], []>} : vector<9x8xbf16>, vector<8x32xbf16>, vector<9x32xf32> -> vector<9x32xf32>
    %198 = arith.addf %175, %197 : vector<9x32xf32>
    %199 = vector.extract_strided_slice %36 {offsets = [9, 24], sizes = [9, 8], strides = [1, 1]} : vector<18x96xf32> to vector<9x8xf32>
    %200 = arith.truncf %199 : vector<9x8xf32> to vector<9x8xbf16>
    %201 = vector.extract_strided_slice %36 {offsets = [9, 56], sizes = [9, 8], strides = [1, 1]} : vector<18x96xf32> to vector<9x8xf32>
    %202 = arith.truncf %201 : vector<9x8xf32> to vector<9x8xbf16>
    %203 = vector.extract_strided_slice %36 {offsets = [9, 88], sizes = [9, 8], strides = [1, 1]} : vector<18x96xf32> to vector<9x8xf32>
    %204 = arith.truncf %203 : vector<9x8xf32> to vector<9x8xbf16>
    %cst_60 = arith.constant dense<0.000000e+00> : vector<9x9xf32>
    %205 = tpu.matmul %200, %202, %cst_60 {dimension_numbers = #tpu.dot_dimension_numbers<[1], [1], [0], [0], [0, 0, 1, 0], [], []>} : vector<9x8xbf16>, vector<9x8xbf16>, vector<9x9xf32> -> vector<9x9xf32>
    %cst_61 = arith.constant dense<0xFF800000> : vector<9xf32>
    %206 = vector.multi_reduction <maximumf>, %205, %cst_61 [1] : vector<9x9xf32> to vector<9xf32>
    %207 = vector.shape_cast %206 : vector<9xf32> to vector<9x1xf32>
    %208 = vector.broadcast %207 : vector<9x1xf32> to vector<9x9xf32>
    %209 = arith.subf %205, %208 : vector<9x9xf32>
    %210 = math.exp %209 : vector<9x9xf32>
    %cst_62 = arith.constant dense<0.000000e+00> : vector<9xf32>
    %211 = vector.multi_reduction <add>, %210, %cst_62 [1] : vector<9x9xf32> to vector<9xf32>
    %212 = vector.shape_cast %211 : vector<9xf32> to vector<9x1xf32>
    %213 = tpu.reciprocal %212 {approx = true} : vector<9x1xf32> -> vector<9x1xf32>
    %214 = vector.broadcast %213 : vector<9x1xf32> to vector<9x9xf32>
    %215 = arith.mulf %210, %214 : vector<9x9xf32>
    %216 = arith.truncf %215 : vector<9x9xf32> to vector<9x9xbf16>
    %cst_63 = arith.constant dense<0.000000e+00> : vector<9x8xf32>
    %217 = tpu.matmul %216, %204, %cst_63 {dimension_numbers = #tpu.dot_dimension_numbers<[1], [0], [0], [1], [0, 0, 1, 1], [], []>} : vector<9x9xbf16>, vector<9x8xbf16>, vector<9x8xf32> -> vector<9x8xf32>
    %218 = arith.truncf %217 : vector<9x8xf32> to vector<9x8xbf16>
    %219 = vector.extract_strided_slice %38 {offsets = [24, 0], sizes = [8, 32], strides = [1, 1]} : vector<32x32xbf16> to vector<8x32xbf16>
    %cst_64 = arith.constant dense<0.000000e+00> : vector<9x32xf32>
    %220 = tpu.matmul %218, %219, %cst_64 {dimension_numbers = #tpu.dot_dimension_numbers<[1], [0], [0], [1], [0, 0, 1, 1], [], []>} : vector<9x8xbf16>, vector<8x32xbf16>, vector<9x32xf32> -> vector<9x32xf32>
    %221 = arith.addf %198, %220 : vector<9x32xf32>
    %c9 = arith.constant 9 : index
    %c0_65 = arith.constant 0 : index
    %222 = vector.load %arg22[%c9, %c0_65] : memref<18x32xf32, #tpu.memory_space<vmem>>, vector<9x32xf32>
    tpu.vector_store %arg22[%c9, %c0_65], %221 {strides = array<i32>} : memref<18x32xf32, #tpu.memory_space<vmem>>, vector<9x32xf32>,
    %c0_66 = arith.constant 0 : index
    %c0_67 = arith.constant 0 : index
    %223 = vector.load %arg22[%c0_66, %c0_67] : memref<18x32xf32, #tpu.memory_space<vmem>>, vector<18x32xf32>
    %224 = arith.addf %4, %223 : vector<18x32xf32>
    %c0_68 = arith.constant 0 : index
    %c0_69 = arith.constant 0 : index
    %c0_70 = arith.constant 0 : index
    %225 = vector.load %arg12[%c0_68, %c0_69, %c0_70] : memref<1x1x32xf32, #tpu.memory_space<vmem>>, vector<1x1x32xf32>
    %226 = vector.shape_cast %225 : vector<1x1x32xf32> to vector<1x32xf32>
    %227 = vector.broadcast %226 : vector<1x32xf32> to vector<18x32xf32>
    %228 = arith.addf %224, %227 : vector<18x32xf32>
    %c0_71 = arith.constant 0 : index
    %c0_72 = arith.constant 0 : index
    %c0_73 = arith.constant 0 : index
    %229 = vector.load %arg13[%c0_71, %c0_72, %c0_73] : memref<1x1x32xf32, #tpu.memory_space<vmem>>, vector<1x1x32xf32>
    %230 = vector.shape_cast %229 : vector<1x1x32xf32> to vector<1x32xf32>
    %c0_74 = arith.constant 0 : index
    %c0_75 = arith.constant 0 : index
    %c0_76 = arith.constant 0 : index
    %231 = vector.load %arg14[%c0_74, %c0_75, %c0_76] : memref<1x1x32xf32, #tpu.memory_space<vmem>>, vector<1x1x32xf32>
    %232 = vector.shape_cast %231 : vector<1x1x32xf32> to vector<1x32xf32>
    %cst_77 = arith.constant dense<0.000000e+00> : vector<18xf32>
    %233 = vector.multi_reduction <add>, %228, %cst_77 [1] : vector<18x32xf32> to vector<18xf32>
    %234 = vector.shape_cast %233 : vector<18xf32> to vector<18x1xf32>
    %cst_78 = arith.constant 3.125000e-02 : f32
    %235 = vector.broadcast %cst_78 : f32 to vector<18x1xf32>
    %236 = arith.mulf %234, %235 : vector<18x1xf32>
    %237 = vector.broadcast %236 : vector<18x1xf32> to vector<18x32xf32>
    %238 = arith.subf %228, %237 : vector<18x32xf32>
    %239 = arith.mulf %238, %238 : vector<18x32xf32>
    %cst_79 = arith.constant dense<0.000000e+00> : vector<18xf32>
    %240 = vector.multi_reduction <add>, %239, %cst_79 [1] : vector<18x32xf32> to vector<18xf32>
    %241 = vector.shape_cast %240 : vector<18xf32> to vector<18x1xf32>
    %cst_80 = arith.constant 3.125000e-02 : f32
    %242 = vector.broadcast %cst_80 : f32 to vector<18x1xf32>
    %243 = arith.mulf %241, %242 : vector<18x1xf32>
    %cst_81 = arith.constant 9.99999974E-6 : f32
    %244 = vector.broadcast %cst_81 : f32 to vector<18x1xf32>
    %245 = arith.addf %243, %244 : vector<18x1xf32>
    %246 = math.rsqrt %245 : vector<18x1xf32>
    %247 = vector.broadcast %246 : vector<18x1xf32> to vector<18x32xf32>
    %248 = arith.mulf %238, %247 : vector<18x32xf32>
    %249 = vector.broadcast %230 : vector<1x32xf32> to vector<18x32xf32>
    %250 = arith.mulf %248, %249 : vector<18x32xf32>
    %251 = vector.broadcast %232 : vector<1x32xf32> to vector<18x32xf32>
    %252 = arith.addf %250, %251 : vector<18x32xf32>
    %253 = arith.truncf %252 : vector<18x32xf32> to vector<18x32xbf16>
    %c0_82 = arith.constant 0 : index
    %c0_83 = arith.constant 0 : index
    %c0_84 = arith.constant 0 : index
    %254 = vector.load %arg15[%c0_82, %c0_83, %c0_84] : memref<1x32x64xbf16, #tpu.memory_space<vmem>>, vector<1x32x64xbf16>
    %255 = vector.shape_cast %254 : vector<1x32x64xbf16> to vector<32x64xbf16>
    %cst_85 = arith.constant dense<0.000000e+00> : vector<18x64xf32>
    %256 = tpu.matmul %253, %255, %cst_85 {dimension_numbers = #tpu.dot_dimension_numbers<[1], [0], [0], [1], [0, 0, 1, 1], [], []>} : vector<18x32xbf16>, vector<32x64xbf16>, vector<18x64xf32> -> vector<18x64xf32>
    %c0_86 = arith.constant 0 : index
    %c0_87 = arith.constant 0 : index
    %c0_88 = arith.constant 0 : index
    %257 = vector.load %arg16[%c0_86, %c0_87, %c0_88] : memref<1x1x64xf32, #tpu.memory_space<vmem>>, vector<1x1x64xf32>
    %258 = vector.shape_cast %257 : vector<1x1x64xf32> to vector<1x64xf32>
    %259 = vector.broadcast %258 : vector<1x64xf32> to vector<18x64xf32>
    %260 = arith.addf %256, %259 : vector<18x64xf32>
    %261 = arith.mulf %260, %260 : vector<18x64xf32>
    %262 = arith.mulf %260, %261 : vector<18x64xf32>
    %cst_89 = arith.constant 4.471500e-02 : f32
    %263 = vector.broadcast %cst_89 : f32 to vector<18x64xf32>
    %264 = arith.mulf %263, %262 : vector<18x64xf32>
    %265 = arith.addf %260, %264 : vector<18x64xf32>
    %cst_90 = arith.constant 0.797884583 : f32
    %266 = vector.broadcast %cst_90 : f32 to vector<18x64xf32>
    %267 = arith.mulf %266, %265 : vector<18x64xf32>
    %268 = math.tanh %267 : vector<18x64xf32>
    %cst_91 = arith.constant 1.000000e+00 : f32
    %269 = vector.broadcast %cst_91 : f32 to vector<18x64xf32>
    %270 = arith.addf %269, %268 : vector<18x64xf32>
    %cst_92 = arith.constant 5.000000e-01 : f32
    %271 = vector.broadcast %cst_92 : f32 to vector<18x64xf32>
    %272 = arith.mulf %271, %270 : vector<18x64xf32>
    %273 = arith.mulf %260, %272 : vector<18x64xf32>
    %274 = arith.truncf %273 : vector<18x64xf32> to vector<18x64xbf16>
    %c0_93 = arith.constant 0 : index
    %c0_94 = arith.constant 0 : index
    %c0_95 = arith.constant 0 : index
    %275 = vector.load %arg17[%c0_93, %c0_94, %c0_95] : memref<1x64x32xbf16, #tpu.memory_space<vmem>>, vector<1x64x32xbf16>
    %276 = vector.shape_cast %275 : vector<1x64x32xbf16> to vector<64x32xbf16>
    %cst_96 = arith.constant dense<0.000000e+00> : vector<18x32xf32>
    %277 = tpu.matmul %274, %276, %cst_96 {dimension_numbers = #tpu.dot_dimension_numbers<[1], [0], [0], [1], [0, 0, 1, 1], [], []>} : vector<18x64xbf16>, vector<64x32xbf16>, vector<18x32xf32> -> vector<18x32xf32>
    %c0_97 = arith.constant 0 : index
    %c0_98 = arith.constant 0 : index
    %c0_99 = arith.constant 0 : index
    %278 = vector.load %arg18[%c0_97, %c0_98, %c0_99] : memref<1x1x32xf32, #tpu.memory_space<vmem>>, vector<1x1x32xf32>
    %279 = vector.shape_cast %278 : vector<1x1x32xf32> to vector<1x32xf32>
    %280 = vector.broadcast %279 : vector<1x32xf32> to vector<18x32xf32>
    %281 = arith.addf %277, %280 : vector<18x32xf32>
    %282 = arith.addf %228, %281 : vector<18x32xf32>
    %c1_i32 = arith.constant 1 : i32
    %283 = arith.cmpi slt, %arg1, %c1_i32 : i32
    %284 = arith.extui %283 : i1 to i32
    %c0_i32_100 = arith.constant 0 : i32
    %285 = arith.cmpi ne, %284, %c0_i32_100 : i32
    scf.if %285 {
      %c0_103 = arith.constant 0 : index
      %c0_104 = arith.constant 0 : index
      %c0_105 = arith.constant 0 : index
      %289 = vector.load %arg21[%c0_103, %c0_104, %c0_105] : memref<1x18x32xf32, #tpu.memory_space<vmem>>, vector<1x18x32xf32>
      %290 = vector.shape_cast %289 : vector<1x18x32xf32> to vector<18x32xf32>
      %291 = vector.shape_cast %282 : vector<18x32xf32> to vector<1x18x32xf32>
      tpu.vector_store %arg21[%c0_103, %c0_104, %c0_105], %291 {strides = array<i32>} : memref<1x18x32xf32, #tpu.memory_space<vmem>>, vector<1x18x32xf32>,
    } else {
    }
    %c1_i32_101 = arith.constant 1 : i32
    %286 = arith.cmpi eq, %arg1, %c1_i32_101 : i32
    %287 = arith.extui %286 : i1 to i32
    %c0_i32_102 = arith.constant 0 : i32
    %288 = arith.cmpi ne, %287, %c0_i32_102 : i32
    scf.if %288 {
      %c0_103 = arith.constant 0 : index
      %c0_104 = arith.constant 0 : index
      %289 = vector.load %arg19[%c0_103, %c0_104] : memref<1x32xf32, #tpu.memory_space<vmem>>, vector<1x32xf32>
      %c0_105 = arith.constant 0 : index
      %c0_106 = arith.constant 0 : index
      %290 = vector.load %arg20[%c0_105, %c0_106] : memref<1x32xf32, #tpu.memory_space<vmem>>, vector<1x32xf32>
      %cst_107 = arith.constant dense<0.000000e+00> : vector<18xf32>
      %291 = vector.multi_reduction <add>, %282, %cst_107 [1] : vector<18x32xf32> to vector<18xf32>
      %292 = vector.shape_cast %291 : vector<18xf32> to vector<18x1xf32>
      %cst_108 = arith.constant 3.125000e-02 : f32
      %293 = vector.broadcast %cst_108 : f32 to vector<18x1xf32>
      %294 = arith.mulf %292, %293 : vector<18x1xf32>
      %295 = vector.broadcast %294 : vector<18x1xf32> to vector<18x32xf32>
      %296 = arith.subf %282, %295 : vector<18x32xf32>
      %297 = arith.mulf %296, %296 : vector<18x32xf32>
      %cst_109 = arith.constant dense<0.000000e+00> : vector<18xf32>
      %298 = vector.multi_reduction <add>, %297, %cst_109 [1] : vector<18x32xf32> to vector<18xf32>
      %299 = vector.shape_cast %298 : vector<18xf32> to vector<18x1xf32>
      %cst_110 = arith.constant 3.125000e-02 : f32
      %300 = vector.broadcast %cst_110 : f32 to vector<18x1xf32>
      %301 = arith.mulf %299, %300 : vector<18x1xf32>
      %cst_111 = arith.constant 9.99999974E-6 : f32
      %302 = vector.broadcast %cst_111 : f32 to vector<18x1xf32>
      %303 = arith.addf %301, %302 : vector<18x1xf32>
      %304 = math.rsqrt %303 : vector<18x1xf32>
      %305 = vector.broadcast %304 : vector<18x1xf32> to vector<18x32xf32>
      %306 = arith.mulf %296, %305 : vector<18x32xf32>
      %307 = vector.broadcast %289 : vector<1x32xf32> to vector<18x32xf32>
      %308 = arith.mulf %306, %307 : vector<18x32xf32>
      %309 = vector.broadcast %290 : vector<1x32xf32> to vector<18x32xf32>
      %310 = arith.addf %308, %309 : vector<18x32xf32>
      %c0_112 = arith.constant 0 : index
      %c0_113 = arith.constant 0 : index
      %c0_114 = arith.constant 0 : index
      %311 = vector.load %arg21[%c0_112, %c0_113, %c0_114] : memref<1x18x32xf32, #tpu.memory_space<vmem>>, vector<1x18x32xf32>
      %312 = vector.shape_cast %311 : vector<1x18x32xf32> to vector<18x32xf32>
      %313 = vector.shape_cast %310 : vector<18x32xf32> to vector<1x18x32xf32>
      tpu.vector_store %arg21[%c0_112, %c0_113, %c0_114], %313 {strides = array<i32>} : memref<1x18x32xf32, #tpu.memory_space<vmem>>, vector<1x18x32xf32>,
    } else {
    }
    return
  }
  func.func @transform_0(%arg0: i32, %arg1: i32) -> (i32, i32, i32) {
    %c0_i32 = arith.constant 0 : i32
    %c0_i32_0 = arith.constant 0 : i32
    %c0_i32_1 = arith.constant 0 : i32
    return %arg0, %c0_i32, %c0_i32_0 : i32, i32, i32
  }
  func.func @transform_1(%arg0: i32, %arg1: i32) -> (i32, i32) {
    %c0_i32 = arith.constant 0 : i32
    %c0_i32_0 = arith.constant 0 : i32
    %c0_i32_1 = arith.constant 0 : i32
    return %c0_i32, %c0_i32_0 : i32, i32
  }
  func.func @transform_2(%arg0: i32, %arg1: i32) -> (i32, i32) {
    %c0_i32 = arith.constant 0 : i32
    %c0_i32_0 = arith.constant 0 : i32
    %c0_i32_1 = arith.constant 0 : i32
    return %c0_i32, %c0_i32_0 : i32, i32
  }
  func.func @transform_3(%arg0: i32, %arg1: i32) -> (i32, i32) {
    %c0_i32 = arith.constant 0 : i32
    %c0_i32_0 = arith.constant 0 : i32
    %c0_i32_1 = arith.constant 0 : i32
    return %c0_i32, %c0_i32_0 : i32, i32
  }
  func.func @transform_4(%arg0: i32, %arg1: i32) -> (i32, i32) {
    %c0_i32 = arith.constant 0 : i32
    %c0_i32_0 = arith.constant 0 : i32
    %c0_i32_1 = arith.constant 0 : i32
    return %c0_i32, %c0_i32_0 : i32, i32
  }
  func.func @transform_5(%arg0: i32, %arg1: i32) -> (i32, i32, i32) {
    %c0_i32 = arith.constant 0 : i32
    %c0_i32_0 = arith.constant 0 : i32
    %c0_i32_1 = arith.constant 0 : i32
    return %arg1, %c0_i32, %c0_i32_0 : i32, i32, i32
  }
  func.func @transform_6(%arg0: i32, %arg1: i32) -> (i32, i32, i32) {
    %c0_i32 = arith.constant 0 : i32
    %c0_i32_0 = arith.constant 0 : i32
    %c0_i32_1 = arith.constant 0 : i32
    return %arg1, %c0_i32, %c0_i32_0 : i32, i32, i32
  }
  func.func @transform_7(%arg0: i32, %arg1: i32) -> (i32, i32, i32) {
    %c0_i32 = arith.constant 0 : i32
    %c0_i32_0 = arith.constant 0 : i32
    %c0_i32_1 = arith.constant 0 : i32
    return %arg1, %c0_i32, %c0_i32_0 : i32, i32, i32
  }
  func.func @transform_8(%arg0: i32, %arg1: i32) -> (i32, i32, i32) {
    %c0_i32 = arith.constant 0 : i32
    %c0_i32_0 = arith.constant 0 : i32
    %c0_i32_1 = arith.constant 0 : i32
    return %arg1, %c0_i32, %c0_i32_0 : i32, i32, i32
  }
  func.func @transform_9(%arg0: i32, %arg1: i32) -> (i32, i32, i32) {
    %c0_i32 = arith.constant 0 : i32
    %c0_i32_0 = arith.constant 0 : i32
    %c0_i32_1 = arith.constant 0 : i32
    return %arg1, %c0_i32, %c0_i32_0 : i32, i32, i32
  }
  func.func @transform_10(%arg0: i32, %arg1: i32) -> (i32, i32, i32) {
    %c0_i32 = arith.constant 0 : i32
    %c0_i32_0 = arith.constant 0 : i32
    %c0_i32_1 = arith.constant 0 : i32
    return %arg1, %c0_i32, %c0_i32_0 : i32, i32, i32
  }
  func.func @transform_11(%arg0: i32, %arg1: i32) -> (i32, i32, i32) {
    %c0_i32 = arith.constant 0 : i32
    %c0_i32_0 = arith.constant 0 : i32
    %c0_i32_1 = arith.constant 0 : i32
    return %arg1, %c0_i32, %c0_i32_0 : i32, i32, i32
  }
  func.func @transform_12(%arg0: i32, %arg1: i32) -> (i32, i32, i32) {
    %c0_i32 = arith.constant 0 : i32
    %c0_i32_0 = arith.constant 0 : i32
    %c0_i32_1 = arith.constant 0 : i32
    return %arg1, %c0_i32, %c0_i32_0 : i32, i32, i32
  }
  func.func @transform_13(%arg0: i32, %arg1: i32) -> (i32, i32, i32) {
    %c0_i32 = arith.constant 0 : i32
    %c0_i32_0 = arith.constant 0 : i32
    %c0_i32_1 = arith.constant 0 : i32
    return %arg1, %c0_i32, %c0_i32_0 : i32, i32, i32
  }
  func.func @transform_14(%arg0: i32, %arg1: i32) -> (i32, i32, i32) {
    %c0_i32 = arith.constant 0 : i32
    %c0_i32_0 = arith.constant 0 : i32
    %c0_i32_1 = arith.constant 0 : i32
    return %arg1, %c0_i32, %c0_i32_0 : i32, i32, i32
  }
  func.func @transform_15(%arg0: i32, %arg1: i32) -> (i32, i32, i32) {
    %c0_i32 = arith.constant 0 : i32
    %c0_i32_0 = arith.constant 0 : i32
    %c0_i32_1 = arith.constant 0 : i32
    return %arg1, %c0_i32, %c0_i32_0 : i32, i32, i32
  }
  func.func @transform_16(%arg0: i32, %arg1: i32) -> (i32, i32, i32) {
    %c0_i32 = arith.constant 0 : i32
    %c0_i32_0 = arith.constant 0 : i32
    %c0_i32_1 = arith.constant 0 : i32
    return %arg1, %c0_i32, %c0_i32_0 : i32, i32, i32
  }
  func.func @transform_17(%arg0: i32, %arg1: i32) -> (i32, i32) {
    %c0_i32 = arith.constant 0 : i32
    %c0_i32_0 = arith.constant 0 : i32
    %c0_i32_1 = arith.constant 0 : i32
    return %c0_i32, %c0_i32_0 : i32, i32
  }
  func.func @transform_18(%arg0: i32, %arg1: i32) -> (i32, i32) {
    %c0_i32 = arith.constant 0 : i32
    %c0_i32_0 = arith.constant 0 : i32
    %c0_i32_1 = arith.constant 0 : i32
    return %c0_i32, %c0_i32_0 : i32, i32
  }
  func.func @transform_19(%arg0: i32, %arg1: i32) -> (i32, i32, i32) {
    %c0_i32 = arith.constant 0 : i32
    %c0_i32_0 = arith.constant 0 : i32
    %c0_i32_1 = arith.constant 0 : i32
    return %arg0, %c0_i32, %c0_i32_0 : i32, i32, i32
  }
}

module attributes {stable_mosaic.version = 11 : i64} {
  func.func @_encoder_kernel(%arg0: i32, %arg1: i32, %arg2: memref<1x16x40xf32, #tpu.memory_space<vmem>>, %arg3: memref<40x32xbf16, #tpu.memory_space<vmem>>, %arg4: memref<1x32xf32, #tpu.memory_space<vmem>>, %arg5: memref<1x32xf32, #tpu.memory_space<vmem>>, %arg6: memref<9x32xf32, #tpu.memory_space<vmem>>, %arg7: memref<1x1x32xf32, #tpu.memory_space<vmem>>, %arg8: memref<1x1x32xf32, #tpu.memory_space<vmem>>, %arg9: memref<1x32x96xbf16, #tpu.memory_space<vmem>>, %arg10: memref<1x1x96xf32, #tpu.memory_space<vmem>>, %arg11: memref<1x32x32xbf16, #tpu.memory_space<vmem>>, %arg12: memref<1x1x32xf32, #tpu.memory_space<vmem>>, %arg13: memref<1x1x32xf32, #tpu.memory_space<vmem>>, %arg14: memref<1x1x32xf32, #tpu.memory_space<vmem>>, %arg15: memref<1x32x64xbf16, #tpu.memory_space<vmem>>, %arg16: memref<1x1x64xf32, #tpu.memory_space<vmem>>, %arg17: memref<1x64x32xbf16, #tpu.memory_space<vmem>>, %arg18: memref<1x1x32xf32, #tpu.memory_space<vmem>>, %arg19: memref<1x32xf32, #tpu.memory_space<vmem>>, %arg20: memref<1x32xf32, #tpu.memory_space<vmem>>, %arg21: memref<1x18x32xf32, #tpu.memory_space<vmem>>, %arg22: memref<18x32xf32, #tpu.memory_space<vmem>>) attributes {dimension_semantics = [#tpu.dimension_semantics<parallel>, #tpu.dimension_semantics<arbitrary>], iteration_bounds = array<i64: 1, 2>, scalar_prefetch = 0 : i64, scratch_operands = 1 : i64, tpu.core_type = #tpu.core_type<tc>, window_params = [{transform_indices = @transform_0, window_bounds = array<i64: 1, 16, 40>}, {pipeline_mode = #tpu.pipeline_mode<synchronous>, transform_indices = @transform_1, window_bounds = array<i64: 40, 32>}, {pipeline_mode = #tpu.pipeline_mode<synchronous>, transform_indices = @transform_2, window_bounds = array<i64: 1, 32>}, {pipeline_mode = #tpu.pipeline_mode<synchronous>, transform_indices = @transform_3, window_bounds = array<i64: 1, 32>}, {pipeline_mode = #tpu.pipeline_mode<synchronous>, transform_indices = @transform_4, window_bounds = array<i64: 9, 32>}, {transform_indices = @transform_5, window_bounds = array<i64: 1, 1, 32>}, {transform_indices = @transform_6, window_bounds = array<i64: 1, 1, 32>}, {transform_indices = @transform_7, window_bounds = array<i64: 1, 32, 96>}, {transform_indices = @transform_8, window_bounds = array<i64: 1, 1, 96>}, {transform_indices = @transform_9, window_bounds = array<i64: 1, 32, 32>}, {transform_indices = @transform_10, window_bounds = array<i64: 1, 1, 32>}, {transform_indices = @transform_11, window_bounds = array<i64: 1, 1, 32>}, {transform_indices = @transform_12, window_bounds = array<i64: 1, 1, 32>}, {transform_indices = @transform_13, window_bounds = array<i64: 1, 32, 64>}, {transform_indices = @transform_14, window_bounds = array<i64: 1, 1, 64>}, {transform_indices = @transform_15, window_bounds = array<i64: 1, 64, 32>}, {transform_indices = @transform_16, window_bounds = array<i64: 1, 1, 32>}, {pipeline_mode = #tpu.pipeline_mode<synchronous>, transform_indices = @transform_17, window_bounds = array<i64: 1, 32>}, {pipeline_mode = #tpu.pipeline_mode<synchronous>, transform_indices = @transform_18, window_bounds = array<i64: 1, 32>}, {transform_indices = @transform_19, window_bounds = array<i64: 1, 18, 32>}]} {
    %c0_i32 = arith.constant 0 : i32
    %0 = arith.cmpi eq, %arg1, %c0_i32 : i32
    %1 = arith.extui %0 : i1 to i32
    %c0_i32_0 = arith.constant 0 : i32
    %2 = arith.cmpi ne, %1, %c0_i32_0 : i32
    scf.if %2 {
      %c0_103 = arith.constant 0 : index
      %c0_104 = arith.constant 0 : index
      %c0_105 = arith.constant 0 : index
      %289 = vector.load %arg2[%c0_103, %c0_104, %c0_105] : memref<1x16x40xf32, #tpu.memory_space<vmem>>, vector<1x16x40xf32>
      %290 = vector.shape_cast %289 : vector<1x16x40xf32> to vector<16x40xf32>
      %291 = arith.truncf %290 : vector<16x40xf32> to vector<16x40xbf16>
      %c0_106 = arith.constant 0 : index
      %c0_107 = arith.constant 0 : index
      %292 = vector.load %arg3[%c0_106, %c0_107] : memref<40x32xbf16, #tpu.memory_space<vmem>>, vector<40x32xbf16>
      %cst_108 = arith.constant dense<0.000000e+00> : vector<16x32xf32>
      %293 = tpu.matmul %291, %292, %cst_108 {dimension_numbers = #tpu.dot_dimension_numbers<[1], [0], [0], [1], [0, 0, 1, 1], [], []>} : vector<16x40xbf16>, vector<40x32xbf16>, vector<16x32xf32> -> vector<16x32xf32>
      %c0_109 = arith.constant 0 : index
      %c0_110 = arith.constant 0 : index
      %294 = vector.load %arg4[%c0_109, %c0_110] : memref<1x32xf32, #tpu.memory_space<vmem>>, vector<1x32xf32>
      %295 = vector.broadcast %294 : vector<1x32xf32> to vector<16x32xf32>
      %296 = arith.addf %293, %295 : vector<16x32xf32>
      %c0_111 = arith.constant 0 : index
      %c0_112 = arith.constant 0 : index
      %297 = vector.load %arg5[%c0_111, %c0_112] : memref<1x32xf32, #tpu.memory_space<vmem>>, vector<1x32xf32>
      %c0_113 = arith.constant 0 : index
      %c0_114 = arith.constant 0 : index
      %298 = vector.load %arg6[%c0_113, %c0_114] : memref<9x32xf32, #tpu.memory_space<vmem>>, vector<1x32xf32>
      %299 = arith.addf %297, %298 : vector<1x32xf32>
      %c1 = arith.constant 1 : index
      %c0_115 = arith.constant 0 : index
      %300 = vector.load %arg6[%c1, %c0_115] : memref<9x32xf32, #tpu.memory_space<vmem>>, vector<8x32xf32>
      %c0_116 = arith.constant 0 : index
      %c0_117 = arith.constant 0 : index
      %c0_118 = arith.constant 0 : index
      %301 = vector.load %arg21[%c0_116, %c0_117, %c0_118] : memref<1x18x32xf32, #tpu.memory_space<vmem>>, vector<1x1x32xf32>
      %302 = vector.shape_cast %301 : vector<1x1x32xf32> to vector<1x32xf32>
      %303 = vector.shape_cast %299 : vector<1x32xf32> to vector<1x1x32xf32>
      tpu.vector_store %arg21[%c0_116, %c0_117, %c0_118], %303 {strides = array<i32>} : memref<1x18x32xf32, #tpu.memory_space<vmem>>, vector<1x1x32xf32>,
      %304 = vector.extract_strided_slice %296 {offsets = [0, 0], sizes = [8, 32], strides = [1, 1]} : vector<16x32xf32> to vector<8x32xf32>
      %305 = arith.addf %304, %300 : vector<8x32xf32>
      %c0_119 = arith.constant 0 : index
      %c1_120 = arith.constant 1 : index
      %c0_121 = arith.constant 0 : index
      %306 = vector.load %arg21[%c0_119, %c1_120, %c0_121] : memref<1x18x32xf32, #tpu.memory_space<vmem>>, vector<1x8x32xf32>
      %307 = vector.shape_cast %306 : vector<1x8x32xf32> to vector<8x32xf32>
      %308 = vector.shape_cast %305 : vector<8x32xf32> to vector<1x8x32xf32>
      tpu.vector_store %arg21[%c0_119, %c1_120, %c0_121], %308 {strides = array<i32>} : memref<1x18x32xf32, #tpu.memory_space<vmem>>, vector<1x8x32xf32>,
      %c0_122 = arith.constant 0 : index
      %c9_123 = arith.constant 9 : index
      %c0_124 = arith.constant 0 : index
      %309 = vector.load %arg21[%c0_122, %c9_123, %c0_124] : memref<1x18x32xf32, #tpu.memory_space<vmem>>, vector<1x1x32xf32>
      %310 = vector.shape_cast %309 : vector<1x1x32xf32> to vector<1x32xf32>
      %311 = vector.shape_cast %299 : vector<1x32xf32> to vector<1x1x32xf32>
      tpu.vector_store %arg21[%c0_122, %c9_123, %c0_124], %311 {strides = array<i32>} : memref<1x18x32xf32, #tpu.memory_space<vmem>>, vector<1x1x32xf32>,
      %312 = vector.extract_strided_slice %296 {offsets = [8, 0], sizes = [8, 32], strides = [1, 1]} : vector<16x32xf32> to vector<8x32xf32>
      %313 = arith.addf %312, %300 : vector<8x32xf32>
      %c0_125 = arith.constant 0 : index
      %c10 = arith.constant 10 : index
      %c0_126 = arith.constant 0 : index
      %314 = vector.load %arg21[%c0_125, %c10, %c0_126] : memref<1x18x32xf32, #tpu.memory_space<vmem>>, vector<1x8x32xf32>
      %315 = vector.shape_cast %314 : vector<1x8x32xf32> to vector<8x32xf32>
      %316 = vector.shape_cast %313 : vector<8x32xf32> to vector<1x8x32xf32>
      tpu.vector_store %arg21[%c0_125, %c10, %c0_126], %316 {strides = array<i32>} : memref<1x18x32xf32, #tpu.memory_space<vmem>>, vector<1x8x32xf32>,
    } else {
    }
    %c0 = arith.constant 0 : index
    %c0_1 = arith.constant 0 : index
    %c0_2 = arith.constant 0 : index
    %3 = vector.load %arg21[%c0, %c0_1, %c0_2] : memref<1x18x32xf32, #tpu.memory_space<vmem>>, vector<1x18x32xf32>
    %4 = vector.shape_cast %3 : vector<1x18x32xf32> to vector<18x32xf32>
    %c0_3 = arith.constant 0 : index
    %c0_4 = arith.constant 0 : index
    %c0_5 = arith.constant 0 : index
    %5 = vector.load %arg7[%c0_3, %c0_4, %c0_5] : memref<1x1x32xf32, #tpu.memory_space<vmem>>, vector<1x1x32xf32>
    %6 = vector.shape_cast %5 : vector<1x1x32xf32> to vector<1x32xf32>
    %c0_6 = arith.constant 0 : index
    %c0_7 = arith.constant 0 : index
    %c0_8 = arith.constant 0 : index
    %7 = vector.load %arg8[%c0_6, %c0_7, %c0_8] : memref<1x1x32xf32, #tpu.memory_space<vmem>>, vector<1x1x32xf32>
    %8 = vector.shape_cast %7 : vector<1x1x32xf32> to vector<1x32xf32>
    %cst = arith.constant dense<0.000000e+00> : vector<18xf32>
    %9 = vector.multi_reduction <add>, %4, %cst [1] : vector<18x32xf32> to vector<18xf32>
    %10 = vector.shape_cast %9 : vector<18xf32> to vector<18x1xf32>
    %cst_9 = arith.constant 3.125000e-02 : f32
    %11 = vector.broadcast %cst_9 : f32 to vector<18x1xf32>
    %12 = arith.mulf %10, %11 : vector<18x1xf32>
    %13 = vector.broadcast %12 : vector<18x1xf32> to vector<18x32xf32>
    %14 = arith.subf %4, %13 : vector<18x32xf32>
    %15 = arith.mulf %14, %14 : vector<18x32xf32>
    %cst_10 = arith.constant dense<0.000000e+00> : vector<18xf32>
    %16 = vector.multi_reduction <add>, %15, %cst_10 [1] : vector<18x32xf32> to vector<18xf32>
    %17 = vector.shape_cast %16 : vector<18xf32> to vector<18x1xf32>
    %cst_11 = arith.constant 3.125000e-02 : f32
    %18 = vector.broadcast %cst_11 : f32 to vector<18x1xf32>
    %19 = arith.mulf %17, %18 : vector<18x1xf32>
    %cst_12 = arith.constant 9.99999974E-6 : f32
    %20 = vector.broadcast %cst_12 : f32 to vector<18x1xf32>
    %21 = arith.addf %19, %20 : vector<18x1xf32>
    %22 = math.rsqrt %21 : vector<18x1xf32>
    %23 = vector.broadcast %22 : vector<18x1xf32> to vector<18x32xf32>
    %24 = arith.mulf %14, %23 : vector<18x32xf32>
    %25 = vector.broadcast %6 : vector<1x32xf32> to vector<18x32xf32>
    %26 = arith.mulf %24, %25 : vector<18x32xf32>
    %27 = vector.broadcast %8 : vector<1x32xf32> to vector<18x32xf32>
    %28 = arith.addf %26, %27 : vector<18x32xf32>
    %29 = arith.truncf %28 : vector<18x32xf32> to vector<18x32xbf16>
    %c0_13 = arith.constant 0 : index
    %c0_14 = arith.constant 0 : index
    %c0_15 = arith.constant 0 : index
    %30 = vector.load %arg9[%c0_13, %c0_14, %c0_15] : memref<1x32x96xbf16, #tpu.memory_space<vmem>>, vector<1x32x96xbf16>
    %31 = vector.shape_cast %30 : vector<1x32x96xbf16> to vector<32x96xbf16>
    %cst_16 = arith.constant dense<0.000000e+00> : vector<18x96xf32>
    %32 = tpu.matmul %29, %31, %cst_16 {dimension_numbers = #tpu.dot_dimension_numbers<[1], [0], [0], [1], [0, 0, 1, 1], [], []>} : vector<18x32xbf16>, vector<32x96xbf16>, vector<18x96xf32> -> vector<18x96xf32>
    %c0_17 = arith.constant 0 : index
    %c0_18 = arith.constant 0 : index
    %c0_19 = arith.constant 0 : index
    %33 = vector.load %arg10[%c0_17, %c0_18, %c0_19] : memref<1x1x96xf32, #tpu.memory_space<vmem>>, vector<1x1x96xf32>
    %34 = vector.shape_cast %33 : vector<1x1x96xf32> to vector<1x96xf32>
    %35 = vector.broadcast %34 : vector<1x96xf32> to vector<18x96xf32>
    %36 = arith.addf %32, %35 : vector<18x96xf32>
    %c0_20 = arith.constant 0 : index
    %c0_21 = arith.constant 0 : index
    %c0_22 = arith.constant 0 : index
    %37 = vector.load %arg11[%c0_20, %c0_21, %c0_22] : memref<1x32x32xbf16, #tpu.memory_space<vmem>>, vector<1x32x32xbf16>
    %38 = vector.shape_cast %37 : vector<1x32x32xbf16> to vector<32x32xbf16>
    %39 = vector.extract_strided_slice %36 {offsets = [0, 0], sizes = [9, 8], strides = [1, 1]} : vector<18x96xf32> to vector<9x8xf32>
    %40 = arith.truncf %39 : vector<9x8xf32> to vector<9x8xbf16>
    %41 = vector.extract_strided_slice %36 {offsets = [0, 32], sizes = [9, 8], strides = [1, 1]} : vector<18x96xf32> to vector<9x8xf32>
    %42 = arith.truncf %41 : vector<9x8xf32> to vector<9x8xbf16>
    %43 = vector.extract_strided_slice %36 {offsets = [0, 64], sizes = [9, 8], strides = [1, 1]} : vector<18x96xf32> to vector<9x8xf32>
    %44 = arith.truncf %43 : vector<9x8xf32> to vector<9x8xbf16>
    %cst_23 = arith.constant dense<0.000000e+00> : vector<9x9xf32>
    %45 = tpu.matmul %40, %42, %cst_23 {dimension_numbers = #tpu.dot_dimension_numbers<[1], [1], [0], [0], [0, 0, 1, 0], [], []>} : vector<9x8xbf16>, vector<9x8xbf16>, vector<9x9xf32> -> vector<9x9xf32>
    %cst_24 = arith.constant dense<0xFF800000> : vector<9xf32>
    %46 = vector.multi_reduction <maximumf>, %45, %cst_24 [1] : vector<9x9xf32> to vector<9xf32>
    %47 = vector.shape_cast %46 : vector<9xf32> to vector<9x1xf32>
    %48 = vector.broadcast %47 : vector<9x1xf32> to vector<9x9xf32>
    %49 = arith.subf %45, %48 : vector<9x9xf32>
    %50 = math.exp %49 : vector<9x9xf32>
    %cst_25 = arith.constant dense<0.000000e+00> : vector<9xf32>
    %51 = vector.multi_reduction <add>, %50, %cst_25 [1] : vector<9x9xf32> to vector<9xf32>
    %52 = vector.shape_cast %51 : vector<9xf32> to vector<9x1xf32>
    %53 = tpu.reciprocal %52 {approx = true} : vector<9x1xf32> -> vector<9x1xf32>
    %54 = vector.broadcast %53 : vector<9x1xf32> to vector<9x9xf32>
    %55 = arith.mulf %50, %54 : vector<9x9xf32>
    %56 = arith.truncf %55 : vector<9x9xf32> to vector<9x9xbf16>
    %cst_26 = arith.constant dense<0.000000e+00> : vector<9x8xf32>
    %57 = tpu.matmul %56, %44, %cst_26 {dimension_numbers = #tpu.dot_dimension_numbers<[1], [0], [0], [1], [0, 0, 1, 1], [], []>} : vector<9x9xbf16>, vector<9x8xbf16>, vector<9x8xf32> -> vector<9x8xf32>
    %58 = arith.truncf %57 : vector<9x8xf32> to vector<9x8xbf16>
    %59 = vector.extract_strided_slice %38 {offsets = [0, 0], sizes = [8, 32], strides = [1, 1]} : vector<32x32xbf16> to vector<8x32xbf16>
    %cst_27 = arith.constant dense<0.000000e+00> : vector<9x32xf32>
    %60 = tpu.matmul %58, %59, %cst_27 {dimension_numbers = #tpu.dot_dimension_numbers<[1], [0], [0], [1], [0, 0, 1, 1], [], []>} : vector<9x8xbf16>, vector<8x32xbf16>, vector<9x32xf32> -> vector<9x32xf32>
    %61 = vector.extract_strided_slice %36 {offsets = [0, 8], sizes = [9, 8], strides = [1, 1]} : vector<18x96xf32> to vector<9x8xf32>
    %62 = arith.truncf %61 : vector<9x8xf32> to vector<9x8xbf16>
    %63 = vector.extract_strided_slice %36 {offsets = [0, 40], sizes = [9, 8], strides = [1, 1]} : vector<18x96xf32> to vector<9x8xf32>
    %64 = arith.truncf %63 : vector<9x8xf32> to vector<9x8xbf16>
    %65 = vector.extract_strided_slice %36 {offsets = [0, 72], sizes = [9, 8], strides = [1, 1]} : vector<18x96xf32> to vector<9x8xf32>
    %66 = arith.truncf %65 : vector<9x8xf32> to vector<9x8xbf16>
    %cst_28 = arith.constant dense<0.000000e+00> : vector<9x9xf32>
    %67 = tpu.matmul %62, %64, %cst_28 {dimension_numbers = #tpu.dot_dimension_numbers<[1], [1], [0], [0], [0, 0, 1, 0], [], []>} : vector<9x8xbf16>, vector<9x8xbf16>, vector<9x9xf32> -> vector<9x9xf32>
    %cst_29 = arith.constant dense<0xFF800000> : vector<9xf32>
    %68 = vector.multi_reduction <maximumf>, %67, %cst_29 [1] : vector<9x9xf32> to vector<9xf32>
    %69 = vector.shape_cast %68 : vector<9xf32> to vector<9x1xf32>
    %70 = vector.broadcast %69 : vector<9x1xf32> to vector<9x9xf32>
    %71 = arith.subf %67, %70 : vector<9x9xf32>
    %72 = math.exp %71 : vector<9x9xf32>
    %cst_30 = arith.constant dense<0.000000e+00> : vector<9xf32>
    %73 = vector.multi_reduction <add>, %72, %cst_30 [1] : vector<9x9xf32> to vector<9xf32>
    %74 = vector.shape_cast %73 : vector<9xf32> to vector<9x1xf32>
    %75 = tpu.reciprocal %74 {approx = true} : vector<9x1xf32> -> vector<9x1xf32>
    %76 = vector.broadcast %75 : vector<9x1xf32> to vector<9x9xf32>
    %77 = arith.mulf %72, %76 : vector<9x9xf32>
    %78 = arith.truncf %77 : vector<9x9xf32> to vector<9x9xbf16>
    %cst_31 = arith.constant dense<0.000000e+00> : vector<9x8xf32>
    %79 = tpu.matmul %78, %66, %cst_31 {dimension_numbers = #tpu.dot_dimension_numbers<[1], [0], [0], [1], [0, 0, 1, 1], [], []>} : vector<9x9xbf16>, vector<9x8xbf16>, vector<9x8xf32> -> vector<9x8xf32>
    %80 = arith.truncf %79 : vector<9x8xf32> to vector<9x8xbf16>
    %81 = vector.extract_strided_slice %38 {offsets = [8, 0], sizes = [8, 32], strides = [1, 1]} : vector<32x32xbf16> to vector<8x32xbf16>
    %cst_32 = arith.constant dense<0.000000e+00> : vector<9x32xf32>
    %82 = tpu.matmul %80, %81, %cst_32 {dimension_numbers = #tpu.dot_dimension_numbers<[1], [0], [0], [1], [0, 0, 1, 1], [], []>} : vector<9x8xbf16>, vector<8x32xbf16>, vector<9x32xf32> -> vector<9x32xf32>
    %83 = arith.addf %60, %82 : vector<9x32xf32>
    %84 = vector.extract_strided_slice %36 {offsets = [0, 16], sizes = [9, 8], strides = [1, 1]} : vector<18x96xf32> to vector<9x8xf32>
    %85 = arith.truncf %84 : vector<9x8xf32> to vector<9x8xbf16>
    %86 = vector.extract_strided_slice %36 {offsets = [0, 48], sizes = [9, 8], strides = [1, 1]} : vector<18x96xf32> to vector<9x8xf32>
    %87 = arith.truncf %86 : vector<9x8xf32> to vector<9x8xbf16>
    %88 = vector.extract_strided_slice %36 {offsets = [0, 80], sizes = [9, 8], strides = [1, 1]} : vector<18x96xf32> to vector<9x8xf32>
    %89 = arith.truncf %88 : vector<9x8xf32> to vector<9x8xbf16>
    %cst_33 = arith.constant dense<0.000000e+00> : vector<9x9xf32>
    %90 = tpu.matmul %85, %87, %cst_33 {dimension_numbers = #tpu.dot_dimension_numbers<[1], [1], [0], [0], [0, 0, 1, 0], [], []>} : vector<9x8xbf16>, vector<9x8xbf16>, vector<9x9xf32> -> vector<9x9xf32>
    %cst_34 = arith.constant dense<0xFF800000> : vector<9xf32>
    %91 = vector.multi_reduction <maximumf>, %90, %cst_34 [1] : vector<9x9xf32> to vector<9xf32>
    %92 = vector.shape_cast %91 : vector<9xf32> to vector<9x1xf32>
    %93 = vector.broadcast %92 : vector<9x1xf32> to vector<9x9xf32>
    %94 = arith.subf %90, %93 : vector<9x9xf32>
    %95 = math.exp %94 : vector<9x9xf32>
    %cst_35 = arith.constant dense<0.000000e+00> : vector<9xf32>
    %96 = vector.multi_reduction <add>, %95, %cst_35 [1] : vector<9x9xf32> to vector<9xf32>
    %97 = vector.shape_cast %96 : vector<9xf32> to vector<9x1xf32>
    %98 = tpu.reciprocal %97 {approx = true} : vector<9x1xf32> -> vector<9x1xf32>
    %99 = vector.broadcast %98 : vector<9x1xf32> to vector<9x9xf32>
    %100 = arith.mulf %95, %99 : vector<9x9xf32>
    %101 = arith.truncf %100 : vector<9x9xf32> to vector<9x9xbf16>
    %cst_36 = arith.constant dense<0.000000e+00> : vector<9x8xf32>
    %102 = tpu.matmul %101, %89, %cst_36 {dimension_numbers = #tpu.dot_dimension_numbers<[1], [0], [0], [1], [0, 0, 1, 1], [], []>} : vector<9x9xbf16>, vector<9x8xbf16>, vector<9x8xf32> -> vector<9x8xf32>
    %103 = arith.truncf %102 : vector<9x8xf32> to vector<9x8xbf16>
    %104 = vector.extract_strided_slice %38 {offsets = [16, 0], sizes = [8, 32], strides = [1, 1]} : vector<32x32xbf16> to vector<8x32xbf16>
    %cst_37 = arith.constant dense<0.000000e+00> : vector<9x32xf32>
    %105 = tpu.matmul %103, %104, %cst_37 {dimension_numbers = #tpu.dot_dimension_numbers<[1], [0], [0], [1], [0, 0, 1, 1], [], []>} : vector<9x8xbf16>, vector<8x32xbf16>, vector<9x32xf32> -> vector<9x32xf32>
    %106 = arith.addf %83, %105 : vector<9x32xf32>
    %107 = vector.extract_strided_slice %36 {offsets = [0, 24], sizes = [9, 8], strides = [1, 1]} : vector<18x96xf32> to vector<9x8xf32>
    %108 = arith.truncf %107 : vector<9x8xf32> to vector<9x8xbf16>
    %109 = vector.extract_strided_slice %36 {offsets = [0, 56], sizes = [9, 8], strides = [1, 1]} : vector<18x96xf32> to vector<9x8xf32>
    %110 = arith.truncf %109 : vector<9x8xf32> to vector<9x8xbf16>
    %111 = vector.extract_strided_slice %36 {offsets = [0, 88], sizes = [9, 8], strides = [1, 1]} : vector<18x96xf32> to vector<9x8xf32>
    %112 = arith.truncf %111 : vector<9x8xf32> to vector<9x8xbf16>
    %cst_38 = arith.constant dense<0.000000e+00> : vector<9x9xf32>
    %113 = tpu.matmul %108, %110, %cst_38 {dimension_numbers = #tpu.dot_dimension_numbers<[1], [1], [0], [0], [0, 0, 1, 0], [], []>} : vector<9x8xbf16>, vector<9x8xbf16>, vector<9x9xf32> -> vector<9x9xf32>
    %cst_39 = arith.constant dense<0xFF800000> : vector<9xf32>
    %114 = vector.multi_reduction <maximumf>, %113, %cst_39 [1] : vector<9x9xf32> to vector<9xf32>
    %115 = vector.shape_cast %114 : vector<9xf32> to vector<9x1xf32>
    %116 = vector.broadcast %115 : vector<9x1xf32> to vector<9x9xf32>
    %117 = arith.subf %113, %116 : vector<9x9xf32>
    %118 = math.exp %117 : vector<9x9xf32>
    %cst_40 = arith.constant dense<0.000000e+00> : vector<9xf32>
    %119 = vector.multi_reduction <add>, %118, %cst_40 [1] : vector<9x9xf32> to vector<9xf32>
    %120 = vector.shape_cast %119 : vector<9xf32> to vector<9x1xf32>
    %121 = tpu.reciprocal %120 {approx = true} : vector<9x1xf32> -> vector<9x1xf32>
    %122 = vector.broadcast %121 : vector<9x1xf32> to vector<9x9xf32>
    %123 = arith.mulf %118, %122 : vector<9x9xf32>
    %124 = arith.truncf %123 : vector<9x9xf32> to vector<9x9xbf16>
    %cst_41 = arith.constant dense<0.000000e+00> : vector<9x8xf32>
    %125 = tpu.matmul %124, %112, %cst_41 {dimension_numbers = #tpu.dot_dimension_numbers<[1], [0], [0], [1], [0, 0, 1, 1], [], []>} : vector<9x9xbf16>, vector<9x8xbf16>, vector<9x8xf32> -> vector<9x8xf32>
    %126 = arith.truncf %125 : vector<9x8xf32> to vector<9x8xbf16>
    %127 = vector.extract_strided_slice %38 {offsets = [24, 0], sizes = [8, 32], strides = [1, 1]} : vector<32x32xbf16> to vector<8x32xbf16>
    %cst_42 = arith.constant dense<0.000000e+00> : vector<9x32xf32>
    %128 = tpu.matmul %126, %127, %cst_42 {dimension_numbers = #tpu.dot_dimension_numbers<[1], [0], [0], [1], [0, 0, 1, 1], [], []>} : vector<9x8xbf16>, vector<8x32xbf16>, vector<9x32xf32> -> vector<9x32xf32>
    %129 = arith.addf %106, %128 : vector<9x32xf32>
    %c0_43 = arith.constant 0 : index
    %c0_44 = arith.constant 0 : index
    %130 = vector.load %arg22[%c0_43, %c0_44] : memref<18x32xf32, #tpu.memory_space<vmem>>, vector<9x32xf32>
    tpu.vector_store %arg22[%c0_43, %c0_44], %129 {strides = array<i32>} : memref<18x32xf32, #tpu.memory_space<vmem>>, vector<9x32xf32>,
    %131 = vector.extract_strided_slice %36 {offsets = [9, 0], sizes = [9, 8], strides = [1, 1]} : vector<18x96xf32> to vector<9x8xf32>
    %132 = arith.truncf %131 : vector<9x8xf32> to vector<9x8xbf16>
    %133 = vector.extract_strided_slice %36 {offsets = [9, 32], sizes = [9, 8], strides = [1, 1]} : vector<18x96xf32> to vector<9x8xf32>
    %134 = arith.truncf %133 : vector<9x8xf32> to vector<9x8xbf16>
    %135 = vector.extract_strided_slice %36 {offsets = [9, 64], sizes = [9, 8], strides = [1, 1]} : vector<18x96xf32> to vector<9x8xf32>
    %136 = arith.truncf %135 : vector<9x8xf32> to vector<9x8xbf16>
    %cst_45 = arith.constant dense<0.000000e+00> : vector<9x9xf32>
    %137 = tpu.matmul %132, %134, %cst_45 {dimension_numbers = #tpu.dot_dimension_numbers<[1], [1], [0], [0], [0, 0, 1, 0], [], []>} : vector<9x8xbf16>, vector<9x8xbf16>, vector<9x9xf32> -> vector<9x9xf32>
    %cst_46 = arith.constant dense<0xFF800000> : vector<9xf32>
    %138 = vector.multi_reduction <maximumf>, %137, %cst_46 [1] : vector<9x9xf32> to vector<9xf32>
    %139 = vector.shape_cast %138 : vector<9xf32> to vector<9x1xf32>
    %140 = vector.broadcast %139 : vector<9x1xf32> to vector<9x9xf32>
    %141 = arith.subf %137, %140 : vector<9x9xf32>
    %142 = math.exp %141 : vector<9x9xf32>
    %cst_47 = arith.constant dense<0.000000e+00> : vector<9xf32>
    %143 = vector.multi_reduction <add>, %142, %cst_47 [1] : vector<9x9xf32> to vector<9xf32>
    %144 = vector.shape_cast %143 : vector<9xf32> to vector<9x1xf32>
    %145 = tpu.reciprocal %144 {approx = true} : vector<9x1xf32> -> vector<9x1xf32>
    %146 = vector.broadcast %145 : vector<9x1xf32> to vector<9x9xf32>
    %147 = arith.mulf %142, %146 : vector<9x9xf32>
    %148 = arith.truncf %147 : vector<9x9xf32> to vector<9x9xbf16>
    %cst_48 = arith.constant dense<0.000000e+00> : vector<9x8xf32>
    %149 = tpu.matmul %148, %136, %cst_48 {dimension_numbers = #tpu.dot_dimension_numbers<[1], [0], [0], [1], [0, 0, 1, 1], [], []>} : vector<9x9xbf16>, vector<9x8xbf16>, vector<9x8xf32> -> vector<9x8xf32>
    %150 = arith.truncf %149 : vector<9x8xf32> to vector<9x8xbf16>
    %151 = vector.extract_strided_slice %38 {offsets = [0, 0], sizes = [8, 32], strides = [1, 1]} : vector<32x32xbf16> to vector<8x32xbf16>
    %cst_49 = arith.constant dense<0.000000e+00> : vector<9x32xf32>
    %152 = tpu.matmul %150, %151, %cst_49 {dimension_numbers = #tpu.dot_dimension_numbers<[1], [0], [0], [1], [0, 0, 1, 1], [], []>} : vector<9x8xbf16>, vector<8x32xbf16>, vector<9x32xf32> -> vector<9x32xf32>
    %153 = vector.extract_strided_slice %36 {offsets = [9, 8], sizes = [9, 8], strides = [1, 1]} : vector<18x96xf32> to vector<9x8xf32>
    %154 = arith.truncf %153 : vector<9x8xf32> to vector<9x8xbf16>
    %155 = vector.extract_strided_slice %36 {offsets = [9, 40], sizes = [9, 8], strides = [1, 1]} : vector<18x96xf32> to vector<9x8xf32>
    %156 = arith.truncf %155 : vector<9x8xf32> to vector<9x8xbf16>
    %157 = vector.extract_strided_slice %36 {offsets = [9, 72], sizes = [9, 8], strides = [1, 1]} : vector<18x96xf32> to vector<9x8xf32>
    %158 = arith.truncf %157 : vector<9x8xf32> to vector<9x8xbf16>
    %cst_50 = arith.constant dense<0.000000e+00> : vector<9x9xf32>
    %159 = tpu.matmul %154, %156, %cst_50 {dimension_numbers = #tpu.dot_dimension_numbers<[1], [1], [0], [0], [0, 0, 1, 0], [], []>} : vector<9x8xbf16>, vector<9x8xbf16>, vector<9x9xf32> -> vector<9x9xf32>
    %cst_51 = arith.constant dense<0xFF800000> : vector<9xf32>
    %160 = vector.multi_reduction <maximumf>, %159, %cst_51 [1] : vector<9x9xf32> to vector<9xf32>
    %161 = vector.shape_cast %160 : vector<9xf32> to vector<9x1xf32>
    %162 = vector.broadcast %161 : vector<9x1xf32> to vector<9x9xf32>
    %163 = arith.subf %159, %162 : vector<9x9xf32>
    %164 = math.exp %163 : vector<9x9xf32>
    %cst_52 = arith.constant dense<0.000000e+00> : vector<9xf32>
    %165 = vector.multi_reduction <add>, %164, %cst_52 [1] : vector<9x9xf32> to vector<9xf32>
    %166 = vector.shape_cast %165 : vector<9xf32> to vector<9x1xf32>
    %167 = tpu.reciprocal %166 {approx = true} : vector<9x1xf32> -> vector<9x1xf32>
    %168 = vector.broadcast %167 : vector<9x1xf32> to vector<9x9xf32>
    %169 = arith.mulf %164, %168 : vector<9x9xf32>
    %170 = arith.truncf %169 : vector<9x9xf32> to vector<9x9xbf16>
    %cst_53 = arith.constant dense<0.000000e+00> : vector<9x8xf32>
    %171 = tpu.matmul %170, %158, %cst_53 {dimension_numbers = #tpu.dot_dimension_numbers<[1], [0], [0], [1], [0, 0, 1, 1], [], []>} : vector<9x9xbf16>, vector<9x8xbf16>, vector<9x8xf32> -> vector<9x8xf32>
    %172 = arith.truncf %171 : vector<9x8xf32> to vector<9x8xbf16>
    %173 = vector.extract_strided_slice %38 {offsets = [8, 0], sizes = [8, 32], strides = [1, 1]} : vector<32x32xbf16> to vector<8x32xbf16>
    %cst_54 = arith.constant dense<0.000000e+00> : vector<9x32xf32>
    %174 = tpu.matmul %172, %173, %cst_54 {dimension_numbers = #tpu.dot_dimension_numbers<[1], [0], [0], [1], [0, 0, 1, 1], [], []>} : vector<9x8xbf16>, vector<8x32xbf16>, vector<9x32xf32> -> vector<9x32xf32>
    %175 = arith.addf %152, %174 : vector<9x32xf32>
    %176 = vector.extract_strided_slice %36 {offsets = [9, 16], sizes = [9, 8], strides = [1, 1]} : vector<18x96xf32> to vector<9x8xf32>
    %177 = arith.truncf %176 : vector<9x8xf32> to vector<9x8xbf16>
    %178 = vector.extract_strided_slice %36 {offsets = [9, 48], sizes = [9, 8], strides = [1, 1]} : vector<18x96xf32> to vector<9x8xf32>
    %179 = arith.truncf %178 : vector<9x8xf32> to vector<9x8xbf16>
    %180 = vector.extract_strided_slice %36 {offsets = [9, 80], sizes = [9, 8], strides = [1, 1]} : vector<18x96xf32> to vector<9x8xf32>
    %181 = arith.truncf %180 : vector<9x8xf32> to vector<9x8xbf16>
    %cst_55 = arith.constant dense<0.000000e+00> : vector<9x9xf32>
    %182 = tpu.matmul %177, %179, %cst_55 {dimension_numbers = #tpu.dot_dimension_numbers<[1], [1], [0], [0], [0, 0, 1, 0], [], []>} : vector<9x8xbf16>, vector<9x8xbf16>, vector<9x9xf32> -> vector<9x9xf32>
    %cst_56 = arith.constant dense<0xFF800000> : vector<9xf32>
    %183 = vector.multi_reduction <maximumf>, %182, %cst_56 [1] : vector<9x9xf32> to vector<9xf32>
    %184 = vector.shape_cast %183 : vector<9xf32> to vector<9x1xf32>
    %185 = vector.broadcast %184 : vector<9x1xf32> to vector<9x9xf32>
    %186 = arith.subf %182, %185 : vector<9x9xf32>
    %187 = math.exp %186 : vector<9x9xf32>
    %cst_57 = arith.constant dense<0.000000e+00> : vector<9xf32>
    %188 = vector.multi_reduction <add>, %187, %cst_57 [1] : vector<9x9xf32> to vector<9xf32>
    %189 = vector.shape_cast %188 : vector<9xf32> to vector<9x1xf32>
    %190 = tpu.reciprocal %189 {approx = true} : vector<9x1xf32> -> vector<9x1xf32>
    %191 = vector.broadcast %190 : vector<9x1xf32> to vector<9x9xf32>
    %192 = arith.mulf %187, %191 : vector<9x9xf32>
    %193 = arith.truncf %192 : vector<9x9xf32> to vector<9x9xbf16>
    %cst_58 = arith.constant dense<0.000000e+00> : vector<9x8xf32>
    %194 = tpu.matmul %193, %181, %cst_58 {dimension_numbers = #tpu.dot_dimension_numbers<[1], [0], [0], [1], [0, 0, 1, 1], [], []>} : vector<9x9xbf16>, vector<9x8xbf16>, vector<9x8xf32> -> vector<9x8xf32>
    %195 = arith.truncf %194 : vector<9x8xf32> to vector<9x8xbf16>
    %196 = vector.extract_strided_slice %38 {offsets = [16, 0], sizes = [8, 32], strides = [1, 1]} : vector<32x32xbf16> to vector<8x32xbf16>
    %cst_59 = arith.constant dense<0.000000e+00> : vector<9x32xf32>
    %197 = tpu.matmul %195, %196, %cst_59 {dimension_numbers = #tpu.dot_dimension_numbers<[1], [0], [0], [1], [0, 0, 1, 1], [], []>} : vector<9x8xbf16>, vector<8x32xbf16>, vector<9x32xf32> -> vector<9x32xf32>
    %198 = arith.addf %175, %197 : vector<9x32xf32>
    %199 = vector.extract_strided_slice %36 {offsets = [9, 24], sizes = [9, 8], strides = [1, 1]} : vector<18x96xf32> to vector<9x8xf32>
    %200 = arith.truncf %199 : vector<9x8xf32> to vector<9x8xbf16>
    %201 = vector.extract_strided_slice %36 {offsets = [9, 56], sizes = [9, 8], strides = [1, 1]} : vector<18x96xf32> to vector<9x8xf32>
    %202 = arith.truncf %201 : vector<9x8xf32> to vector<9x8xbf16>
    %203 = vector.extract_strided_slice %36 {offsets = [9, 88], sizes = [9, 8], strides = [1, 1]} : vector<18x96xf32> to vector<9x8xf32>
    %204 = arith.truncf %203 : vector<9x8xf32> to vector<9x8xbf16>
    %cst_60 = arith.constant dense<0.000000e+00> : vector<9x9xf32>
    %205 = tpu.matmul %200, %202, %cst_60 {dimension_numbers = #tpu.dot_dimension_numbers<[1], [1], [0], [0], [0, 0, 1, 0], [], []>} : vector<9x8xbf16>, vector<9x8xbf16>, vector<9x9xf32> -> vector<9x9xf32>
    %cst_61 = arith.constant dense<0xFF800000> : vector<9xf32>
    %206 = vector.multi_reduction <maximumf>, %205, %cst_61 [1] : vector<9x9xf32> to vector<9xf32>
    %207 = vector.shape_cast %206 : vector<9xf32> to vector<9x1xf32>
    %208 = vector.broadcast %207 : vector<9x1xf32> to vector<9x9xf32>
    %209 = arith.subf %205, %208 : vector<9x9xf32>
    %210 = math.exp %209 : vector<9x9xf32>
    %cst_62 = arith.constant dense<0.000000e+00> : vector<9xf32>
    %211 = vector.multi_reduction <add>, %210, %cst_62 [1] : vector<9x9xf32> to vector<9xf32>
    %212 = vector.shape_cast %211 : vector<9xf32> to vector<9x1xf32>
    %213 = tpu.reciprocal %212 {approx = true} : vector<9x1xf32> -> vector<9x1xf32>
    %214 = vector.broadcast %213 : vector<9x1xf32> to vector<9x9xf32>
    %215 = arith.mulf %210, %214 : vector<9x9xf32>
    %216 = arith.truncf %215 : vector<9x9xf32> to vector<9x9xbf16>
    %cst_63 = arith.constant dense<0.000000e+00> : vector<9x8xf32>
    %217 = tpu.matmul %216, %204, %cst_63 {dimension_numbers = #tpu.dot_dimension_numbers<[1], [0], [0], [1], [0, 0, 1, 1], [], []>} : vector<9x9xbf16>, vector<9x8xbf16>, vector<9x8xf32> -> vector<9x8xf32>
    %218 = arith.truncf %217 : vector<9x8xf32> to vector<9x8xbf16>
    %219 = vector.extract_strided_slice %38 {offsets = [24, 0], sizes = [8, 32], strides = [1, 1]} : vector<32x32xbf16> to vector<8x32xbf16>
    %cst_64 = arith.constant dense<0.000000e+00> : vector<9x32xf32>
    %220 = tpu.matmul %218, %219, %cst_64 {dimension_numbers = #tpu.dot_dimension_numbers<[1], [0], [0], [1], [0, 0, 1, 1], [], []>} : vector<9x8xbf16>, vector<8x32xbf16>, vector<9x32xf32> -> vector<9x32xf32>
    %221 = arith.addf %198, %220 : vector<9x32xf32>
    %c9 = arith.constant 9 : index
    %c0_65 = arith.constant 0 : index
    %222 = vector.load %arg22[%c9, %c0_65] : memref<18x32xf32, #tpu.memory_space<vmem>>, vector<9x32xf32>
    tpu.vector_store %arg22[%c9, %c0_65], %221 {strides = array<i32>} : memref<18x32xf32, #tpu.memory_space<vmem>>, vector<9x32xf32>,
    %c0_66 = arith.constant 0 : index
    %c0_67 = arith.constant 0 : index
    %223 = vector.load %arg22[%c0_66, %c0_67] : memref<18x32xf32, #tpu.memory_space<vmem>>, vector<18x32xf32>
    %224 = arith.addf %4, %223 : vector<18x32xf32>
    %c0_68 = arith.constant 0 : index
    %c0_69 = arith.constant 0 : index
    %c0_70 = arith.constant 0 : index
    %225 = vector.load %arg12[%c0_68, %c0_69, %c0_70] : memref<1x1x32xf32, #tpu.memory_space<vmem>>, vector<1x1x32xf32>
    %226 = vector.shape_cast %225 : vector<1x1x32xf32> to vector<1x32xf32>
    %227 = vector.broadcast %226 : vector<1x32xf32> to vector<18x32xf32>
    %228 = arith.addf %224, %227 : vector<18x32xf32>
    %c0_71 = arith.constant 0 : index
    %c0_72 = arith.constant 0 : index
    %c0_73 = arith.constant 0 : index
    %229 = vector.load %arg13[%c0_71, %c0_72, %c0_73] : memref<1x1x32xf32, #tpu.memory_space<vmem>>, vector<1x1x32xf32>
    %230 = vector.shape_cast %229 : vector<1x1x32xf32> to vector<1x32xf32>
    %c0_74 = arith.constant 0 : index
    %c0_75 = arith.constant 0 : index
    %c0_76 = arith.constant 0 : index
    %231 = vector.load %arg14[%c0_74, %c0_75, %c0_76] : memref<1x1x32xf32, #tpu.memory_space<vmem>>, vector<1x1x32xf32>
    %232 = vector.shape_cast %231 : vector<1x1x32xf32> to vector<1x32xf32>
    %cst_77 = arith.constant dense<0.000000e+00> : vector<18xf32>
    %233 = vector.multi_reduction <add>, %228, %cst_77 [1] : vector<18x32xf32> to vector<18xf32>
    %234 = vector.shape_cast %233 : vector<18xf32> to vector<18x1xf32>
    %cst_78 = arith.constant 3.125000e-02 : f32
    %235 = vector.broadcast %cst_78 : f32 to vector<18x1xf32>
    %236 = arith.mulf %234, %235 : vector<18x1xf32>
    %237 = vector.broadcast %236 : vector<18x1xf32> to vector<18x32xf32>
    %238 = arith.subf %228, %237 : vector<18x32xf32>
    %239 = arith.mulf %238, %238 : vector<18x32xf32>
    %cst_79 = arith.constant dense<0.000000e+00> : vector<18xf32>
    %240 = vector.multi_reduction <add>, %239, %cst_79 [1] : vector<18x32xf32> to vector<18xf32>
    %241 = vector.shape_cast %240 : vector<18xf32> to vector<18x1xf32>
    %cst_80 = arith.constant 3.125000e-02 : f32
    %242 = vector.broadcast %cst_80 : f32 to vector<18x1xf32>
    %243 = arith.mulf %241, %242 : vector<18x1xf32>
    %cst_81 = arith.constant 9.99999974E-6 : f32
    %244 = vector.broadcast %cst_81 : f32 to vector<18x1xf32>
    %245 = arith.addf %243, %244 : vector<18x1xf32>
    %246 = math.rsqrt %245 : vector<18x1xf32>
    %247 = vector.broadcast %246 : vector<18x1xf32> to vector<18x32xf32>
    %248 = arith.mulf %238, %247 : vector<18x32xf32>
    %249 = vector.broadcast %230 : vector<1x32xf32> to vector<18x32xf32>
    %250 = arith.mulf %248, %249 : vector<18x32xf32>
    %251 = vector.broadcast %232 : vector<1x32xf32> to vector<18x32xf32>
    %252 = arith.addf %250, %251 : vector<18x32xf32>
    %253 = arith.truncf %252 : vector<18x32xf32> to vector<18x32xbf16>
    %c0_82 = arith.constant 0 : index
    %c0_83 = arith.constant 0 : index
    %c0_84 = arith.constant 0 : index
    %254 = vector.load %arg15[%c0_82, %c0_83, %c0_84] : memref<1x32x64xbf16, #tpu.memory_space<vmem>>, vector<1x32x64xbf16>
    %255 = vector.shape_cast %254 : vector<1x32x64xbf16> to vector<32x64xbf16>
    %cst_85 = arith.constant dense<0.000000e+00> : vector<18x64xf32>
    %256 = tpu.matmul %253, %255, %cst_85 {dimension_numbers = #tpu.dot_dimension_numbers<[1], [0], [0], [1], [0, 0, 1, 1], [], []>} : vector<18x32xbf16>, vector<32x64xbf16>, vector<18x64xf32> -> vector<18x64xf32>
    %c0_86 = arith.constant 0 : index
    %c0_87 = arith.constant 0 : index
    %c0_88 = arith.constant 0 : index
    %257 = vector.load %arg16[%c0_86, %c0_87, %c0_88] : memref<1x1x64xf32, #tpu.memory_space<vmem>>, vector<1x1x64xf32>
    %258 = vector.shape_cast %257 : vector<1x1x64xf32> to vector<1x64xf32>
    %259 = vector.broadcast %258 : vector<1x64xf32> to vector<18x64xf32>
    %260 = arith.addf %256, %259 : vector<18x64xf32>
    %261 = arith.mulf %260, %260 : vector<18x64xf32>
    %262 = arith.mulf %260, %261 : vector<18x64xf32>
    %cst_89 = arith.constant 4.471500e-02 : f32
    %263 = vector.broadcast %cst_89 : f32 to vector<18x64xf32>
    %264 = arith.mulf %263, %262 : vector<18x64xf32>
    %265 = arith.addf %260, %264 : vector<18x64xf32>
    %cst_90 = arith.constant 0.797884583 : f32
    %266 = vector.broadcast %cst_90 : f32 to vector<18x64xf32>
    %267 = arith.mulf %266, %265 : vector<18x64xf32>
    %268 = math.tanh %267 : vector<18x64xf32>
    %cst_91 = arith.constant 1.000000e+00 : f32
    %269 = vector.broadcast %cst_91 : f32 to vector<18x64xf32>
    %270 = arith.addf %269, %268 : vector<18x64xf32>
    %cst_92 = arith.constant 5.000000e-01 : f32
    %271 = vector.broadcast %cst_92 : f32 to vector<18x64xf32>
    %272 = arith.mulf %271, %270 : vector<18x64xf32>
    %273 = arith.mulf %260, %272 : vector<18x64xf32>
    %274 = arith.truncf %273 : vector<18x64xf32> to vector<18x64xbf16>
    %c0_93 = arith.constant 0 : index
    %c0_94 = arith.constant 0 : index
    %c0_95 = arith.constant 0 : index
    %275 = vector.load %arg17[%c0_93, %c0_94, %c0_95] : memref<1x64x32xbf16, #tpu.memory_space<vmem>>, vector<1x64x32xbf16>
    %276 = vector.shape_cast %275 : vector<1x64x32xbf16> to vector<64x32xbf16>
    %cst_96 = arith.constant dense<0.000000e+00> : vector<18x32xf32>
    %277 = tpu.matmul %274, %276, %cst_96 {dimension_numbers = #tpu.dot_dimension_numbers<[1], [0], [0], [1], [0, 0, 1, 1], [], []>} : vector<18x64xbf16>, vector<64x32xbf16>, vector<18x32xf32> -> vector<18x32xf32>
    %c0_97 = arith.constant 0 : index
    %c0_98 = arith.constant 0 : index
    %c0_99 = arith.constant 0 : index
    %278 = vector.load %arg18[%c0_97, %c0_98, %c0_99] : memref<1x1x32xf32, #tpu.memory_space<vmem>>, vector<1x1x32xf32>
    %279 = vector.shape_cast %278 : vector<1x1x32xf32> to vector<1x32xf32>
    %280 = vector.broadcast %279 : vector<1x32xf32> to vector<18x32xf32>
    %281 = arith.addf %277, %280 : vector<18x32xf32>
    %282 = arith.addf %228, %281 : vector<18x32xf32>
    %c1_i32 = arith.constant 1 : i32
    %283 = arith.cmpi slt, %arg1, %c1_i32 : i32
    %284 = arith.extui %283 : i1 to i32
    %c0_i32_100 = arith.constant 0 : i32
    %285 = arith.cmpi ne, %284, %c0_i32_100 : i32
    scf.if %285 {
      %c0_103 = arith.constant 0 : index
      %c0_104 = arith.constant 0 : index
      %c0_105 = arith.constant 0 : index
      %289 = vector.load %arg21[%c0_103, %c0_104, %c0_105] : memref<1x18x32xf32, #tpu.memory_space<vmem>>, vector<1x18x32xf32>
      %290 = vector.shape_cast %289 : vector<1x18x32xf32> to vector<18x32xf32>
      %291 = vector.shape_cast %282 : vector<18x32xf32> to vector<1x18x32xf32>
      tpu.vector_store %arg21[%c0_103, %c0_104, %c0_105], %291 {strides = array<i32>} : memref<1x18x32xf32, #tpu.memory_space<vmem>>, vector<1x18x32xf32>,
    } else {
    }
    %c1_i32_101 = arith.constant 1 : i32
    %286 = arith.cmpi eq, %arg1, %c1_i32_101 : i32
    %287 = arith.extui %286 : i1 to i32
    %c0_i32_102 = arith.constant 0 : i32
    %288 = arith.cmpi ne, %287, %c0_i32_102 : i32
    scf.if %288 {
      %c0_103 = arith.constant 0 : index
      %c0_104 = arith.constant 0 : index
      %289 = vector.load %arg19[%c0_103, %c0_104] : memref<1x32xf32, #tpu.memory_space<vmem>>, vector<1x32xf32>
      %c0_105 = arith.constant 0 : index
      %c0_106 = arith.constant 0 : index
      %290 = vector.load %arg20[%c0_105, %c0_106] : memref<1x32xf32, #tpu.memory_space<vmem>>, vector<1x32xf32>
      %cst_107 = arith.constant dense<0.000000e+00> : vector<18xf32>
      %291 = vector.multi_reduction <add>, %282, %cst_107 [1] : vector<18x32xf32> to vector<18xf32>
      %292 = vector.shape_cast %291 : vector<18xf32> to vector<18x1xf32>
      %cst_108 = arith.constant 3.125000e-02 : f32
      %293 = vector.broadcast %cst_108 : f32 to vector<18x1xf32>
      %294 = arith.mulf %292, %293 : vector<18x1xf32>
      %295 = vector.broadcast %294 : vector<18x1xf32> to vector<18x32xf32>
      %296 = arith.subf %282, %295 : vector<18x32xf32>
      %297 = arith.mulf %296, %296 : vector<18x32xf32>
      %cst_109 = arith.constant dense<0.000000e+00> : vector<18xf32>
      %298 = vector.multi_reduction <add>, %297, %cst_109 [1] : vector<18x32xf32> to vector<18xf32>
      %299 = vector.shape_cast %298 : vector<18xf32> to vector<18x1xf32>
      %cst_110 = arith.constant 3.125000e-02 : f32
      %300 = vector.broadcast %cst_110 : f32 to vector<18x1xf32>
      %301 = arith.mulf %299, %300 : vector<18x1xf32>
      %cst_111 = arith.constant 9.99999974E-6 : f32
      %302 = vector.broadcast %cst_111 : f32 to vector<18x1xf32>
      %303 = arith.addf %301, %302 : vector<18x1xf32>
      %304 = math.rsqrt %303 : vector<18x1xf32>
      %305 = vector.broadcast %304 : vector<18x1xf32> to vector<18x32xf32>
      %306 = arith.mulf %296, %305 : vector<18x32xf32>
      %307 = vector.broadcast %289 : vector<1x32xf32> to vector<18x32xf32>
      %308 = arith.mulf %306, %307 : vector<18x32xf32>
      %309 = vector.broadcast %290 : vector<1x32xf32> to vector<18x32xf32>
      %310 = arith.addf %308, %309 : vector<18x32xf32>
      %c0_112 = arith.constant 0 : index
      %c0_113 = arith.constant 0 : index
      %c0_114 = arith.constant 0 : index
      %311 = vector.load %arg21[%c0_112, %c0_113, %c0_114] : memref<1x18x32xf32, #tpu.memory_space<vmem>>, vector<1x18x32xf32>
      %312 = vector.shape_cast %311 : vector<1x18x32xf32> to vector<18x32xf32>
      %313 = vector.shape_cast %310 : vector<18x32xf32> to vector<1x18x32xf32>
      tpu.vector_store %arg21[%c0_112, %c0_113, %c0_114], %313 {strides = array<i32>} : memref<1x18x32xf32, #tpu.memory_space<vmem>>, vector<1x18x32xf32>,
    } else {
    }
    return
  }
  func.func @transform_0(%arg0: i32, %arg1: i32) -> (i32, i32, i32) {
    %c0_i32 = arith.constant 0 : i32
    %c0_i32_0 = arith.constant 0 : i32
    %c0_i32_1 = arith.constant 0 : i32
    return %arg0, %c0_i32, %c0_i32_0 : i32, i32, i32
  }
  func.func @transform_1(%arg0: i32, %arg1: i32) -> (i32, i32) {
    %c0_i32 = arith.constant 0 : i32
    %c0_i32_0 = arith.constant 0 : i32
    %c0_i32_1 = arith.constant 0 : i32
    return %c0_i32, %c0_i32_0 : i32, i32
  }
  func.func @transform_2(%arg0: i32, %arg1: i32) -> (i32, i32) {
    %c0_i32 = arith.constant 0 : i32
    %c0_i32_0 = arith.constant 0 : i32
    %c0_i32_1 = arith.constant 0 : i32
    return %c0_i32, %c0_i32_0 : i32, i32
  }
  func.func @transform_3(%arg0: i32, %arg1: i32) -> (i32, i32) {
    %c0_i32 = arith.constant 0 : i32
    %c0_i32_0 = arith.constant 0 : i32
    %c0_i32_1 = arith.constant 0 : i32
    return %c0_i32, %c0_i32_0 : i32, i32
  }
  func.func @transform_4(%arg0: i32, %arg1: i32) -> (i32, i32) {
    %c0_i32 = arith.constant 0 : i32
    %c0_i32_0 = arith.constant 0 : i32
    %c0_i32_1 = arith.constant 0 : i32
    return %c0_i32, %c0_i32_0 : i32, i32
  }
  func.func @transform_5(%arg0: i32, %arg1: i32) -> (i32, i32, i32) {
    %c0_i32 = arith.constant 0 : i32
    %c0_i32_0 = arith.constant 0 : i32
    %c0_i32_1 = arith.constant 0 : i32
    return %arg1, %c0_i32, %c0_i32_0 : i32, i32, i32
  }
  func.func @transform_6(%arg0: i32, %arg1: i32) -> (i32, i32, i32) {
    %c0_i32 = arith.constant 0 : i32
    %c0_i32_0 = arith.constant 0 : i32
    %c0_i32_1 = arith.constant 0 : i32
    return %arg1, %c0_i32, %c0_i32_0 : i32, i32, i32
  }
  func.func @transform_7(%arg0: i32, %arg1: i32) -> (i32, i32, i32) {
    %c0_i32 = arith.constant 0 : i32
    %c0_i32_0 = arith.constant 0 : i32
    %c0_i32_1 = arith.constant 0 : i32
    return %arg1, %c0_i32, %c0_i32_0 : i32, i32, i32
  }
  func.func @transform_8(%arg0: i32, %arg1: i32) -> (i32, i32, i32) {
    %c0_i32 = arith.constant 0 : i32
    %c0_i32_0 = arith.constant 0 : i32
    %c0_i32_1 = arith.constant 0 : i32
    return %arg1, %c0_i32, %c0_i32_0 : i32, i32, i32
  }
  func.func @transform_9(%arg0: i32, %arg1: i32) -> (i32, i32, i32) {
    %c0_i32 = arith.constant 0 : i32
    %c0_i32_0 = arith.constant 0 : i32
    %c0_i32_1 = arith.constant 0 : i32
    return %arg1, %c0_i32, %c0_i32_0 : i32, i32, i32
  }
  func.func @transform_10(%arg0: i32, %arg1: i32) -> (i32, i32, i32) {
    %c0_i32 = arith.constant 0 : i32
    %c0_i32_0 = arith.constant 0 : i32
    %c0_i32_1 = arith.constant 0 : i32
    return %arg1, %c0_i32, %c0_i32_0 : i32, i32, i32
  }
  func.func @transform_11(%arg0: i32, %arg1: i32) -> (i32, i32, i32) {
    %c0_i32 = arith.constant 0 : i32
    %c0_i32_0 = arith.constant 0 : i32
    %c0_i32_1 = arith.constant 0 : i32
    return %arg1, %c0_i32, %c0_i32_0 : i32, i32, i32
  }
  func.func @transform_12(%arg0: i32, %arg1: i32) -> (i32, i32, i32) {
    %c0_i32 = arith.constant 0 : i32
    %c0_i32_0 = arith.constant 0 : i32
    %c0_i32_1 = arith.constant 0 : i32
    return %arg1, %c0_i32, %c0_i32_0 : i32, i32, i32
  }
  func.func @transform_13(%arg0: i32, %arg1: i32) -> (i32, i32, i32) {
    %c0_i32 = arith.constant 0 : i32
    %c0_i32_0 = arith.constant 0 : i32
    %c0_i32_1 = arith.constant 0 : i32
    return %arg1, %c0_i32, %c0_i32_0 : i32, i32, i32
  }
  func.func @transform_14(%arg0: i32, %arg1: i32) -> (i32, i32, i32) {
    %c0_i32 = arith.constant 0 : i32
    %c0_i32_0 = arith.constant 0 : i32
    %c0_i32_1 = arith.constant 0 : i32
    return %arg1, %c0_i32, %c0_i32_0 : i32, i32, i32
  }
  func.func @transform_15(%arg0: i32, %arg1: i32) -> (i32, i32, i32) {
    %c0_i32 = arith.constant 0 : i32
    %c0_i32_0 = arith.constant 0 : i32
    %c0_i32_1 = arith.constant 0 : i32
    return %arg1, %c0_i32, %c0_i32_0 : i32, i32, i32
  }
  func.func @transform_16(%arg0: i32, %arg1: i32) -> (i32, i32, i32) {
    %c0_i32 = arith.constant 0 : i32
    %c0_i32_0 = arith.constant 0 : i32
    %c0_i32_1 = arith.constant 0 : i32
    return %arg1, %c0_i32, %c0_i32_0 : i32, i32, i32
  }
  func.func @transform_17(%arg0: i32, %arg1: i32) -> (i32, i32) {
    %c0_i32 = arith.constant 0 : i32
    %c0_i32_0 = arith.constant 0 : i32
    %c0_i32_1 = arith.constant 0 : i32
    return %c0_i32, %c0_i32_0 : i32, i32
  }
  func.func @transform_18(%arg0: i32, %arg1: i32) -> (i32, i32) {
    %c0_i32 = arith.constant 0 : i32
    %c0_i32_0 = arith.constant 0 : i32
    %c0_i32_1 = arith.constant 0 : i32
    return %c0_i32, %c0_i32_0 : i32, i32
  }
  func.func @transform_19(%arg0: i32, %arg1: i32) -> (i32, i32, i32) {
    %c0_i32 = arith.constant 0 : i32
    %c0_i32_0 = arith.constant 0 : i32
    %c0_i32_1 = arith.constant 0 : i32
    return %arg0, %c0_i32, %c0_i32_0 : i32, i32, i32
  }
}

module attributes {stable_mosaic.version = 11 : i64} {
  func.func @_heads_kernel(%arg0: i32, %arg1: memref<2x32xf32, #tpu.memory_space<vmem>>, %arg2: memref<2x32xf32, #tpu.memory_space<vmem>>, %arg3: memref<32x128xbf16, #tpu.memory_space<vmem>>, %arg4: memref<1x128xf32, #tpu.memory_space<vmem>>, %arg5: memref<32x128xbf16, #tpu.memory_space<vmem>>, %arg6: memref<1x128xf32, #tpu.memory_space<vmem>>, %arg7: memref<32x128xbf16, #tpu.memory_space<vmem>>, %arg8: memref<32x128xbf16, #tpu.memory_space<vmem>>, %arg9: memref<1x128xf32, #tpu.memory_space<vmem>>, %arg10: memref<2x128xf32, #tpu.memory_space<vmem>>, %arg11: memref<2x128xf32, #tpu.memory_space<vmem>>, %arg12: memref<2x128xf32, #tpu.memory_space<vmem>>) attributes {dimension_semantics = [#tpu.dimension_semantics<arbitrary>], iteration_bounds = array<i64: 1>, scalar_prefetch = 0 : i64, scratch_operands = 0 : i64, tpu.core_type = #tpu.core_type<tc>, window_params = [{pipeline_mode = #tpu.pipeline_mode<synchronous>, transform_indices = @transform_0, window_bounds = array<i64: 2, 32>}, {pipeline_mode = #tpu.pipeline_mode<synchronous>, transform_indices = @transform_1, window_bounds = array<i64: 2, 32>}, {pipeline_mode = #tpu.pipeline_mode<synchronous>, transform_indices = @transform_2, window_bounds = array<i64: 32, 128>}, {pipeline_mode = #tpu.pipeline_mode<synchronous>, transform_indices = @transform_3, window_bounds = array<i64: 1, 128>}, {pipeline_mode = #tpu.pipeline_mode<synchronous>, transform_indices = @transform_4, window_bounds = array<i64: 32, 128>}, {pipeline_mode = #tpu.pipeline_mode<synchronous>, transform_indices = @transform_5, window_bounds = array<i64: 1, 128>}, {pipeline_mode = #tpu.pipeline_mode<synchronous>, transform_indices = @transform_6, window_bounds = array<i64: 32, 128>}, {pipeline_mode = #tpu.pipeline_mode<synchronous>, transform_indices = @transform_7, window_bounds = array<i64: 32, 128>}, {pipeline_mode = #tpu.pipeline_mode<synchronous>, transform_indices = @transform_8, window_bounds = array<i64: 1, 128>}, {pipeline_mode = #tpu.pipeline_mode<synchronous>, transform_indices = @transform_9, window_bounds = array<i64: 2, 128>}, {pipeline_mode = #tpu.pipeline_mode<synchronous>, transform_indices = @transform_10, window_bounds = array<i64: 2, 128>}, {pipeline_mode = #tpu.pipeline_mode<synchronous>, transform_indices = @transform_11, window_bounds = array<i64: 2, 128>}]} {
    %c0 = arith.constant 0 : index
    %c0_0 = arith.constant 0 : index
    %0 = vector.load %arg1[%c0, %c0_0] : memref<2x32xf32, #tpu.memory_space<vmem>>, vector<2x32xf32>
    %1 = arith.truncf %0 : vector<2x32xf32> to vector<2x32xbf16>
    %c0_1 = arith.constant 0 : index
    %c0_2 = arith.constant 0 : index
    %2 = vector.load %arg2[%c0_1, %c0_2] : memref<2x32xf32, #tpu.memory_space<vmem>>, vector<2x32xf32>
    %3 = arith.truncf %2 : vector<2x32xf32> to vector<2x32xbf16>
    %c0_3 = arith.constant 0 : index
    %c0_4 = arith.constant 0 : index
    %4 = vector.load %arg3[%c0_3, %c0_4] : memref<32x128xbf16, #tpu.memory_space<vmem>>, vector<32x128xbf16>
    %cst = arith.constant dense<0.000000e+00> : vector<2x128xf32>
    %5 = tpu.matmul %1, %4, %cst {dimension_numbers = #tpu.dot_dimension_numbers<[1], [0], [0], [1], [0, 0, 1, 1], [], []>} : vector<2x32xbf16>, vector<32x128xbf16>, vector<2x128xf32> -> vector<2x128xf32>
    %c0_5 = arith.constant 0 : index
    %c0_6 = arith.constant 0 : index
    %6 = vector.load %arg4[%c0_5, %c0_6] : memref<1x128xf32, #tpu.memory_space<vmem>>, vector<1x128xf32>
    %7 = vector.broadcast %6 : vector<1x128xf32> to vector<2x128xf32>
    %8 = arith.addf %5, %7 : vector<2x128xf32>
    %c0_7 = arith.constant 0 : index
    %c0_8 = arith.constant 0 : index
    %9 = vector.load %arg11[%c0_7, %c0_8] : memref<2x128xf32, #tpu.memory_space<vmem>>, vector<2x128xf32>
    tpu.vector_store %arg11[%c0_7, %c0_8], %8 {strides = array<i32>} : memref<2x128xf32, #tpu.memory_space<vmem>>, vector<2x128xf32>,
    %c0_9 = arith.constant 0 : index
    %c0_10 = arith.constant 0 : index
    %10 = vector.load %arg5[%c0_9, %c0_10] : memref<32x128xbf16, #tpu.memory_space<vmem>>, vector<32x128xbf16>
    %cst_11 = arith.constant dense<0.000000e+00> : vector<2x128xf32>
    %11 = tpu.matmul %3, %10, %cst_11 {dimension_numbers = #tpu.dot_dimension_numbers<[1], [0], [0], [1], [0, 0, 1, 1], [], []>} : vector<2x32xbf16>, vector<32x128xbf16>, vector<2x128xf32> -> vector<2x128xf32>
    %c0_12 = arith.constant 0 : index
    %c0_13 = arith.constant 0 : index
    %12 = vector.load %arg6[%c0_12, %c0_13] : memref<1x128xf32, #tpu.memory_space<vmem>>, vector<1x128xf32>
    %13 = vector.broadcast %12 : vector<1x128xf32> to vector<2x128xf32>
    %14 = arith.addf %11, %13 : vector<2x128xf32>
    %c0_14 = arith.constant 0 : index
    %c0_15 = arith.constant 0 : index
    %15 = vector.load %arg12[%c0_14, %c0_15] : memref<2x128xf32, #tpu.memory_space<vmem>>, vector<2x128xf32>
    tpu.vector_store %arg12[%c0_14, %c0_15], %14 {strides = array<i32>} : memref<2x128xf32, #tpu.memory_space<vmem>>, vector<2x128xf32>,
    %c0_16 = arith.constant 0 : index
    %c0_17 = arith.constant 0 : index
    %16 = vector.load %arg7[%c0_16, %c0_17] : memref<32x128xbf16, #tpu.memory_space<vmem>>, vector<32x128xbf16>
    %cst_18 = arith.constant dense<0.000000e+00> : vector<2x128xf32>
    %17 = tpu.matmul %1, %16, %cst_18 {dimension_numbers = #tpu.dot_dimension_numbers<[1], [0], [0], [1], [0, 0, 1, 1], [], []>} : vector<2x32xbf16>, vector<32x128xbf16>, vector<2x128xf32> -> vector<2x128xf32>
    %c0_19 = arith.constant 0 : index
    %c0_20 = arith.constant 0 : index
    %18 = vector.load %arg8[%c0_19, %c0_20] : memref<32x128xbf16, #tpu.memory_space<vmem>>, vector<32x128xbf16>
    %cst_21 = arith.constant dense<0.000000e+00> : vector<2x128xf32>
    %19 = tpu.matmul %3, %18, %cst_21 {dimension_numbers = #tpu.dot_dimension_numbers<[1], [0], [0], [1], [0, 0, 1, 1], [], []>} : vector<2x32xbf16>, vector<32x128xbf16>, vector<2x128xf32> -> vector<2x128xf32>
    %20 = arith.addf %17, %19 : vector<2x128xf32>
    %c0_22 = arith.constant 0 : index
    %c0_23 = arith.constant 0 : index
    %21 = vector.load %arg9[%c0_22, %c0_23] : memref<1x128xf32, #tpu.memory_space<vmem>>, vector<1x128xf32>
    %22 = vector.broadcast %21 : vector<1x128xf32> to vector<2x128xf32>
    %23 = arith.addf %20, %22 : vector<2x128xf32>
    %c0_24 = arith.constant 0 : index
    %c0_25 = arith.constant 0 : index
    %24 = vector.load %arg10[%c0_24, %c0_25] : memref<2x128xf32, #tpu.memory_space<vmem>>, vector<2x128xf32>
    tpu.vector_store %arg10[%c0_24, %c0_25], %23 {strides = array<i32>} : memref<2x128xf32, #tpu.memory_space<vmem>>, vector<2x128xf32>,
    return
  }
  func.func @transform_0(%arg0: i32) -> (i32, i32) {
    %c0_i32 = arith.constant 0 : i32
    %c0_i32_0 = arith.constant 0 : i32
    %c0_i32_1 = arith.constant 0 : i32
    return %c0_i32, %c0_i32_0 : i32, i32
  }
  func.func @transform_1(%arg0: i32) -> (i32, i32) {
    %c0_i32 = arith.constant 0 : i32
    %c0_i32_0 = arith.constant 0 : i32
    %c0_i32_1 = arith.constant 0 : i32
    return %c0_i32, %c0_i32_0 : i32, i32
  }
  func.func @transform_2(%arg0: i32) -> (i32, i32) {
    %c0_i32 = arith.constant 0 : i32
    %c0_i32_0 = arith.constant 0 : i32
    %c0_i32_1 = arith.constant 0 : i32
    return %c0_i32, %c0_i32_0 : i32, i32
  }
  func.func @transform_3(%arg0: i32) -> (i32, i32) {
    %c0_i32 = arith.constant 0 : i32
    %c0_i32_0 = arith.constant 0 : i32
    %c0_i32_1 = arith.constant 0 : i32
    return %c0_i32, %c0_i32_0 : i32, i32
  }
  func.func @transform_4(%arg0: i32) -> (i32, i32) {
    %c0_i32 = arith.constant 0 : i32
    %c0_i32_0 = arith.constant 0 : i32
    %c0_i32_1 = arith.constant 0 : i32
    return %c0_i32, %c0_i32_0 : i32, i32
  }
  func.func @transform_5(%arg0: i32) -> (i32, i32) {
    %c0_i32 = arith.constant 0 : i32
    %c0_i32_0 = arith.constant 0 : i32
    %c0_i32_1 = arith.constant 0 : i32
    return %c0_i32, %c0_i32_0 : i32, i32
  }
  func.func @transform_6(%arg0: i32) -> (i32, i32) {
    %c0_i32 = arith.constant 0 : i32
    %c0_i32_0 = arith.constant 0 : i32
    %c0_i32_1 = arith.constant 0 : i32
    return %c0_i32, %c0_i32_0 : i32, i32
  }
  func.func @transform_7(%arg0: i32) -> (i32, i32) {
    %c0_i32 = arith.constant 0 : i32
    %c0_i32_0 = arith.constant 0 : i32
    %c0_i32_1 = arith.constant 0 : i32
    return %c0_i32, %c0_i32_0 : i32, i32
  }
  func.func @transform_8(%arg0: i32) -> (i32, i32) {
    %c0_i32 = arith.constant 0 : i32
    %c0_i32_0 = arith.constant 0 : i32
    %c0_i32_1 = arith.constant 0 : i32
    return %c0_i32, %c0_i32_0 : i32, i32
  }
  func.func @transform_9(%arg0: i32) -> (i32, i32) {
    %c0_i32 = arith.constant 0 : i32
    %c0_i32_0 = arith.constant 0 : i32
    %c0_i32_1 = arith.constant 0 : i32
    return %c0_i32, %c0_i32_0 : i32, i32
  }
  func.func @transform_10(%arg0: i32) -> (i32, i32) {
    %c0_i32 = arith.constant 0 : i32
    %c0_i32_0 = arith.constant 0 : i32
    %c0_i32_1 = arith.constant 0 : i32
    return %c0_i32, %c0_i32_0 : i32, i32
  }
  func.func @transform_11(%arg0: i32) -> (i32, i32) {
    %c0_i32 = arith.constant 0 : i32
    %c0_i32_0 = arith.constant 0 : i32
    %c0_i32_1 = arith.constant 0 : i32
    return %c0_i32, %c0_i32_0 : i32, i32
  }
}

</mosaic_0001>

<bundles_post_ra>
// kernel: mm_transformer_base_forward.5
= control target key start
LH: loop header
LB: loop body
LE: loop exit
PB: predicated region body
PF: predicated region fallthrough
CT: control target
= control target key end

     0   :  { %17 = vsyncpa [#allocation3], 0  ;;  %s465_s0 = inlined_call_operand.vmem [shape: f32[2,32], index: 0, kind: input, shape index: {}]   ;;  %s466_s1 = inlined_call_operand.vmem [shape: f32[2,32], index: 1, kind: input, shape index: {}]   ;;  %s467_s2 = inlined_call_operand.vmem [shape: bf16[32,128], index: 2, kind: input, shape index: {}]   ;;  %s468_s3 = inlined_call_operand.vmem [shape: f32[1,128], index: 3, kind: input, shape index: {}]   ;;  %s469_s4 = inlined_call_operand.vmem [shape: bf16[32,128], index: 4, kind: input, shape index: {}]   ;;  %s470_s5 = inlined_call_operand.vmem [shape: f32[1,128], index: 5, kind: input, shape index: {}]   ;;  %s471_s6 = inlined_call_operand.vmem [shape: bf16[32,128], index: 6, kind: input, shape index: {}]   ;;  %s472_s7 = inlined_call_operand.vmem [shape: bf16[32,128], index: 7, kind: input, shape index: {}]   ;;  %s473_s8 = inlined_call_operand.vmem [shape: f32[1,128], index: 8, kind: input, shape index: {}]   ;;  %s474_s9 = inlined_call_operand.hbm [shape: f32[2,128], index: 9, kind: output, shape index: {0}]   ;;  %s475_s10 = inlined_call_operand.hbm [shape: f32[2,128], index: 10, kind: output, shape index: {1}]   ;;  %s476_s11 = inlined_call_operand.hbm [shape: f32[2,128], index: 11, kind: output, shape index: {2}]  }
   0x1   :  { %v265_v0 = vld [vmem:[%s467_s2 + $0x8] sm:$0xff]  ;;  %v264_v4 = vld [vmem:[%s467_s2] sm:$0xff] }
   0x2   :  { %v267_v1 = vld [vmem:[%s469_s4 + $0x8] sm:$0xff]  ;;  %72 = vmatpush.bf16.msra.mxu0 %v265_v0  ;;  %v266_v5 = vld [vmem:[%s469_s4] sm:$0xff] }
   0x3   :  { %v271_v2 = vld [vmem:[%s472_s7 + $0x8] sm:$0xff]  ;;  %109 = vmatpush.bf16.msra.mxu1 %v267_v1  ;;  %v270_v6 = vld [vmem:[%s472_s7] sm:$0xff] }
   0x4   :  { %v269_v3 = vld [vmem:[%s471_s6 + $0x8] sm:$0xff]  ;;  %v38_v7 = vld [vmem:[%s465_s0] sm:$0x3]  ;;  %143 = vmatpush.bf16.msra.mxu2 %v271_v2 }
   0x5   :  { %168 = vmatpush.bf16.msra.mxu3 %v269_v3  ;;  %v268_v8 = vld [vmem:[%s471_s6] sm:$0xff] }
   0x6   :  { %v40_v9 = vld [vmem:[%s466_s1] sm:$0x3] }
   0x7   :  { %18 = vsyncpa [#allocation5], 0  ;;  %v39_v10 = vpack.c.bf16 %v38_v7, %v38_v7  ;;  %v41_v11 = vpack.c.bf16 %v40_v9, %v40_v9  ;;  %73 = vmatpush.bf16.msra.mxu0 %v264_v4  ;;  %110 = vmatpush.bf16.msra.mxu1 %v266_v5  ;;  %vm62_vm0 = vcmask 261120   ;;  %v275_v12 = vld [vmem:[%s468_s3] ss:$0 sm:$0xff]  ;;  %s354_s1 = smov [#allocation4]  }
   0x8   :  { %144 = vmatpush.bf16.msra.mxu2 %v270_v6  ;;  %v276_v13 = vld [vmem:[%s470_s5] ss:$0 sm:$0xff]  ;;  %s197_s17 = sshll.u32 %s354_s1, 4  ;;  %s199_s20 = sshll.u32 %s475_s10, 4  ;;  %s198_s17 = int_to_ptr.vmem [resolvable:$true] %s197_s17  ;;  %s200_s20 = int_to_ptr.hbm [resolvable:$true] %s199_s20 }
   0x9   :  { %169 = vmatpush.bf16.msra.mxu3 %v268_v8  ;;  %s355_s21 = smov [#allocation6]   ;;  %s210_s25 = sshll.u32 %s476_s11, 4  ;;  %v277_v18 = vld [vmem:[%s473_s8] ss:$0 sm:$0xff]  ;;  %s211_s25 = int_to_ptr.hbm [resolvable:$true] %s210_s25 }
   0xa   :  { %236 = vmatmul.msk.bf16.vlgmr.msra.gmra.mxu0 %vm62_vm0, %v39_v10  ;;  %245 = vmatmul.msk.bf16.vlgmr.msra.gmra.mxu1 %vm62_vm0, %v41_v11  ;;  %s208_s22 = sshll.u32 %s355_s21, 4  ;;  %s356_s10 = smov [#allocation2]   ;;  %s209_s22 = int_to_ptr.vmem [resolvable:$true] %s208_s22 }
   0xb   :  { %254 = vmatmul.msk.bf16.vlgmr.msra.gmra.mxu2 %vm62_vm0, %v41_v11  ;;  %s186_s11 = sshll.u32 %s356_s10, 4  ;;  %s188_s28 = sshll.u32 %s474_s9, 4  ;;  %s187_s11 = int_to_ptr.vmem [resolvable:$true] %s186_s11  ;;  %s189_s28 = int_to_ptr.hbm [resolvable:$true] %s188_s28 }
   0xc   :  { %263 = vmatmul.msk.bf16.vlgmr.msra.gmra.mxu3 %vm62_vm0, %v39_v10 }
  0x87   :  { %v75_v14 = vpop.f32.mrf.mxu0  ;;  %v112_v15 = vpop.f32.mrf.mxu1 }
  0x88   :  { %v76_v16 = vadd.f32 %v275_v12, %v75_v14  ;;  %v113_v17 = vadd.f32 %v276_v13, %v112_v15 }
  0x8a   :  { %79 = vst [vmem:[#allocation4] sm:$0x3] %v76_v16 }
  0x8b   :  { %116 = vst [vmem:[#allocation6] sm:$0x3] %v113_v17  ;;  %202 = dma.vmem_to_hbm [thread:$0]  %s198_s17, 32, %s200_s20, [#allocation5]  }
  0x8c   :  { %213 = dma.vmem_to_hbm [thread:$0]  %s209_s22, 32, %s211_s25, [#allocation5]  }
  0x8e   :  { %v146_v19 = vpop.f32.mrf.mxu2 }
  0x8f   :  { %v171_v20 = vpop.f32.mrf.mxu3  ;;  %v77_v22 = vpop.f32.mrf.mxu0 }
  0x90   :  { %v172_v21 = vadd.f32 %v171_v20, %v146_v19  ;;  %v114_v23 = vpop.f32.mrf.mxu1 }
  0x92   :  { %v179_v24 = vadd.f32 %v277_v18, %v172_v21 }
  0x94   :  { %180 = vst [vmem:[#allocation2] sm:$0x3] %v179_v24 }
  0x95   :  { %191 = dma.vmem_to_hbm [thread:$0]  %s187_s11, 32, %s189_s28, [#allocation3]  }
  0x96   :  { %v148_v25 = vpop.f32.mrf.mxu2 }
  0x97   :  { %v173_v26 = vpop.f32.mrf.mxu3 }
  0x98   :  { %350 = dma.done.wait [#allocation3], 32  }
  0x99   :  { %351 = vsyncadd [#allocation3], 4294967264 }
  0x9a   :  { %352 = dma.done.wait [#allocation5], 64  }
  0x9b   :  { %353 = vsyncadd [#allocation5], 4294967232 }
  0x9c   :  { %226 = vsyncpa [#allocation3], 1 }
  0x9d   :  { %227 = vsyncpa [#allocation5], 1 }

// kernel: mm_transformer_base_forward.3
= control target key start
LH: loop header
LB: loop body
LE: loop exit
PB: predicated region body
PF: predicated region fallthrough
CT: control target
= control target key end

     0   :  { %s4013_s0 = inlined_call_operand.vmem [shape: f32[1,16,24], index: 0, kind: input, shape index: {}]   ;;  %s4014_s1 = inlined_call_operand.vmem [shape: bf16[24,32], index: 1, kind: input, shape index: {}]   ;;  %s4015_s2 = inlined_call_operand.hbm [shape: f32[1,32], index: 2, kind: input, shape index: {}]   ;;  %s4016_s3 = inlined_call_operand.hbm [shape: f32[1,32], index: 3, kind: input, shape index: {}]   ;;  %s4017_s4 = inlined_call_operand.vmem [shape: f32[9,32], index: 4, kind: input, shape index: {}]   ;;  %s4018_s5 = inlined_call_operand.hbm [shape: f32[2,1,32], index: 5, kind: input, shape index: {}]   ;;  %s4019_s6 = inlined_call_operand.hbm [shape: f32[2,1,32], index: 6, kind: input, shape index: {}]   ;;  %s4020_s7 = inlined_call_operand.vmem [shape: bf16[2,32,96], index: 7, kind: input, shape index: {}]   ;;  %s4021_s8 = inlined_call_operand.hbm [shape: f32[2,1,96], index: 8, kind: input, shape index: {}]   ;;  %s4022_s9 = inlined_call_operand.vmem [shape: bf16[2,32,32], index: 9, kind: input, shape index: {}]   ;;  %s4023_s10 = inlined_call_operand.hbm [shape: f32[2,1,32], index: 10, kind: input, shape index: {}]   ;;  %s4024_s11 = inlined_call_operand.hbm [shape: f32[2,1,32], index: 11, kind: input, shape index: {}]   ;;  %s4025_s12 = inlined_call_operand.hbm [shape: f32[2,1,32], index: 12, kind: input, shape index: {}]   ;;  %s4026_s13 = inlined_call_operand.vmem [shape: bf16[2,32,64], index: 13, kind: input, shape index: {}]   ;;  %s4027_s14 = inlined_call_operand.hbm [shape: f32[2,1,64], index: 14, kind: input, shape index: {}]   ;;  %s4028_s15 = inlined_call_operand.vmem [shape: bf16[2,64,32], index: 15, kind: input, shape index: {}]   ;;  %s4029_s16 = inlined_call_operand.hbm [shape: f32[2,1,32], index: 16, kind: input, shape index: {}]   ;;  %s4030_s17 = inlined_call_operand.hbm [shape: f32[1,32], index: 17, kind: input, shape index: {}]   ;;  %s4031_s18 = inlined_call_operand.hbm [shape: f32[1,32], index: 18, kind: input, shape index: {}]   ;;  %s4032_s19 = inlined_call_operand.vmem [shape: f32[1,18,32], index: 19, kind: output, shape index: {}]  }
   0x1   :  { %4043 = sst [smem:[#allocation26_spill]] %s4013_s0 }
   0x2   :  { %4044 = sst [smem:[#allocation27_spill]] %s4014_s1 }
   0x3   :  { %4045 = sst [smem:[#allocation28_spill]] %s4015_s2 }
   0x4   :  { %4046 = sst [smem:[#allocation29_spill]] %s4016_s3 }
   0x5   :  { %4047 = sst [smem:[#allocation30_spill]] %s4017_s4 }
   0x6   :  { %4048 = sst [smem:[#allocation31_spill]] %s4018_s5 }
   0x7   :  { %4049 = sst [smem:[#allocation32_spill]] %s4019_s6 }
   0x8   :  { %4050 = sst [smem:[#allocation33_spill]] %s4020_s7 }
   0x9   :  { %4051 = sst [smem:[#allocation34_spill]] %s4021_s8 }
   0xa   :  { %4052 = sst [smem:[#allocation35_spill]] %s4022_s9 }
   0xb   :  { %4053 = sst [smem:[#allocation36_spill]] %s4023_s10 }
   0xc   :  { %4054 = sst [smem:[#allocation37_spill]] %s4026_s13 }
   0xd   :  { %4055 = sst [smem:[#allocation38_spill]] %s4028_s15 }
   0xe   :  { %4056 = sst [smem:[#allocation39_spill]] %s4032_s19 }
   0xf   :  { %24 = vsyncpa [#allocation4], 0 }
  0x10   :  { %25 = vsyncpa [#allocation6], 0 }
  0x11   :  { %26 = vsyncpa [#allocation17], 0  ;;  %s3438_s0 = smov 0   ;;  %s3440_s30 = smov 0  }
  0x12   :  { %s3442_s20 = smov 0   ;;  %s3444_s21 = smov 0  }
  0x13   :  { %s3446_s1 = smov 0   ;;  %s3448_s22 = smov 0  }
  0x14 LB: > { %4057 = sst [smem:[#allocation23_spill]] %s3308_s20  ;;  %s4035_s2 = sadd.s32 4294967295, %s3320_s22   ;;  %s3320_s22 = sphi %s3448_s22, %s32_s22   ;;  %s3316_s1 = sphi %s3446_s1, %s4098_s1   ;;  %s3312_s21 = sphi %s3444_s21, %s4097_s21   ;;  %s3308_s20 = sphi %s3442_s20, %s4093_s20   ;;  %s3304_s30 = sphi %s3440_s30, %s4096_s30   ;;  %s3300_s0 = sphi %s3438_s0, %s4095_s0  }
  0x15   : > { %s41_s23 = sadd.s32 1, %s3316_s1  ;;  %s161_s24 = sadd.s32 1, %s3308_s20 }
  0x16   : > { %p42_p0 = scmp.ge.s32.totalorder %s41_s23, 2  ;;  %p168_p1 = scmp.ne.s32.totalorder %s3308_s20, %s3304_s30 }
  0x17   : > { %p169_p2 = scmp.eq.s32.totalorder %s3320_s22, 0  ;;  %p174_p4 = scmp.ne.s32.totalorder %s3304_s30, %s3300_s0 }
  0x18   : > { %s4100_s23 = smov (%p42_p0, %s41_s23), 0  ;;  %p3483_p5 = scmp.eq.s32.totalorder %s4035_s2, 0 }
  0x19   : > { %4058 = sst [smem:[#allocation24_spill]] %s4100_s23  ;;  %p3474_p3 = por %p169_p2, %p168_p1 }
  0x1a   : > { %s158_s3 = ssub.s32 %s3316_s1, %s4100_s23  ;;  %p2545_p7 = scmp.ge.s32.totalorder %s3320_s22, 1 }
  0x1b   : > { %p159_p6 = scmp.eq.s32.totalorder %s158_s3, 0  ;;  %p3490_p8 = por %p3483_p5, %p174_p4 }
  0x1c   : > { %p539_p9 = scmp.lt.s32.totalorder %s3320_s22, 3  ;;  %s4064_s23 = sld [smem:[#allocation28_spill]] }
  0x1d   : > { %s3496_s28 = scalar_select %p159_p6, %s3308_s20, %s161_s24  }
  0x1e   : > { %p3498_p10 = pnand %p2545_p7, %p539_p9  ;;  %s3322_s19 = smov [#allocation3]  }
  0x1f   : > { %4062 = sst [smem:[#allocation25_spill]] %s3496_s28  ;;  %s564_s4 = sshll.u32 %s3322_s19, 4  ;;  %s565_s4 = int_to_ptr.vmem [resolvable:$true] %s564_s4 }
  0x20   : > { %p2683_p11 = pneg %p3498_p10  ;;  %p2725_p13 = scmp.lt.s32.totalorder %s3320_s22, 2 }
  0x21   : > { %s614_s28 = sand.u32 1, %s3320_s22   ;;  %s3524_s19 = sand.u32 1, %s3308_s20  }
  0x22   : > { %s562_s3 = sshll.u32 %s4064_s23, 4  ;;  %p3509_p12 = pnand %p2683_p11, %p3483_p5  ;;  %s563_s3 = int_to_ptr.hbm [resolvable:$true] %s562_s3 }
  0x23   : > { %p3519_p0 = pnand %p2725_p13, %p3474_p3  ;;  %s4067_s5 = sld [smem:[#allocation31_spill]] }
  0x24   : > { %2686 = dma.hbm_to_vmem [thread:$0]  (!%p3509_p12), %s563_s3, 16, %s565_s4, [#allocation4]  }
  0x25   : > { %s617_s4 = scalar_lea.vmem [#allocation7], %s3524_s19  ;;  %s3531_s3 = scalar_lea.sflag [#allocation4], %s614_s28 }
  0x26   : > { %s624_s25 = sshll.u32 %s617_s4, 4  ;;  %s4068_s6 = sld [smem:[#allocation32_spill]]  ;;  %s625_s25 = int_to_ptr.vmem [resolvable:$true] %s624_s25 }
  0x27   : > { %s634_s20 = scalar_lea.vmem [#allocation8], %s3524_s19  ;;  %s4069_s8 = sld [smem:[#allocation34_spill]] }
  0x28   : > { %s4070_s10 = sld [smem:[#allocation36_spill]]  ;;  %s684_s0 = scalar_lea.vmem [#allocation10], %s3524_s19 }
  0x29   : > { %s620_s15 = scalar_lea.hbm %s4067_s5, %s3316_s1  ;;  %s3324_s4 = smov [#allocation15]  }
  0x2a   : > { %s622_s13 = sshll.u32 %s620_s15, 4  ;;  %s641_s15 = sshll.u32 %s634_s20, 4  ;;  %s623_s13 = int_to_ptr.hbm [resolvable:$true] %s622_s13  ;;  %s642_s15 = int_to_ptr.vmem [resolvable:$true] %s641_s15 }
  0x2b   : > { %2699 = dma.hbm_to_vmem [thread:$0]  (!%p3519_p0), %s623_s13, 16, %s625_s25, %s3531_s3  }
  0x2c   : > { %s637_s5 = scalar_lea.hbm %s4068_s6, %s3316_s1  ;;  %s659_s25 = scalar_lea.vmem [#allocation9], %s3524_s19 }
  0x2d   : > { %s639_s9 = sshll.u32 %s637_s5, 4  ;;  %s662_s13 = scalar_lea.hbm %s4069_s8, %s3316_s1  ;;  %s640_s9 = int_to_ptr.hbm [resolvable:$true] %s639_s9 }
  0x2e   : > { %2702 = dma.hbm_to_vmem [thread:$0]  (!%p3519_p0), %s640_s9, 16, %s642_s15, %s3531_s3  }
  0x2f   : > { %s666_s7 = sshll.u32 %s659_s25, 4  ;;  %s664_s23 = sshll.u32 %s662_s13, 4  ;;  %s667_s7 = int_to_ptr.vmem [resolvable:$true] %s666_s7  ;;  %s665_s23 = int_to_ptr.hbm [resolvable:$true] %s664_s23 }
  0x30   : > { %2705 = dma.hbm_to_vmem [thread:$0]  (!%p3519_p0), %s665_s23, 16, %s667_s7, %s3531_s3  }
  0x31   : > { %s687_s9 = scalar_lea.hbm %s4070_s10, %s3316_s1  ;;  %s691_s15 = sshll.u32 %s684_s0, 4  ;;  %s692_s15 = int_to_ptr.vmem [resolvable:$true] %s691_s15 }
  0x32   : > { %s689_s28 = sshll.u32 %s687_s9, 4  ;;  %s704_s25 = scalar_lea.hbm %s4024_s11, %s3316_s1  ;;  %s690_s28 = int_to_ptr.hbm [resolvable:$true] %s689_s28 }
  0x33   : > { %2708 = dma.hbm_to_vmem [thread:$0]  (!%p3519_p0), %s690_s28, 16, %s692_s15, %s3531_s3  }
  0x34   : > { %s701_s6 = scalar_lea.vmem [#allocation11], %s3524_s19  ;;  %s706_s23 = sshll.u32 %s704_s25, 4  ;;  %s707_s23 = int_to_ptr.hbm [resolvable:$true] %s706_s23 }
  0x35   : > { %s708_s7 = sshll.u32 %s701_s6, 4  ;;  %s721_s9 = scalar_lea.hbm %s4025_s12, %s3316_s1  ;;  %s709_s7 = int_to_ptr.vmem [resolvable:$true] %s708_s7 }
  0x36   : > { %2711 = dma.hbm_to_vmem [thread:$0]  (!%p3519_p0), %s707_s23, 16, %s709_s7, %s3531_s3  }
  0x37   : > { %s718_s0 = scalar_lea.vmem [#allocation12], %s3524_s19  ;;  %s723_s28 = sshll.u32 %s721_s9, 4  ;;  %s724_s28 = int_to_ptr.hbm [resolvable:$true] %s723_s28 }
  0x38   : > { %s725_s15 = sshll.u32 %s718_s0, 4  ;;  %s4071_s13 = sld [smem:[#allocation29_spill]]  ;;  %s726_s15 = int_to_ptr.vmem [resolvable:$true] %s725_s15 }
  0x39   : > { %2714 = dma.hbm_to_vmem [thread:$0]  (!%p3519_p0), %s724_s28, 16, %s726_s15, %s3531_s3  }
  0x3a   : > { %s3323_s7 = smov [#allocation5]   ;;  %s746_s0 = scalar_lea.hbm %s4027_s14, %s3316_s1 }
  0x3b   : > { %s576_s23 = sshll.u32 %s3323_s7, 4  ;;  %s748_s9 = sshll.u32 %s746_s0, 4  ;;  %s577_s23 = int_to_ptr.vmem [resolvable:$true] %s576_s23  ;;  %s749_s9 = int_to_ptr.hbm [resolvable:$true] %s748_s9 }
  0x3c   : > { %s743_s8 = scalar_lea.vmem [#allocation13], %s3524_s19  ;;  %s589_s6 = sshll.u32 %s4030_s17, 4  ;;  %s590_s6 = int_to_ptr.hbm [resolvable:$true] %s589_s6 }
  0x3d   : > { %s750_s10 = sshll.u32 %s743_s8, 4  ;;  %s601_s8 = sshll.u32 %s4031_s18, 4  ;;  %s751_s10 = int_to_ptr.vmem [resolvable:$true] %s750_s10  ;;  %s602_s8 = int_to_ptr.hbm [resolvable:$true] %s601_s8 }
  0x3e   : > { %s574_s25 = sshll.u32 %s4071_s13, 4  ;;  %s591_s13 = sshll.u32 %s3324_s4, 4  ;;  %s575_s25 = int_to_ptr.hbm [resolvable:$true] %s574_s25  ;;  %s592_s13 = int_to_ptr.vmem [resolvable:$true] %s591_s13 }
  0x3f   : > { %2689 = dma.hbm_to_vmem [thread:$0]  (!%p3509_p12), %s575_s25, 16, %s577_s23, [#allocation6]  }
  0x40   : > { %2717 = dma.hbm_to_vmem [thread:$0]  (!%p3519_p0), %s749_s9, 16, %s751_s10, %s3531_s3  }
  0x41   : > { %2692 = dma.hbm_to_vmem [thread:$0]  (!%p3509_p12), %s590_s6, 16, %s592_s13, [#allocation6]  }
  0x42   : > { %s3325_s23 = smov [#allocation16]   ;;  %s771_s0 = scalar_lea.hbm %s4029_s16, %s3316_s1 }
  0x43   : > { %s603_s5 = sshll.u32 %s3325_s23, 4  ;;  %s773_s9 = sshll.u32 %s771_s0, 4  ;;  %s604_s5 = int_to_ptr.vmem [resolvable:$true] %s603_s5  ;;  %s774_s9 = int_to_ptr.hbm [resolvable:$true] %s773_s9 }
  0x44   : > { %2695 = dma.hbm_to_vmem [thread:$0]  (!%p3509_p12), %s602_s8, 16, %s604_s5, [#allocation17]  }
  0x45   : > { %s768_s15 = scalar_lea.vmem [#allocation14], %s3524_s19  ;;  %784 = sbr.rel (%p3498_p10) target bundleno = 4035 (0xfc3), region = 96 }
  0x46   : > { %s775_s28 = sshll.u32 %s768_s15, 4  ;;  %s776_s28 = int_to_ptr.vmem [resolvable:$true] %s775_s28 }
  0x47   : > { %2720 = dma.hbm_to_vmem [thread:$0]  (!%p3519_p0), %s774_s9, 16, %s776_s28, %s3531_s3  }
  0x4a   : > { %3279 = dma.done.wait (%p3483_p5), [#allocation4], 16  }
  0x4b   : > { %3281 = vsyncadd (%p3483_p5), [#allocation4], 4294967280 }
  0x4c   : > { %3283 = dma.done.wait (%p3483_p5), [#allocation6], 16  }
  0x4d   : > { %3285 = vsyncadd (%p3483_p5), [#allocation6], 4294967280  ;;  %s4072_s24 = sadd.s32 4294967295, %s3320_s22   ;;  %s3620_s19 = sand.u32 1, %s3304_s30  }
  0x4e   : > { %s796_s2 = sand.u32 1, %s4072_s24   ;;  %s799_s3 = scalar_lea.vmem [#allocation7], %s3620_s19 }
  0x4f   : > { %s797_s29 = scalar_lea.sflag [#allocation4], %s796_s2 }
  0x50   : > { %3287 = dma.done.wait (%p3490_p8), %s797_s29, 128  }
  0x51   : > { %3289 = vsyncadd (%p3490_p8), %s797_s29, 4294967168 }
  0x52   : > { %3291 = dma.done.wait (%p3483_p5), [#allocation6], 16  }
  0x53   : > { %3293 = vsyncadd (%p3483_p5), [#allocation6], 4294967280 }
  0x54   : > { %3295 = dma.done.wait (%p3483_p5), [#allocation17], 16  }
  0x55   : > { %3297 = vsyncadd (%p3483_p5), [#allocation17], 4294967280  ;;  %p985_p1 = scmp.lt.s32.totalorder %s3312_s21, 1  ;;  %s4073_s9 = sld [smem:[#allocation33_spill]] }
  0x56   : > { %s4074_s2 = sld [smem:[#allocation35_spill]]  ;;  %p2565_p2 = scmp.ne.s32.totalorder %s3312_s21, 0 }
  0x57   : > { %s986_s27 = scalar_select %p985_p1, %s3312_s21, 1 }
  0x58   : > { %s4075_s26 = sld [smem:[#allocation37_spill]] }
  0x59   : > { %s2638_s5 = sshll.u32 %s986_s27, 4  ;;  %s2641_s10 = sshll.u32 %s986_s27, 5 }
  0x5a   : > { %s4076_s4 = sld [smem:[#allocation38_spill]] }
  0x5b   : > { %s3647_s15 = scalar_lea.vmem %s4073_s9, %s2638_s5  ;;  %s4077_s0 = sld [smem:[#allocation27_spill]] (!%p2565_p2) }
  0x5c   : > { %s3652_s29 = scalar_lea.vmem %s4074_s2, %s2638_s5  ;;  %1014 = sbr.rel (%p2565_p2) target bundleno = 249 (0xf9), region = 148 }
  0x5d   : > { %s4080_s2 = sld [smem:[#allocation30_spill]] (!%p2565_p2) }
  0x5e   : > { %s3657_s7 = scalar_lea.vmem %s4075_s26, %s2638_s5  ;;  %s4081_s20 = sld [smem:[#allocation39_spill]] (!%p2565_p2) }
  0x60   : > { %s3662_s6 = scalar_lea.vmem %s4076_s4, %s2641_s10  ;;  %s4079_s4 = sld [smem:[#allocation26_spill]] (!%p2565_p2) }
  0x61   : > { %s4078_s9 = smov %s4077_s0  ;;  %v1020_v0 = vld [vmem:[%s4077_s0 + $0x8] sm:$0xf]  ;;  %vm1038_vm0 = vcmask 1043456   ;;  %vm1034_vm1 = vcmask 195584   ;;  %v1056_v8 = vld [vmem:[#allocation5] sm:$0x1] }
  0x62   : > { %v1030_v1 = vunpack.c.l.b16 %v1020_v0  ;;  %v2642_v4 = vld [vmem:[%s4078_s9] sm:$0xff]  ;;  %vm1060_vm2 = vcmask 253952   ;;  %v2794_v11 = vld [vmem:[#allocation3] ss:$0 sm:$0xff]  ;;  %vm1063_vm3 = vcmask 261120  }
  0x63   : > { %v1057_v9 = vld [vmem:[%s4080_s2] sm:$0x1]  ;;  %v1059_v13 = vld [vmem:[%s4080_s2 + $0x1] sm:$0xff] }
  0x64   : > { %v1032_v2 = vpack.c.b16 %v1030_v1, %v1030_v1  ;;  %v1058_v10 = vadd.f32 %v1057_v9, %v1056_v8 }
  0x66   : > { %v1040_v3 = vsel %vm1038_vm0, %v1032_v2, 0  ;;  %v1015_v5 = vld [vmem:[%s4079_s4] sm:$0xff]  ;;  %v1016_v6 = vld [vmem:[%s4079_s4 + $0x8] sm:$0xff]  ;;  %1061 = vst.msk [vmem:[%s4081_s20] sm:$0x1] %vm1060_vm2, %v1058_v10 }
  0x67   : > { %1048 = vmatpush.bf16.msra.mxu0 %v1040_v3  ;;  %v1017_v7 = vpack.c.bf16 %v1016_v6, %v1015_v5  ;;  %1065 = vst.msk [vmem:[%s4081_s20 + $0x9] sm:$0x1] %vm1060_vm2, %v1058_v10 }
  0x6b   : > { %1049 = vmatpush.bf16.msra.mxu0 %v2642_v4 }
  0x6e   : > { %2570 = vmatmul.msk.bf16.vlgmr.msra.gmra.mxu0 %vm1034_vm1, %v1017_v7 }
  0xeb   : > { %v1051_v12 = vpop.f32.mrf.mxu0 }
  0xec   : > { %v1052_v14 = vadd.f32 %v2794_v11, %v1051_v12 }
  0xee   : > { %v1062_v15 = vadd.f32 %v1059_v13, %v1052_v14 }
  0xf0   : > { %1064 = vst.msk [vmem:[%s4081_s20 + $0x1] sm:$0xff] %vm1063_vm3, %v1062_v15 }
  0xf3   : > { %v1053_v16 = vpop.f32.mrf.mxu0 }
  0xf4   : > { %v1054_v17 = vadd.f32 %v2794_v11, %v1053_v16 }
  0xf6   : > { %v1066_v18 = vadd.f32 %v1059_v13, %v1054_v17 }
  0xf8   : > { %1067 = vst.msk [vmem:[%s4081_s20 + $0xa] sm:$0xff] %vm1063_vm3, %v1066_v18 }
  0xf9 PF: > { %s4082_s27 = sld [smem:[#allocation39_spill]]  ;;  %vm1073_vm4 = vcmask 261120   ;;  %v2644_v33 = vld [vmem:[%s3647_s15 + $0x8] sm:$0xff]  ;;  %v2643_v35 = vld [vmem:[%s3647_s15] sm:$0xff]  ;;  %s4083_s15 = scalar_lea.vmem [#allocation8], %s3620_s19  ;;  %vm1207_vm11 = vcmask 64512  }
  0xfa   : > { %1187 = vmatpush.bf16.msra.mxu0 %v2644_v33  ;;  %v3713_v54 = vld [vmem:[%s799_s3] ss:$0 sm:$0xff]  ;;  %s4084_s3 = scalar_lea.vmem [#allocation9], %s3620_s19  ;;  %s3326_s20 = smov 120   ;;  %vm1228_vm12 = vcmask 72704   ;;  %vm1232_vm13 = vcmask 65536  }
  0xfb   : > { %v3718_v59 = vld [vmem:[%s4083_s15] ss:$0 sm:$0xff]  ;;  %s3327_s23 = smov 96   ;;  %s3328_s5 = smov 88   ;;  %vm1258_vm14 = vcmask 1043456   ;;  %vm1259_vm15 = vcmask 1044480  }
  0xfc   : > { %v3726_v1 = vld [vmem:[%s4084_s3] ss:$0 sm:$0xff]  ;;  %s3329_s13 = smov 64   ;;  %s3330_s25 = smov 112   ;;  %vm1080_vm0 = vcmask 254976  }
  0xfd   : > { %s3331_s10 = smov 56   ;;  %s3333_s28 = smov 80  }
  0xfe   : > { %1188 = vmatpush.bf16.msra.mxu0 %v2643_v35  ;;  %s3334_s0 = smov 104   ;;  %s3335_s8 = smov 48  }
  0xff   : > { %v3698_v19 = vld [vmem:[%s4082_s27] sm:$0xff]  ;;  %v1069_v21 = vld [vmem:[%s4082_s27 + $0x8] sm:$0xff]  ;;  %s3336_s15 = smov 72   ;;  %s3337_s3 = smov 40  }
 0x100   : > { %v1074_v20 = vsel %vm1073_vm4, %v3698_v19, 0.0  ;;  %v1077_v22 = vsel %vm1073_vm4, %v1069_v21, 0.0  ;;  %p2633_p3 = scmp.ge.s32.totalorder %s3312_s21, 1 }
 0x101   : > { %1075 = vadd.xlane.f32.xlu0 %v1074_v20 }
 0x109   : > { %1078 = vadd.xlane.f32.xlu0 %v1077_v22 }
 0x174   : > { %v1076_v23 = vpop.xlane.xlu0 %1075 }
 0x175   : > { %v1084_v24 = vmul.f32 0.03125, %v1076_v23 }
 0x177   : > { %v1087_v25 = vsub.f32 %v3698_v19, %v1084_v24 }
 0x179   : > { %v1090_v26 = vmul.f32 %v1087_v25, %v1087_v25 }
 0x17b   : > { %v1093_v27 = vsel %vm1073_vm4, %v1090_v26, 0.0 }
 0x17c   : > { %1094 = vadd.xlane.f32.xlu1 %v1093_v27  ;;  %v1079_v28 = vpop.xlane.xlu0 %1078 }
 0x17d   : > { %v1085_v29 = vmul.f32 0.03125, %v1079_v28 }
 0x17f   : > { %v1088_v30 = vsub.f32 %v1069_v21, %v1085_v29 }
 0x181   : > { %v1091_v31 = vmul.f32 %v1088_v30, %v1088_v30 }
 0x183   : > { %v1096_v32 = vsel %vm1073_vm4, %v1091_v31, 0.0 }
 0x184   : > { %1097 = vadd.xlane.f32.xlu1 %v1096_v32 }
 0x1ef   : > { %v1095_v34 = vpop.xlane.xlu1 %1094 }
 0x1f0   : > { %v1102_v36 = vmul.f32 0.03125, %v1095_v34 }
 0x1f2   : > { %v1105_v37 = vadd.f32 1e-05, %v1102_v36 }
 0x1f4   : > { %2803 = vrsqrt.f32 %v1105_v37  ;;  %vm1114_vm6 = vweird.f32 %v1105_v37 }
 0x1f7   : > { %v1098_v38 = vpop.xlane.xlu1 %1097 }
 0x1f8   : > { %v1103_v39 = vmul.f32 0.03125, %v1098_v38 }
 0x1fa   : > { %v2804_v40 = vpop.eup %2803  ;;  %v1106_v41 = vadd.f32 1e-05, %v1103_v39 }
 0x1fb   : > { %v1109_v42 = vmul.f32 %v2804_v40, %v1105_v37  ;;  %vm1115_vm5 = vweird.f32 %v2804_v40 }
 0x1fc   : > { %2805 = vrsqrt.f32 %v1106_v41  ;;  %vm1116_vm7 = vmor %vm1114_vm6, %vm1115_vm5  ;;  %vm1124_vm9 = vweird.f32 %v1106_v41  ;;  %vm1575_vm5 = vcmask 253952  }
 0x1fd   : > { %v1110_v43 = vmul.f32 %v2804_v40, %v1109_v42 }
 0x1ff   : > { %v1111_v44 = vmul.f32 0.5, %v1110_v43 }
 0x201   : > { %v1112_v45 = vsub.f32 1.5, %v1111_v44 }
 0x202   : > { %v2806_v46 = vpop.eup %2805 }
 0x203   : > { %v1113_v47 = vmul.f32 %v2804_v40, %v1112_v45  ;;  %v1119_v48 = vmul.f32 %v2806_v46, %v1106_v41  ;;  %vm1125_vm8 = vweird.f32 %v2806_v46  ;;  %v3769_v45 = vld [vmem:[%s4082_s27 + $0x10] sm:$0x3] }
 0x204   : > { %vm1126_vm10 = vmor %vm1124_vm9, %vm1125_vm8 }
 0x205   : > { %v1120_v49 = vmul.f32 %v2806_v46, %v1119_v48  ;;  %v1117_v50 = vsel %vm1116_vm7, %v2804_v40, %v1113_v47  ;;  %v3332_v40 = vmov 65535  }
 0x206   : > { %v1138_v53 = vmul.f32 %v1117_v50, %v1087_v25  ;;  %v1260_v41 = vsel %vm1258_vm14, 4294967295, %v3332_v40 }
 0x207   : > { %v1121_v51 = vmul.f32 0.5, %v1120_v49  ;;  %v3761_v42 = vsel %vm1259_vm15, %v1260_v41, 0  ;;  %vm2141_vm15 = vcmask 523264  }
 0x208   : > { %v1144_v58 = vmul.f32 %v3713_v54, %v1138_v53 }
 0x209   : > { %v1122_v52 = vsub.f32 1.5, %v1121_v51 }
 0x20a   : > { %v1150_v61 = vadd.f32 %v3718_v59, %v1144_v58 }
 0x20b   : > { %v1123_v55 = vmul.f32 %v2806_v46, %v1122_v52 }
 0x20d   : > { %v1127_v56 = vsel %vm1126_vm10, %v2806_v46, %v1123_v55  ;;  %v1081_v46 = vsel %vm1080_vm0, %v3769_v45, 0.0 }
 0x20e   : > { %v1139_v57 = vmul.f32 %v1127_v56, %v1088_v30 }
 0x210   : > { %v1145_v60 = vmul.f32 %v3713_v54, %v1139_v57  ;;  %v1200_v57 = vld [vmem:[%s3652_s29 + $0x4] sm:$0xf] }
 0x212   : > { %v1151_v62 = vadd.f32 %v3718_v59, %v1145_v60 }
 0x214   : > { %v1153_v63 = vpack.c.bf16 %v1151_v62, %v1150_v61  ;;  %v3777_v61 = vsel %vm1258_vm14, %v1200_v57, 0 }
 0x216   : > { %2579 = vmatmul.msk.bf16.vlgmr.msra.gmra.mxu0 %vm1073_vm4, %v1153_v63 }
 0x293   : > { %v1190_v0 = vpop.f32.mrf.mxu0 }
 0x294   : > { %v1191_v3 = vadd.f32 %v3726_v1, %v1190_v0 }
 0x29b   : > { %v1192_v2 = vpop.f32.mrf.mxu0 }
 0x29c   : > { %v3730_v4 = vadd.f32 %v3726_v1, %v1192_v2 }
 0x29e   : > { %v3733_v5 = vpack.c.bf16 %v3730_v4, %v1191_v3 }
 0x2a0   : > { %1280 = vrot.lane.b32.xlu0 %v3733_v5, %s3326_s20  ;;  %1205 = vrot.lane.b32.xlu2 %v3733_v5, %s3327_s23 }
 0x2a8   : > { %1282 = vrot.lane.b32.xlu2 %v3733_v5, %s3328_s5 }
 0x2fa   : > { %v1206_v6 = vpop.permute.xlu2 %1205 }
 0x2fb   : > { %v1212_v7 = vsel %vm1207_vm11, %v1206_v6, 0 }
 0x2fc   : > { %1221 = vmatpush.bf16.xpose.msra.mxu1 %v1212_v7 }
 0x302   : > { %v1283_v8 = vpop.permute.xlu2 %1282 }
 0x303   : > { %2581 = vmatmul.msk.bf16.vlgmr.msra.gmra.mxu1 %vm1207_vm11, %v3733_v5  ;;  %v1288_v9 = vsel %vm1207_vm11, %v1283_v8, 0 }
 0x304   : > { %1297 = vmatpush.bf16.xpose.msra.mxu3 %v1288_v9 }
 0x312   : > { %v1281_v10 = vpop.permute.xlu0 %1280 }
 0x313   : > { %2583 = vmatmul.msk.bf16.vlgmr.msra.gmra.mxu3 %vm1207_vm11, %v1281_v10 }
 0x380   : > { %v1223_v11 = vpop.f32.mrf.mxu1 }
 0x381   : > { %v1229_v12 = vsel %vm1228_vm12, %v1223_v11, -inf }
 0x382   : > { %1230 = vmax.xlane.f32.xlu1 %v1229_v12 }
 0x388   : > { %v1225_v13 = vpop.f32.mrf.mxu1 }
 0x389   : > { %v1233_v14 = vsel %vm1232_vm13, %v1225_v13, -inf }
 0x38a   : > { %1234 = vmax.xlane.f32.xlu2 %v1233_v14 }
 0x396   : > { %v1299_v15 = vpop.f32.mrf.mxu3 }
 0x397   : > { %v1304_v16 = vsel %vm1228_vm12, %v1299_v15, -inf }
 0x398   : > { %1305 = vmax.xlane.f32.xlu1 %v1304_v16 }
 0x39e   : > { %v1301_v17 = vpop.f32.mrf.mxu3 }
 0x39f   : > { %v1307_v18 = vsel %vm1232_vm13, %v1301_v17, -inf }
 0x3a0   : > { %1308 = vmax.xlane.f32.xlu1 %v1307_v18 }
 0x3b9   : > { %1253 = vrot.lane.b32.xlu1 %v3733_v5, %s3329_s13 }
 0x3f5   : > { %v1231_v20 = vpop.xlane.xlu1 %1230 }
 0x3f6   : > { %v1236_v21 = vsub.f32 %v1223_v11, %v1231_v20 }
 0x3f8   : > { %v1238_v22 = vmul.f32 1.442695, %v1236_v21 }
 0x3fa   : > { %2807 = vpow2.f32 %v1238_v22 }
 0x3fd   : > { %v1235_v23 = vpop.xlane.xlu2 %1234 }
 0x3fe   : > { %v1237_v24 = vsub.f32 %v1225_v13, %v1235_v23  ;;  %v1199_v13 = vld [vmem:[%s3652_s29] sm:$0xf] }
 0x3ff   : > { %v3786_v14 = vsel %vm1258_vm14, %v1199_v13, 0 }
 0x400   : > { %v2808_v25 = vpop.eup %2807  ;;  %v1240_v26 = vmul.f32 1.442695, %v1237_v24  ;;  %1383 = vmatpush.bf16.msrb.mxu3 %v3786_v14 }
 0x401   : > { %v1242_v27 = vsel %vm1228_vm12, %v2808_v25, 0.0 }
 0x402   : > { %2809 = vpow2.f32 %v1240_v26  ;;  %1243 = vadd.xlane.f32.xlu0 %v1242_v27 }
 0x408   : > { %v2810_v28 = vpop.eup %2809 }
 0x409   : > { %v1245_v29 = vsel %vm1232_vm13, %v2810_v28, 0.0 }
 0x40a   : > { %1246 = vadd.xlane.f32.xlu1 %v1245_v29 }
 0x40b   : > { %v1306_v30 = vpop.xlane.xlu1 %1305 }
 0x40c   : > { %v1310_v31 = vsub.f32 %v1299_v15, %v1306_v30 }
 0x40e   : > { %v1312_v32 = vmul.f32 1.442695, %v1310_v31 }
 0x410   : > { %2811 = vpow2.f32 %v1312_v32 }
 0x413   : > { %v1309_v33 = vpop.xlane.xlu1 %1308 }
 0x414   : > { %v1311_v34 = vsub.f32 %v1301_v17, %v1309_v33 }
 0x416   : > { %v2812_v35 = vpop.eup %2811  ;;  %v1314_v36 = vmul.f32 1.442695, %v1311_v34  ;;  %1390 = vrot.lane.b32.xlu0 %v3733_v5, %s3330_s25 }
 0x417   : > { %v1316_v37 = vsel %vm1228_vm12, %v2812_v35, 0.0 }
 0x418   : > { %2813 = vpow2.f32 %v1314_v36  ;;  %1317 = vadd.xlane.f32.xlu2 %v1316_v37 }
 0x41e   : > { %v2814_v38 = vpop.eup %2813 }
 0x41f   : > { %v1319_v39 = vsel %vm1232_vm13, %v2814_v38, 0.0 }
 0x420   : > { %1320 = vadd.xlane.f32.xlu2 %v1319_v39 }
 0x423   : > { %1327 = vrot.lane.b32.xlu1 %v3733_v5, %s3331_s10 }
 0x42b   : > { %v1254_v43 = vpop.permute.xlu1 %1253 }
 0x42c   : > { %v1263_v44 = vand.u32 %v3761_v42, %v1254_v43 }
 0x42e   : > { %1272 = vmatpush.bf16.msra.mxu2 %v1263_v44 }
 0x438   : > { %1392 = vrot.lane.b32.xlu2 %v3733_v5, %s3333_s28 }
 0x44d   : > { %1082 = vadd.xlane.f32.xlu1 %v1081_v46 }
 0x475   : > { %v1244_v47 = vpop.xlane.xlu0 %1243 }
 0x476   : > { %2815 = vrcp.f32 %v1244_v47 }
 0x47c   : > { %v2816_v49 = vpop.eup %2815 }
 0x47d   : > { %v1247_v48 = vpop.xlane.xlu1 %1246  ;;  %v1250_v51 = vmul.f32 %v2816_v49, %v2808_v25 }
 0x47e   : > { %2817 = vrcp.f32 %v1247_v48 }
 0x484   : > { %v2818_v50 = vpop.eup %2817 }
 0x485   : > { %v1251_v52 = vmul.f32 %v2818_v50, %v2810_v28 }
 0x487   : > { %v1252_v53 = vpack.c.bf16 %v1251_v52, %v1250_v51 }
 0x488   : > { %v1391_v23 = vpop.permute.xlu0 %1390 }
 0x489   : > { %2582 = vmatmul.msk.bf16.vlgmr.msra.gmra.mxu2 %vm1228_vm12, %v1252_v53  ;;  %v1201_v53 = vld [vmem:[%s3652_s29 + $0x8] sm:$0xf] }
 0x48b   : > { %v1318_v55 = vpop.xlane.xlu2 %1317 }
 0x48c   : > { %2819 = vrcp.f32 %v1318_v55 }
 0x492   : > { %v2820_v62 = vpop.eup %2819 }
 0x493   : > { %v1321_v56 = vpop.xlane.xlu2 %1320  ;;  %v1324_v0 = vmul.f32 %v2820_v62, %v2812_v35 }
 0x494   : > { %2821 = vrcp.f32 %v1321_v56  ;;  %v1464_v56 = vsel %vm1258_vm14, %v1201_v53, 0 }
 0x495   : > { %v1328_v58 = vpop.permute.xlu1 %1327  ;;  %1473 = vmatpush.bf16.msrb.mxu1 %v1464_v56 }
 0x496   : > { %v1333_v60 = vand.u32 %v1328_v58, %v3761_v42 }
 0x498   : > { %1342 = vmatpush.bf16.msrb.mxu2 %v1333_v60 }
 0x49a   : > { %v2822_v63 = vpop.eup %2821 }
 0x49b   : > { %v1325_v2 = vmul.f32 %v2822_v63, %v2814_v38  ;;  %v1393_v3 = vpop.permute.xlu2 %1392 }
 0x49c   : > { %1363 = vmatpush.bf16.msra.mxu2 %v3777_v61  ;;  %v1398_v7 = vsel %vm1207_vm11, %v1393_v3, 0 }
 0x49d   : > { %v1326_v6 = vpack.c.bf16 %v1325_v2, %v1324_v0 }
 0x49f   : > { %2584 = vmatmul.msk.bf16.vlgmr.msrb.gmra.mxu2 %vm1228_vm12, %v1326_v6 }
 0x4a0   : > { %1407 = vmatpush.bf16.xpose.msrb.mxu2 %v1398_v7 }
 0x4c0   : > { %v1083_v8 = vpop.xlane.xlu1 %1082 }
 0x4c1   : > { %v1086_v9 = vmul.f32 0.03125, %v1083_v8 }
 0x4c3   : > { %v1089_v10 = vsub.f32 %v3769_v45, %v1086_v9 }
 0x4c5   : > { %v1092_v11 = vmul.f32 %v1089_v10, %v1089_v10 }
 0x4c7   : > { %v1099_v12 = vsel %vm1080_vm0, %v1092_v11, 0.0 }
 0x4c8   : > { %1100 = vadd.xlane.f32.xlu1 %v1099_v12 }
 0x50c   : > { %v1274_v15 = vpop.f32.mrf.mxu2 }
 0x514   : > { %v1276_v16 = vpop.f32.mrf.mxu2 }
 0x515   : > { %v1279_v17 = vpack.c.bf16 %v1276_v16, %v1274_v15 }
 0x517   : > { %2586 = vmatmul.msk.bf16.vlgmr.msrb.gmra.mxu3 %vm1207_vm11, %v1279_v17 }
 0x522   : > { %v1344_v18 = vpop.f32.mrf.mxu2 }
 0x52a   : > { %v1346_v20 = vpop.f32.mrf.mxu2 }
 0x52b   : > { %v1349_v21 = vpack.c.bf16 %v1346_v20, %v1344_v18 }
 0x52d   : > { %2585 = vmatmul.msk.bf16.vlgmr.msra.gmra.mxu2 %vm1207_vm11, %v1349_v21 }
 0x53b   : > { %v1101_v22 = vpop.xlane.xlu1 %1100 }
 0x53c   : > { %v1104_v24 = vmul.f32 0.03125, %v1101_v22 }
 0x53d   : > { %2587 = vmatmul.msk.bf16.vlgmr.msrb.gmra.mxu2 %vm1207_vm11, %v1391_v23 }
 0x53e   : > { %v1107_v25 = vadd.f32 1e-05, %v1104_v24 }
 0x540   : > { %2823 = vrsqrt.f32 %v1107_v25  ;;  %vm1134_vm1 = vweird.f32 %v1107_v25 }
 0x546   : > { %v2824_v26 = vpop.eup %2823 }
 0x547   : > { %v1129_v27 = vmul.f32 %v2824_v26, %v1107_v25  ;;  %vm1135_vm2 = vweird.f32 %v2824_v26 }
 0x548   : > { %vm1136_vm3 = vmor %vm1134_vm1, %vm1135_vm2 }
 0x549   : > { %v1130_v28 = vmul.f32 %v2824_v26, %v1129_v27 }
 0x54b   : > { %v1131_v29 = vmul.f32 0.5, %v1130_v28 }
 0x54d   : > { %v1132_v30 = vsub.f32 1.5, %v1131_v29 }
 0x54f   : > { %v1133_v31 = vmul.f32 %v2824_v26, %v1132_v30 }
 0x551   : > { %v1137_v32 = vsel %vm1136_vm3, %v2824_v26, %v1133_v31 }
 0x552   : > { %v1140_v33 = vmul.f32 %v1137_v32, %v1089_v10 }
 0x554   : > { %v1146_v34 = vmul.f32 %v3713_v54, %v1140_v33 }
 0x556   : > { %v1152_v35 = vadd.f32 %v3718_v59, %v1146_v34 }
 0x558   : > { %v1154_v36 = vpack.c.bf16 %v1152_v35, %v1152_v35 }
 0x55a   : > { %2580 = vmatmul.msk.bf16.gmra.mxu0 %vm1073_vm4, %v1154_v36 }
 0x59a   : > { %v1385_v37 = vpop.f32.mrf.mxu3 }
 0x5a2   : > { %v1387_v26 = vpop.f32.mrf.mxu3 }
 0x5b0   : > { %v1365_v38 = vpop.f32.mrf.mxu2 }
 0x5b1   : > { %v3795_v39 = vadd.f32 %v1385_v37, %v1365_v38 }
 0x5b8   : > { %v3797_v40 = vpop.f32.mrf.mxu2 }
 0x5b9   : > { %v1388_v27 = vadd.f32 %v1387_v26, %v3797_v40 }
 0x5c0   : > { %v1409_v41 = vpop.f32.mrf.mxu2 }
 0x5c1   : > { %v1414_v43 = vsel %vm1228_vm12, %v1409_v41, -inf }
 0x5c2   : > { %1415 = vmax.xlane.f32.xlu2 %v1414_v43 }
 0x5c8   : > { %v1411_v44 = vpop.f32.mrf.mxu2 }
 0x5c9   : > { %v1417_v46 = vsel %vm1232_vm13, %v1411_v44, -inf }
 0x5ca   : > { %1418 = vmax.xlane.f32.xlu0 %v1417_v46 }
 0x5d7   : > { %v1195_v54 = vpop.f32.mrf.mxu0 }
 0x5d8   : > { %v1196_v59 = vadd.f32 %v3726_v1, %v1195_v54 }
 0x5da   : > { %v1577_v47 = vpack.c.bf16 %v1196_v59, %v3730_v4 }
 0x5dc   : > { %v1581_v48 = vshll.u32 %v1577_v47, 16  ;;  %v1579_v49 = vshrl.u32 %v1577_v47, 16 }
 0x5de   : > { %v1583_v50 = vrot.slane %v1581_v48, 1 }
 0x5df   : > { %v1197_v51 = vpop.f32.mrf.mxu0 }
 0x5e0   : > { %v3803_v52 = vor.u32 %v1583_v50, %v1579_v49 }
 0x5e2   : > { %1585 = vrot.lane.b32.xlu0 %v3803_v52, %s3327_s23 }
 0x5ea   : > { %1482 = vrot.lane.b32.xlu0 %v3733_v5, %s3334_s0 }
 0x635   : > { %v1416_v55 = vpop.xlane.xlu2 %1415 }
 0x636   : > { %v1420_v1 = vsub.f32 %v1409_v41, %v1416_v55 }
 0x638   : > { %v1422_v4 = vmul.f32 1.442695, %v1420_v1 }
 0x63a   : > { %2825 = vpow2.f32 %v1422_v4 }
 0x63d   : > { %v1419_v57 = vpop.xlane.xlu0 %1418 }
 0x63e   : > { %v1421_v58 = vsub.f32 %v1411_v44, %v1419_v57 }
 0x640   : > { %v2826_v60 = vpop.eup %2825  ;;  %v1424_v62 = vmul.f32 1.442695, %v1421_v58 }
 0x641   : > { %v1426_v63 = vsel %vm1228_vm12, %v2826_v60, 0.0 }
 0x642   : > { %2827 = vpow2.f32 %v1424_v62  ;;  %1427 = vadd.xlane.f32.xlu1 %v1426_v63 }
 0x648   : > { %v2828_v0 = vpop.eup %2827 }
 0x649   : > { %v1429_v2 = vsel %vm1232_vm13, %v2828_v0, 0.0 }
 0x64a   : > { %1430 = vadd.xlane.f32.xlu2 %v1429_v2 }
 0x654   : > { %v1586_v3 = vpop.permute.xlu0 %1585 }
 0x655   : > { %v1591_v6 = vsel %vm1207_vm11, %v1586_v3, 0 }
 0x656   : > { %1600 = vmatpush.bf16.xpose.msra.mxu1 %v1591_v6 }
 0x65b   : > { %1437 = vrot.lane.b32.xlu1 %v3733_v5, %s3335_s8 }
 0x65c   : > { %v1483_v13 = vpop.permute.xlu0 %1482 }
 0x662   : > { %1484 = vrot.lane.b32.xlu2 %v3733_v5, %s3336_s15 }
 0x6b5   : > { %v1428_v8 = vpop.xlane.xlu1 %1427 }
 0x6bd   : > { %v1431_v7 = vpop.xlane.xlu2 %1430 }
 0x6be   : > { %2829 = vrcp.f32 %v1431_v7 }
 0x6bf   : > { %2831 = vrcp.f32 %v1428_v8 }
 0x6c4   : > { %v2830_v11 = vpop.eup %2829 }
 0x6c5   : > { %v1485_v9 = vpop.permute.xlu2 %1484  ;;  %v2832_v12 = vpop.eup %2831  ;;  %v1435_v15 = vmul.f32 %v2830_v11, %v2828_v0 }
 0x6c6   : > { %v1490_v10 = vsel %vm1207_vm11, %v1485_v9, 0  ;;  %v1434_v18 = vmul.f32 %v2832_v12, %v2826_v60 }
 0x6c7   : > { %1499 = vmatpush.bf16.xpose.msra.mxu3 %v1490_v10 }
 0x6c8   : > { %v1436_v20 = vpack.c.bf16 %v1435_v15, %v1434_v18 }
 0x6cd   : > { %v1438_v16 = vpop.permute.xlu1 %1437 }
 0x6ce   : > { %v1443_v17 = vand.u32 %v1438_v16, %v3761_v42  ;;  %2590 = vmatmul.msk.bf16.vlgmr.msra.gmra.mxu3 %vm1207_vm11, %v1483_v13 }
 0x6d0   : > { %1452 = vmatpush.bf16.msrb.mxu0 %v1443_v17 }
 0x6d3   : > { %2588 = vmatmul.msk.bf16.vlgmr.msrb.gmra.mxu0 %vm1228_vm12, %v1436_v20 }
 0x750   : > { %v1454_v21 = vpop.f32.mrf.mxu0 }
 0x751   : > { %v1501_v41 = vpop.f32.mrf.mxu3 }
 0x752   : > { %v1506_v44 = vsel %vm1228_vm12, %v1501_v41, -inf }
 0x758   : > { %v1456_v22 = vpop.f32.mrf.mxu0 }
 0x759   : > { %v1459_v23 = vpack.c.bf16 %v1456_v22, %v1454_v21  ;;  %v1503_v54 = vpop.f32.mrf.mxu3 }
 0x75a   : > { %v1509_v48 = vsel %vm1232_vm13, %v1503_v54, -inf }
 0x75b   : > { %2589 = vmatmul.msk.bf16.vlgmr.msrb.gmra.mxu1 %vm1207_vm11, %v1459_v23 }
 0x75c   : > { %1733 = vmatpush.bf16.msrb.mxu1 %v3777_v61 }
 0x76b   : > { %2593 = vmatmul.msk.bf16.vlgmr.msra.gmra.mxu1 %vm1207_vm11, %v3803_v52 }
 0x76c   : > { %1837 = vmatpush.bf16.msra.mxu1 %v1464_v56 }
 0x7d8   : > { %v1475_v24 = vpop.f32.mrf.mxu1 }
 0x7d9   : > { %v3827_v25 = vadd.f32 %v1475_v24, %v3795_v39 }
 0x7e0   : > { %v1477_v28 = vpop.f32.mrf.mxu1 }
 0x7e1   : > { %v3830_v29 = vadd.f32 %v1477_v28, %v1388_v27 }
 0x7e8   : > { %v1602_v30 = vpop.f32.mrf.mxu1 }
 0x7e9   : > { %v1607_v31 = vsel %vm1228_vm12, %v1602_v30, -inf }
 0x7ea   : > { %1608 = vmax.xlane.f32.xlu1 %v1607_v31 }
 0x7f0   : > { %v1604_v32 = vpop.f32.mrf.mxu1 }
 0x7f1   : > { %v1610_v61 = vsel %vm1232_vm13, %v1604_v32, -inf }
 0x7f2   : > { %1611 = vmax.xlane.f32.xlu0 %v1610_v61 }
 0x806   : > { %1630 = vrot.lane.b32.xlu0 %v3803_v52, %s3329_s13 }
 0x80e   : > { %1655 = vrot.lane.b32.xlu0 %v3803_v52, %s3328_s5  ;;  %s4088_s5 = scalar_lea.vmem [#allocation13], %s3620_s19 }
 0x816   : > { %1848 = vrot.lane.b32.xlu0 %v3803_v52, %s3336_s15 }
 0x81e   : > { %1759 = vrot.lane.b32.xlu0 %v3803_v52, %s3333_s28 }
 0x826   : > { %1757 = vrot.lane.b32.xlu0 %v3803_v52, %s3330_s25  ;;  %s4090_s25 = sld [smem:[#allocation39_spill]] (!%p2633_p3) }
 0x85d   : > { %v1609_v33 = vpop.xlane.xlu1 %1608 }
 0x85e   : > { %v1613_v34 = vsub.f32 %v1602_v30, %v1609_v33  ;;  %v1202_v30 = vld [vmem:[%s3652_s29 + $0xc] sm:$0xf]  ;;  %s4085_s29 = scalar_lea.vmem [#allocation10], %s3620_s19 }
 0x85f   : > { %v3870_v31 = vsel %vm1258_vm14, %v1202_v30, 0 }
 0x860   : > { %v1615_v35 = vmul.f32 1.442695, %v1613_v34  ;;  %1565 = vmatpush.bf16.msra.mxu0 %v3870_v31 }
 0x862   : > { %2833 = vpow2.f32 %v1615_v35 }
 0x865   : > { %v1612_v36 = vpop.xlane.xlu0 %1611 }
 0x866   : > { %v1614_v37 = vsub.f32 %v1604_v32, %v1612_v36 }
 0x868   : > { %v2834_v38 = vpop.eup %2833  ;;  %v1617_v39 = vmul.f32 1.442695, %v1614_v37 }
 0x869   : > { %v1619_v40 = vsel %vm1228_vm12, %v2834_v38, 0.0 }
 0x86a   : > { %2835 = vpow2.f32 %v1617_v39  ;;  %1620 = vadd.xlane.f32.xlu2 %v1619_v40 }
 0x870   : > { %v2836_v43 = vpop.eup %2835 }
 0x871   : > { %v1622_v46 = vsel %vm1232_vm13, %v2836_v43, 0.0 }
 0x872   : > { %1507 = vmax.xlane.f32.xlu2 %v1506_v44  ;;  %1623 = vadd.xlane.f32.xlu1 %v1622_v46 }
 0x878   : > { %v1631_v59 = vpop.permute.xlu0 %1630 }
 0x879   : > { %v1636_v47 = vand.u32 %v1631_v59, %v3761_v42 }
 0x87a   : > { %1510 = vmax.xlane.f32.xlu1 %v1509_v48 }
 0x87b   : > { %1645 = vmatpush.bf16.msrb.mxu3 %v1636_v47 }
 0x87f   : > { %1750 = vmatpush.bf16.msra.mxu3 %v3786_v14 }
 0x880   : > { %v1656_v50 = vpop.permute.xlu0 %1655 }
 0x881   : > { %v1661_v13 = vsel %vm1207_vm11, %v1656_v50, 0 }
 0x888   : > { %v1849_v62 = vpop.permute.xlu0 %1848 }
 0x889   : > { %v1854_v14 = vsel %vm1207_vm11, %v1849_v62, 0 }
 0x890   : > { %v1760_v20 = vpop.permute.xlu0 %1759 }
 0x891   : > { %v1765_v22 = vsel %vm1207_vm11, %v1760_v20, 0 }
 0x898   : > { %v1758_v28 = vpop.permute.xlu0 %1757 }
 0x8dd   : > { %v1621_v49 = vpop.xlane.xlu2 %1620 }
 0x8de   : > { %2837 = vrcp.f32 %v1621_v49 }
 0x8e4   : > { %v2838_v1 = vpop.eup %2837 }
 0x8e5   : > { %v1508_v51 = vpop.xlane.xlu2 %1507  ;;  %v1624_v53 = vpop.xlane.xlu1 %1623  ;;  %v1627_v57 = vmul.f32 %v2838_v1, %v2834_v38 }
 0x8e6   : > { %v1512_v55 = vsub.f32 %v1501_v41, %v1508_v51  ;;  %2839 = vrcp.f32 %v1624_v53 }
 0x8e8   : > { %v1514_v56 = vmul.f32 1.442695, %v1512_v55 }
 0x8ea   : > { %2841 = vpow2.f32 %v1514_v56 }
 0x8ec   : > { %v2840_v4 = vpop.eup %2839 }
 0x8ed   : > { %v1628_v58 = vmul.f32 %v2840_v4, %v2836_v43  ;;  %v1511_v60 = vpop.xlane.xlu1 %1510 }
 0x8ee   : > { %v1513_v63 = vsub.f32 %v1503_v54, %v1511_v60 }
 0x8ef   : > { %v1629_v0 = vpack.c.bf16 %v1628_v58, %v1627_v57 }
 0x8f0   : > { %v2842_v2 = vpop.eup %2841  ;;  %v1516_v3 = vmul.f32 1.442695, %v1513_v63 }
 0x8f1   : > { %2594 = vmatmul.msk.bf16.vlgmr.msrb.gmra.mxu3 %vm1228_vm12, %v1629_v0  ;;  %v1518_v6 = vsel %vm1228_vm12, %v2842_v2, 0.0 }
 0x8f2   : > { %2843 = vpow2.f32 %v1516_v3  ;;  %1863 = vmatpush.bf16.xpose.msrb.mxu3 %v1854_v14  ;;  %1519 = vadd.xlane.f32.xlu2 %v1518_v6 }
 0x8f8   : > { %v2844_v7 = vpop.eup %2843 }
 0x8f9   : > { %v1521_v8 = vsel %vm1232_vm13, %v2844_v7, 0.0 }
 0x8fa   : > { %1522 = vadd.xlane.f32.xlu1 %v1521_v8 }
 0x90a   : > { %1529 = vrot.lane.b32.xlu2 %v3733_v5, %s3337_s3 }
 0x912   : > { %1846 = vrot.lane.b32.xlu2 %v3803_v52, %s3334_s0 }
 0x913   : > { %1653 = vrot.lane.b32.xlu1 %v3803_v52, %s3326_s20 }
 0x965   : > { %v1520_v9 = vpop.xlane.xlu2 %1519 }
 0x966   : > { %2845 = vrcp.f32 %v1520_v9 }
 0x96c   : > { %v2846_v15 = vpop.eup %2845 }
 0x96d   : > { %v1530_v10 = vpop.permute.xlu2 %1529  ;;  %v1523_v11 = vpop.xlane.xlu1 %1522  ;;  %v1526_v17 = vmul.f32 %v2846_v15, %v2842_v2 }
 0x96e   : > { %v1535_v12 = vand.u32 %v1530_v10, %v3761_v42  ;;  %2847 = vrcp.f32 %v1523_v11 }
 0x970   : > { %1544 = vmatpush.bf16.msra.mxu2 %v1535_v12 }
 0x974   : > { %1670 = vmatpush.bf16.xpose.msrb.mxu2 %v1661_v13  ;;  %v2848_v16 = vpop.eup %2847  ;;  %v1647_v5 = vpop.f32.mrf.mxu3 }
 0x975   : > { %v1527_v18 = vmul.f32 %v2848_v16, %v2844_v7  ;;  %v1847_v27 = vpop.permute.xlu2 %1846 }
 0x977   : > { %v1528_v21 = vpack.c.bf16 %v1527_v18, %v1526_v17 }
 0x979   : > { %2591 = vmatmul.msk.bf16.vlgmr.msra.gmra.mxu2 %vm1228_vm12, %v1528_v21 }
 0x97c   : > { %1774 = vmatpush.bf16.xpose.msra.mxu2 %v1765_v22  ;;  %v1649_v23 = vpop.f32.mrf.mxu3 }
 0x97d   : > { %v1652_v24 = vpack.c.bf16 %v1649_v23, %v1647_v5  ;;  %v3901_v23 = vld [vmem:[%s4085_s29] ss:$0 sm:$0xff] }
 0x97f   : > { %2598 = vmatmul.msk.bf16.vlgmr.msra.gmra.mxu3 %vm1207_vm11, %v1652_v24 }
 0x985   : > { %v1654_v26 = vpop.permute.xlu1 %1653 }
 0x989   : > { %2595 = vmatmul.msk.bf16.vlgmr.msrb.gmra.mxu2 %vm1207_vm11, %v1654_v26 }
 0x98f   : > { %2602 = vmatmul.msk.bf16.vlgmr.msrb.gmra.mxu3 %vm1207_vm11, %v1847_v27 }
 0x999   : > { %2599 = vmatmul.msk.bf16.vlgmr.msra.gmra.mxu2 %vm1207_vm11, %v1758_v28 }
 0x9fc   : > { %v1546_v32 = vpop.f32.mrf.mxu2 }
 0xa02   : > { %v3873_v61 = vpop.f32.mrf.mxu3 }
 0xa04   : > { %v1548_v33 = vpop.f32.mrf.mxu2 }
 0xa05   : > { %v1551_v34 = vpack.c.bf16 %v1548_v33, %v1546_v32 }
 0xa07   : > { %2592 = vmatmul.msk.bf16.vlgmr.msra.gmra.mxu0 %vm1207_vm11, %v1551_v34 }
 0xa0a   : > { %v3876_v35 = vpop.f32.mrf.mxu3 }
 0xa0c   : > { %v1672_v36 = vpop.f32.mrf.mxu2 }
 0xa0d   : > { %v1677_v37 = vsel %vm1228_vm12, %v1672_v36, -inf }
 0xa0e   : > { %1678 = vmax.xlane.f32.xlu1 %v1677_v37 }
 0xa12   : > { %v1865_v38 = vpop.f32.mrf.mxu3 }
 0xa13   : > { %v1870_v39 = vsel %vm1228_vm12, %v1865_v38, -inf }
 0xa14   : > { %v1674_v40 = vpop.f32.mrf.mxu2  ;;  %1871 = vmax.xlane.f32.xlu0 %v1870_v39 }
 0xa15   : > { %v1680_v41 = vsel %vm1232_vm13, %v1674_v40, -inf }
 0xa16   : > { %1681 = vmax.xlane.f32.xlu2 %v1680_v41 }
 0xa1a   : > { %v1867_v43 = vpop.f32.mrf.mxu3 }
 0xa1b   : > { %v1873_v44 = vsel %vm1232_vm13, %v1867_v43, -inf }
 0xa1c   : > { %1874 = vmax.xlane.f32.xlu1 %v1873_v44  ;;  %v1776_v46 = vpop.f32.mrf.mxu2 }
 0xa1d   : > { %v1781_v54 = vsel %vm1228_vm12, %v1776_v46, -inf }
 0xa1e   : > { %1782 = vmax.xlane.f32.xlu2 %v1781_v54 }
 0xa24   : > { %v1778_v59 = vpop.f32.mrf.mxu2 }
 0xa25   : > { %v1784_v47 = vsel %vm1232_vm13, %v1778_v59, -inf }
 0xa26   : > { %1785 = vmax.xlane.f32.xlu0 %v1784_v47 }
 0xa3a   : > { %1700 = vrot.lane.b32.xlu0 %v3803_v52, %s3331_s10 }
 0xa42   : > { %1804 = vrot.lane.b32.xlu0 %v3803_v52, %s3335_s8 }
 0xa81   : > { %v1679_v48 = vpop.xlane.xlu1 %1678 }
 0xa82   : > { %v1683_v49 = vsub.f32 %v1672_v36, %v1679_v48 }
 0xa84   : > { %v1685_v50 = vmul.f32 1.442695, %v1683_v49  ;;  %v1567_v51 = vpop.f32.mrf.mxu0 }
 0xa85   : > { %v1572_v53 = vadd.f32 %v1567_v51, %v3827_v25 }
 0xa86   : > { %2849 = vpow2.f32 %v1685_v50 }
 0xa87   : > { %1574 = vst.msk [vmem:[#allocation2] sm:$0xff] %vm1073_vm4, %v1572_v53  ;;  %v1872_v25 = vpop.xlane.xlu0 %1871 }
 0xa88   : > { %v1876_v6 = vsub.f32 %v1865_v38, %v1872_v25 }
 0xa89   : > { %v1682_v55 = vpop.xlane.xlu2 %1681 }
 0xa8a   : > { %v1684_v56 = vsub.f32 %v1674_v40, %v1682_v55 }
 0xa8c   : > { %v2850_v1 = vpop.eup %2849  ;;  %v1687_v4 = vmul.f32 1.442695, %v1684_v56  ;;  %v1569_v57 = vpop.f32.mrf.mxu0 }
 0xa8d   : > { %v1573_v58 = vadd.f32 %v1569_v57, %v3830_v29  ;;  %v1689_v60 = vsel %vm1228_vm12, %v2850_v1, 0.0  ;;  %v1878_v29 = vmul.f32 1.442695, %v1876_v6 }
 0xa8e   : > { %2851 = vpow2.f32 %v1687_v4  ;;  %1690 = vadd.xlane.f32.xlu1 %v1689_v60  ;;  %v1937_v17 = vld [vmem:[#allocation2] sm:$0xff] }
 0xa8f   : > { %1576 = vst.msk [vmem:[#allocation2 + $0x8] sm:$0x1] %vm1575_vm5, %v1573_v58  ;;  %v1875_v62 = vpop.xlane.xlu1 %1874  ;;  %v1940_v22 = vadd.f32 %v1937_v17, %v3698_v19 }
 0xa90   : > { %v1877_v63 = vsub.f32 %v1867_v43, %v1875_v62 }
 0xa91   : > { %v1783_v0 = vpop.xlane.xlu2 %1782  ;;  %v3904_v24 = vadd.f32 %v3901_v23, %v1940_v22 }
 0xa92   : > { %v1880_v2 = vmul.f32 1.442695, %v1877_v63  ;;  %v1787_v3 = vsub.f32 %v1776_v46, %v1783_v0 }
 0xa93   : > { %v1952_v28 = vsel %vm1073_vm4, %v3904_v24, 0.0 }
 0xa94   : > { %v2852_v14 = vpop.eup %2851  ;;  %2853 = vpow2.f32 %v1880_v2  ;;  %v1789_v7 = vmul.f32 1.442695, %v1787_v3 }
 0xa95   : > { %v1692_v8 = vsel %vm1232_vm13, %v2852_v14, 0.0 }
 0xa96   : > { %2855 = vpow2.f32 %v1789_v7  ;;  %1693 = vadd.xlane.f32.xlu2 %v1692_v8 }
 0xa97   : > { %2857 = vpow2.f32 %v1878_v29 }
 0xa99   : > { %v1786_v9 = vpop.xlane.xlu0 %1785 }
 0xa9a   : > { %v2854_v10 = vpop.eup %2853  ;;  %v1788_v11 = vsub.f32 %v1778_v59, %v1786_v9 }
 0xa9b   : > { %v1885_v15 = vsel %vm1232_vm13, %v2854_v10, 0.0 }
 0xa9c   : > { %v2856_v12 = vpop.eup %2855  ;;  %v1791_v13 = vmul.f32 1.442695, %v1788_v11 }
 0xa9d   : > { %v1793_v16 = vsel %vm1228_vm12, %v2856_v12, 0.0  ;;  %v2858_v5 = vpop.eup %2857 }
 0xa9e   : > { %2859 = vpow2.f32 %v1791_v13  ;;  %1886 = vadd.xlane.f32.xlu2 %v1885_v15  ;;  %1794 = vadd.xlane.f32.xlu1 %v1793_v16  ;;  %v1882_v20 = vsel %vm1228_vm12, %v2858_v5, 0.0  ;;  %v2885_v13 = vld [vmem:[%s4082_s27 + $0x8] sm:$0xff]  ;;  %s4087_s27 = scalar_lea.vmem [#allocation12], %s3620_s19 }
 0xaa4   : > { %v2860_v18 = vpop.eup %2859 }
 0xaa5   : > { %v1796_v21 = vsel %vm1232_vm13, %v2860_v18, 0.0 }
 0xaa6   : > { %1883 = vadd.xlane.f32.xlu1 %v1882_v20  ;;  %1797 = vadd.xlane.f32.xlu2 %v1796_v21 }
 0xaac   : > { %v1701_v26 = vpop.permute.xlu0 %1700 }
 0xaad   : > { %v1706_v27 = vand.u32 %v1701_v26, %v3761_v42 }
 0xaae   : > { %1953 = vadd.xlane.f32.xlu2 %v1952_v28 }
 0xaaf   : > { %1715 = vmatpush.bf16.msrb.mxu0 %v1706_v27 }
 0xab4   : > { %v1805_v30 = vpop.permute.xlu0 %1804 }
 0xab5   : > { %v1810_v32 = vand.u32 %v1805_v30, %v3761_v42 }
 0xab7   : > { %1819 = vmatpush.bf16.msra.mxu0 %v1810_v32 }
 0xabf   : > { %1893 = vrot.lane.b32.xlu1 %v3803_v52, %s3337_s3 }
 0xb01   : > { %v1691_v19 = vpop.xlane.xlu1 %1690 }
 0xb02   : > { %2861 = vrcp.f32 %v1691_v19 }
 0xb08   : > { %v2862_v34 = vpop.eup %2861 }
 0xb09   : > { %v1694_v33 = vpop.xlane.xlu2 %1693  ;;  %v1697_v37 = vmul.f32 %v2862_v34, %v2850_v1 }
 0xb0a   : > { %2863 = vrcp.f32 %v1694_v33 }
 0xb10   : > { %v2864_v36 = vpop.eup %2863 }
 0xb11   : > { %v1698_v38 = vmul.f32 %v2864_v36, %v2852_v14  ;;  %v1887_v39 = vpop.xlane.xlu2 %1886  ;;  %v1795_v41 = vpop.xlane.xlu1 %1794 }
 0xb12   : > { %2865 = vrcp.f32 %v1795_v41  ;;  %v2646_v41 = vld [vmem:[%s3657_s7 + $0x8] sm:$0xff] }
 0xb13   : > { %v1699_v40 = vpack.c.bf16 %v1698_v38, %v1697_v37 }
 0xb15   : > { %2596 = vmatmul.msk.bf16.vlgmr.msrb.gmra.mxu0 %vm1228_vm12, %v1699_v40 }
 0xb16   : > { %1926 = vmatpush.bf16.msrb.mxu0 %v3870_v31 }
 0xb18   : > { %v2866_v44 = vpop.eup %2865 }
 0xb19   : > { %v1798_v43 = vpop.xlane.xlu2 %1797  ;;  %v1801_v46 = vmul.f32 %v2866_v44, %v2856_v12  ;;  %v1884_v47 = vpop.xlane.xlu1 %1883  ;;  %v2645_v44 = vld [vmem:[%s3657_s7] sm:$0xff]  ;;  %s4086_s7 = scalar_lea.vmem [#allocation11], %s3620_s19 }
 0xb1a   : > { %2867 = vrcp.f32 %v1798_v43 }
 0xb1b   : > { %2869 = vrcp.f32 %v1884_v47 }
 0xb1c   : > { %2871 = vrcp.f32 %v1887_v39 }
 0xb20   : > { %v2868_v52 = vpop.eup %2867 }
 0xb21   : > { %v1802_v54 = vmul.f32 %v2868_v52, %v2860_v18  ;;  %v2870_v48 = vpop.eup %2869 }
 0xb22   : > { %v2872_v49 = vpop.eup %2871  ;;  %v1890_v50 = vmul.f32 %v2870_v48, %v2858_v5  ;;  %v1954_v5 = vpop.xlane.xlu2 %1953 }
 0xb23   : > { %v1803_v59 = vpack.c.bf16 %v1802_v54, %v1801_v46  ;;  %v1891_v31 = vmul.f32 %v2872_v49, %v2854_v10  ;;  %v1961_v17 = vmul.f32 0.03125, %v1954_v5 }
 0xb25   : > { %2600 = vmatmul.msk.bf16.vlgmr.msra.gmra.mxu0 %vm1228_vm12, %v1803_v59  ;;  %v1892_v55 = vpack.c.bf16 %v1891_v31, %v1890_v50  ;;  %v1964_v21 = vsub.f32 %v3904_v24, %v1961_v17  ;;  %v2650_v17 = vld [vmem:[%s3662_s6 + $0x18] sm:$0xff] }
 0xb26   : > { %2152 = vmatpush.bf16.msra.mxu3 %v2650_v17 }
 0xb27   : > { %v1967_v26 = vmul.f32 %v1964_v21, %v1964_v21 }
 0xb29   : > { %v1970_v27 = vsel %vm1073_vm4, %v1967_v26, 0.0 }
 0xb31   : > { %v1894_v51 = vpop.permute.xlu1 %1893 }
 0xb32   : > { %v1899_v53 = vand.u32 %v1894_v51, %v3761_v42 }
 0xb34   : > { %1908 = vmatpush.bf16.msrb.mxu2 %v1899_v53 }
 0xb37   : > { %2603 = vmatmul.msk.bf16.vlgmr.msrb.gmra.mxu2 %vm1228_vm12, %v1892_v55 }
 0xb92   : > { %v1717_v56 = vpop.f32.mrf.mxu0 }
 0xb9a   : > { %v1719_v1 = vpop.f32.mrf.mxu0 }
 0xb9b   : > { %v1722_v4 = vpack.c.bf16 %v1719_v1, %v1717_v56 }
 0xb9d   : > { %2597 = vmatmul.msk.bf16.vlgmr.msrb.gmra.mxu1 %vm1207_vm11, %v1722_v4 }
 0xb9e   : > { %2064 = vmatpush.bf16.msrb.mxu1 %v2646_v41 }
 0xba2   : > { %v1821_v57 = vpop.f32.mrf.mxu0  ;;  %2065 = vmatpush.bf16.msrb.mxu1 %v2645_v44 }
 0xbaa   : > { %v1823_v58 = vpop.f32.mrf.mxu0 }
 0xbab   : > { %v1826_v60 = vpack.c.bf16 %v1823_v58, %v1821_v57 }
 0xbad   : > { %2601 = vmatmul.msk.bf16.vlgmr.msra.gmra.mxu1 %vm1207_vm11, %v1826_v60 }
 0xbba   : > { %v1910_v62 = vpop.f32.mrf.mxu2 }
 0xbc2   : > { %v1912_v63 = vpop.f32.mrf.mxu2 }
 0xbc3   : > { %v1915_v25 = vpack.c.bf16 %v1912_v63, %v1910_v62  ;;  %v2799_v62 = vld [vmem:[%s4086_s7] ss:$0 sm:$0xff] }
 0xbc5   : > { %2604 = vmatmul.msk.bf16.vlgmr.msrb.gmra.mxu0 %vm1207_vm11, %v1915_v25 }
 0xc1a   : > { %v1735_v42 = vpop.f32.mrf.mxu1 }
 0xc1b   : > { %v1753_v3 = vadd.f32 %v3873_v61, %v1735_v42 }
 0xc22   : > { %v1737_v0 = vpop.f32.mrf.mxu1 }
 0xc23   : > { %v1755_v29 = vadd.f32 %v3876_v35, %v1737_v0 }
 0xc2a   : > { %v1839_v2 = vpop.f32.mrf.mxu1 }
 0xc2b   : > { %v1844_v14 = vadd.f32 %v1839_v2, %v1753_v3  ;;  %v2800_v3 = vld [vmem:[%s4087_s27] ss:$0 sm:$0xff] }
 0xc32   : > { %v1841_v8 = vpop.f32.mrf.mxu1 }
 0xc33   : > { %v1845_v9 = vadd.f32 %v1841_v8, %v1755_v29 }
 0xc42   : > { %v1928_v6 = vpop.f32.mrf.mxu0 }
 0xc43   : > { %v1933_v7 = vadd.f32 %v1928_v6, %v1844_v14 }
 0xc45   : > { %1935 = vst.msk [vmem:[#allocation2 + $0x9] sm:$0xff] %vm1073_vm4, %v1933_v7 }
 0xc4a   : > { %v1930_v10 = vpop.f32.mrf.mxu0 }
 0xc4b   : > { %v1934_v11 = vadd.f32 %v1930_v10, %v1845_v9 }
 0xc4c   : > { %v1938_v12 = vld [vmem:[#allocation2 + $0x8] sm:$0xff] }
 0xc4d   : > { %1936 = vst.msk [vmem:[#allocation2 + $0x11] sm:$0x1] %vm1575_vm5, %v1934_v11  ;;  %v1941_v15 = vadd.f32 %v2885_v13, %v1938_v12 }
 0xc4f   : > { %v3928_v61 = vadd.f32 %v3901_v23, %v1941_v15 }
 0xc51   : > { %v1955_v16 = vsel %vm1073_vm4, %v3928_v61, 0.0 }
 0xc52   : > { %1956 = vadd.xlane.f32.xlu0 %v1955_v16 }
 0xc54   : > { %v1939_v35 = vld [vmem:[#allocation2 + $0x10] sm:$0x3] }
 0xc55   : > { %v1942_v18 = vadd.f32 %v1939_v35, %v3769_v45 }
 0xc57   : > { %v3934_v20 = vadd.f32 %v3901_v23, %v1942_v18  ;;  %v2649_v18 = vld [vmem:[%s3662_s6 + $0x10] sm:$0xff] }
 0xc58   : > { %2153 = vmatpush.bf16.msra.mxu3 %v2649_v18 }
 0xc59   : > { %v1958_v22 = vsel %vm1080_vm0, %v3934_v20, 0.0 }
 0xc5a   : > { %1959 = vadd.xlane.f32.xlu2 %v1958_v22  ;;  %v2801_v22 = vld [vmem:[%s4088_s5] ss:$0 sm:$0xff] }
 0xc62   : > { %1971 = vadd.xlane.f32.xlu2 %v1970_v27  ;;  %v2647_v27 = vld [vmem:[%s3662_s6] sm:$0xff] }
 0xcc5   : > { %v1957_v28 = vpop.xlane.xlu0 %1956 }
 0xcc6   : > { %v1962_v30 = vmul.f32 0.03125, %v1957_v28 }
 0xcc8   : > { %v1965_v32 = vsub.f32 %v3928_v61, %v1962_v30 }
 0xcca   : > { %v1968_v19 = vmul.f32 %v1965_v32, %v1965_v32 }
 0xccc   : > { %v1973_v45 = vsel %vm1073_vm4, %v1968_v19, 0.0 }
 0xccd   : > { %1974 = vadd.xlane.f32.xlu1 %v1973_v45  ;;  %v1960_v23 = vpop.xlane.xlu2 %1959 }
 0xcce   : > { %v1963_v33 = vmul.f32 0.03125, %v1960_v23 }
 0xcd0   : > { %v1966_v34 = vsub.f32 %v3934_v20, %v1963_v33 }
 0xcd2   : > { %v1969_v36 = vmul.f32 %v1966_v34, %v1966_v34 }
 0xcd4   : > { %v1976_v37 = vsel %vm1080_vm0, %v1969_v36, 0.0 }
 0xcd5   : > { %1977 = vadd.xlane.f32.xlu2 %v1976_v37  ;;  %v1972_v38 = vpop.xlane.xlu2 %1971 }
 0xcd6   : > { %v1979_v39 = vmul.f32 0.03125, %v1972_v38 }
 0xcd8   : > { %v1982_v40 = vadd.f32 1e-05, %v1979_v39 }
 0xcda   : > { %2873 = vrsqrt.f32 %v1982_v40  ;;  %vm1991_vm7 = vweird.f32 %v1982_v40 }
 0xce0   : > { %v2874_v43 = vpop.eup %2873 }
 0xce1   : > { %v1986_v52 = vmul.f32 %v2874_v43, %v1982_v40  ;;  %vm1992_vm6 = vweird.f32 %v2874_v43 }
 0xce2   : > { %vm1993_vm8 = vmor %vm1991_vm7, %vm1992_vm6 }
 0xce3   : > { %v1987_v46 = vmul.f32 %v2874_v43, %v1986_v52 }
 0xce5   : > { %v1988_v48 = vmul.f32 0.5, %v1987_v46 }
 0xce7   : > { %v1989_v49 = vsub.f32 1.5, %v1988_v48 }
 0xce9   : > { %v1990_v55 = vmul.f32 %v2874_v43, %v1989_v49 }
 0xceb   : > { %v1994_v4 = vsel %vm1993_vm8, %v2874_v43, %v1990_v55 }
 0xcec   : > { %v2015_v63 = vmul.f32 %v1994_v4, %v1964_v21  ;;  %v2648_v21 = vld [vmem:[%s3662_s6 + $0x8] sm:$0xff]  ;;  %s4089_s6 = scalar_lea.vmem [#allocation14], %s3620_s19 }
 0xced   : > { %2154 = vmatpush.bf16.msra.mxu3 %v2648_v21 }
 0xcee   : > { %v2021_v14 = vmul.f32 %v2799_v62, %v2015_v63  ;;  %v2802_v63 = vld [vmem:[%s4089_s6] ss:$0 sm:$0xff] }
 0xcf0   : > { %v2027_v9 = vadd.f32 %v2800_v3, %v2021_v14 }
 0xcf1   : > { %2155 = vmatpush.bf16.msra.mxu3 %v2647_v27 }
 0xd40   : > { %v1975_v54 = vpop.xlane.xlu1 %1974 }
 0xd41   : > { %v1980_v59 = vmul.f32 0.03125, %v1975_v54 }
 0xd43   : > { %v1983_v47 = vadd.f32 1e-05, %v1980_v59 }
 0xd45   : > { %2875 = vrsqrt.f32 %v1983_v47  ;;  %vm2001_vm10 = vweird.f32 %v1983_v47 }
 0xd48   : > { %v1978_v50 = vpop.xlane.xlu2 %1977 }
 0xd49   : > { %v1981_v51 = vmul.f32 0.03125, %v1978_v50 }
 0xd4b   : > { %v2876_v53 = vpop.eup %2875  ;;  %v1984_v31 = vadd.f32 1e-05, %v1981_v51 }
 0xd4c   : > { %v1996_v56 = vmul.f32 %v2876_v53, %v1983_v47  ;;  %vm2002_vm9 = vweird.f32 %v2876_v53 }
 0xd4d   : > { %2877 = vrsqrt.f32 %v1984_v31  ;;  %vm2003_vm11 = vmor %vm2001_vm10, %vm2002_vm9  ;;  %vm2011_vm13 = vweird.f32 %v1984_v31 }
 0xd4e   : > { %v1997_v1 = vmul.f32 %v2876_v53, %v1996_v56 }
 0xd50   : > { %v1998_v57 = vmul.f32 0.5, %v1997_v1 }
 0xd52   : > { %v1999_v58 = vsub.f32 1.5, %v1998_v57 }
 0xd53   : > { %v2878_v60 = vpop.eup %2877 }
 0xd54   : > { %v2000_v25 = vmul.f32 %v2876_v53, %v1999_v58  ;;  %v2006_v42 = vmul.f32 %v2878_v60, %v1984_v31  ;;  %vm2012_vm12 = vweird.f32 %v2878_v60 }
 0xd55   : > { %vm2013_vm14 = vmor %vm2011_vm13, %vm2012_vm12 }
 0xd56   : > { %v2004_v0 = vsel %vm2003_vm11, %v2876_v53, %v2000_v25  ;;  %v2007_v2 = vmul.f32 %v2878_v60, %v2006_v42 }
 0xd57   : > { %v2016_v6 = vmul.f32 %v2004_v0, %v1965_v32 }
 0xd58   : > { %v2008_v7 = vmul.f32 0.5, %v2007_v2 }
 0xd59   : > { %v2022_v8 = vmul.f32 %v2799_v62, %v2016_v6 }
 0xd5a   : > { %v2009_v29 = vsub.f32 1.5, %v2008_v7 }
 0xd5b   : > { %v2028_v10 = vadd.f32 %v2800_v3, %v2022_v8 }
 0xd5c   : > { %v2010_v11 = vmul.f32 %v2878_v60, %v2009_v29 }
 0xd5d   : > { %v2030_v12 = vpack.c.bf16 %v2028_v10, %v2027_v9 }
 0xd5e   : > { %v2014_v13 = vsel %vm2013_vm14, %v2878_v60, %v2010_v11 }
 0xd5f   : > { %2613 = vmatmul.msk.bf16.vlgmr.msrb.gmra.mxu1 %vm1073_vm4, %v2030_v12  ;;  %v2017_v15 = vmul.f32 %v2014_v13, %v1966_v34 }
 0xd61   : > { %v2023_v16 = vmul.f32 %v2799_v62, %v2017_v15 }
 0xd63   : > { %v2029_v5 = vadd.f32 %v2800_v3, %v2023_v16 }
 0xd65   : > { %v2031_v35 = vpack.c.bf16 %v2029_v5, %v2029_v5 }
 0xd6f   : > { %2614 = vmatmul.msk.bf16.gmra.mxu1 %vm1073_vm4, %v2031_v35 }
 0xddc   : > { %v2067_v26 = vpop.f32.mrf.mxu1 }
 0xddd   : > { %v2068_v28 = vadd.f32 %v2801_v22, %v2067_v26 }
 0xddf   : > { %v2076_v30 = vmul.f32 %v2068_v28, %v2068_v28 }
 0xde1   : > { %v2079_v32 = vmul.f32 %v2076_v30, %v2068_v28 }
 0xde3   : > { %v2082_v19 = vmul.f32 0.044715, %v2079_v32 }
 0xde4   : > { %v2069_v45 = vpop.f32.mrf.mxu1 }
 0xde5   : > { %v2085_v23 = vadd.f32 %v2082_v19, %v2068_v28  ;;  %v2070_v33 = vadd.f32 %v2801_v22, %v2069_v45 }
 0xde7   : > { %v2088_v34 = vmul.f32 0.7978846, %v2085_v23  ;;  %v2077_v36 = vmul.f32 %v2070_v33, %v2070_v33 }
 0xde9   : > { %v2080_v37 = vmul.f32 %v2077_v36, %v2070_v33  ;;  %2879 = vtanh.f32 %v2088_v34 }
 0xdeb   : > { %v2083_v38 = vmul.f32 0.044715, %v2080_v37 }
 0xdec   : > { %v2072_v39 = vpop.f32.mrf.mxu1 }
 0xded   : > { %v2086_v40 = vadd.f32 %v2083_v38, %v2070_v33  ;;  %v2073_v41 = vadd.f32 %v2801_v22, %v2072_v39 }
 0xdef   : > { %v2089_v43 = vmul.f32 0.7978846, %v2086_v40  ;;  %v2078_v44 = vmul.f32 %v2073_v41, %v2073_v41  ;;  %v2880_v52 = vpop.eup %2879 }
 0xdf0   : > { %v2094_v59 = vadd.f32 1.0, %v2880_v52 }
 0xdf1   : > { %2881 = vtanh.f32 %v2089_v43  ;;  %v2081_v46 = vmul.f32 %v2078_v44, %v2073_v41 }
 0xdf2   : > { %v2097_v51 = vmul.f32 0.5, %v2094_v59 }
 0xdf3   : > { %v2084_v54 = vmul.f32 0.044715, %v2081_v46 }
 0xdf4   : > { %v2074_v47 = vpop.f32.mrf.mxu1  ;;  %v2100_v55 = vmul.f32 %v2097_v51, %v2068_v28 }
 0xdf5   : > { %v2087_v48 = vadd.f32 %v2084_v54, %v2073_v41 }
 0xdf7   : > { %v2882_v49 = vpop.eup %2881  ;;  %v2090_v50 = vmul.f32 0.7978846, %v2087_v48 }
 0xdf8   : > { %v2095_v53 = vadd.f32 1.0, %v2882_v49 }
 0xdf9   : > { %2883 = vtanh.f32 %v2090_v50 }
 0xdfa   : > { %v2098_v31 = vmul.f32 0.5, %v2095_v53 }
 0xdfc   : > { %v2101_v56 = vmul.f32 %v2098_v31, %v2070_v33 }
 0xdfe   : > { %v2103_v1 = vpack.c.bf16 %v2101_v56, %v2100_v55 }
 0xdff   : > { %v2884_v4 = vpop.eup %2883 }
 0xe00   : > { %2631 = vmatmul.msk.bf16.vlgmr.msra.gmra.mxu3 %vm2141_vm15, %v2103_v1  ;;  %v2096_v57 = vadd.f32 1.0, %v2884_v4 }
 0xe02   : > { %v2099_v58 = vmul.f32 0.5, %v2096_v57 }
 0xe04   : > { %v2102_v60 = vmul.f32 %v2099_v58, %v2073_v41 }
 0xe06   : > { %v2104_v62 = vpack.c.bf16 %v2102_v60, %v2102_v60 }
 0xe10   : > { %2632 = vmatmul.msk.bf16.gmra.mxu3 %vm2141_vm15, %v2104_v62 }
 0xe83   : > { %v2157_v25 = vpop.f32.mrf.mxu3 }
 0xe84   : > { %v2158_v42 = vadd.f32 %v2802_v63, %v2157_v25 }
 0xe86   : > { %v2166_v0 = vadd.f32 %v2158_v42, %v3904_v24 }
 0xe8b   : > { %v2159_v2 = vpop.f32.mrf.mxu3 }
 0xe8c   : > { %v2160_v3 = vadd.f32 %v2802_v63, %v2159_v2 }
 0xe8e   : > { %v2167_v14 = vadd.f32 %v2160_v3, %v3928_v61 }
 0xe93   : > { %v2162_v6 = vpop.f32.mrf.mxu3 }
 0xe94   : > { %v2163_v7 = vadd.f32 %v2802_v63, %v2162_v6 }
 0xe96   : > { %v2168_v8 = vadd.f32 %v2163_v7, %v3934_v20 }
 0xe97   : > { %2172 = sbr.rel (%p2633_p3) target bundleno = 3743 (0xe9f), region = 152 }
 0xe9b   : > { %v2164_v29 = vpop.f32.mrf.mxu3 }
 0xe9c   : > { %2173 = vst.msk [vmem:[%s4090_s25] sm:$0xff] %vm1073_vm4, %v2166_v0 }
 0xe9d   : > { %2174 = vst.msk [vmem:[%s4090_s25 + $0x8] sm:$0xff] %vm1073_vm4, %v2167_v14 }
 0xe9e   : > { %2175 = vst.msk [vmem:[%s4090_s25 + $0x10] sm:$0x3] %vm1080_vm0, %v2168_v8 }
 0xe9f PF: > { %p2634_p4 = scmp.ne.s32.totalorder %s3312_s21, 1 }
 0xea0   : > { %s4091_s8 = sld [smem:[#allocation39_spill]] (!%p2634_p4) }
 0xea1   : > { %2179 = sbr.rel (%p2634_p4) target bundleno = 4035 (0xfc3), region = 156 }
 0xea6   : > { %v2182_v24 = vsel %vm1073_vm4, %v2166_v0, 0.0  ;;  %v2188_v61 = vsel %vm1080_vm0, %v2168_v8, 0.0  ;;  %v2185_v20 = vsel %vm1073_vm4, %v2167_v14, 0.0  ;;  %v2886_v46 = vld [vmem:[#allocation15] ss:$0 sm:$0xff] }
 0xea7   : > { %2183 = vadd.xlane.f32.xlu0 %v2182_v24  ;;  %2189 = vadd.xlane.f32.xlu1 %v2188_v61  ;;  %v2887_v48 = vld [vmem:[#allocation16] ss:$0 sm:$0xff] }
 0xeaf   : > { %2186 = vadd.xlane.f32.xlu0 %v2185_v20 }
 0xf1a   : > { %v2184_v9 = vpop.xlane.xlu0 %2183  ;;  %v2190_v13 = vpop.xlane.xlu1 %2189 }
 0xf1b   : > { %v2191_v10 = vmul.f32 0.03125, %v2184_v9  ;;  %v2193_v35 = vmul.f32 0.03125, %v2190_v13 }
 0xf1d   : > { %v2194_v11 = vsub.f32 %v2166_v0, %v2191_v10  ;;  %v2196_v18 = vsub.f32 %v2168_v8, %v2193_v35 }
 0xf1f   : > { %v2197_v12 = vmul.f32 %v2194_v11, %v2194_v11  ;;  %v2199_v26 = vmul.f32 %v2196_v18, %v2196_v18 }
 0xf21   : > { %v2200_v15 = vsel %vm1073_vm4, %v2197_v12, 0.0  ;;  %v2206_v27 = vsel %vm1080_vm0, %v2199_v26, 0.0 }
 0xf22   : > { %2201 = vadd.xlane.f32.xlu1 %v2200_v15  ;;  %v2187_v16 = vpop.xlane.xlu0 %2186 }
 0xf23   : > { %v2192_v5 = vmul.f32 0.03125, %v2187_v16 }
 0xf25   : > { %v2195_v17 = vsub.f32 %v2167_v14, %v2192_v5 }
 0xf27   : > { %v2198_v21 = vmul.f32 %v2195_v17, %v2195_v17 }
 0xf29   : > { %v2203_v22 = vsel %vm1073_vm4, %v2198_v21, 0.0 }
 0xf2a   : > { %2204 = vadd.xlane.f32.xlu2 %v2203_v22 }
 0xf32   : > { %2207 = vadd.xlane.f32.xlu2 %v2206_v27 }
 0xf95   : > { %v2202_v28 = vpop.xlane.xlu1 %2201 }
 0xf96   : > { %v2209_v30 = vmul.f32 0.03125, %v2202_v28 }
 0xf98   : > { %v2212_v32 = vadd.f32 1e-05, %v2209_v30 }
 0xf9a   : > { %2888 = vrsqrt.f32 %v2212_v32  ;;  %vm2221_vm2 = vweird.f32 %v2212_v32 }
 0xf9d   : > { %v2205_v19 = vpop.xlane.xlu2 %2204 }
 0xf9e   : > { %v2210_v45 = vmul.f32 0.03125, %v2205_v19 }
 0xfa0   : > { %v2889_v23 = vpop.eup %2888  ;;  %v2213_v33 = vadd.f32 1e-05, %v2210_v45 }
 0xfa1   : > { %v2216_v34 = vmul.f32 %v2889_v23, %v2212_v32  ;;  %vm2222_vm1 = vweird.f32 %v2889_v23 }
 0xfa2   : > { %2890 = vrsqrt.f32 %v2213_v33  ;;  %vm2223_vm3 = vmor %vm2221_vm2, %vm2222_vm1  ;;  %vm2231_vm6 = vweird.f32 %v2213_v33 }
 0xfa3   : > { %v2217_v36 = vmul.f32 %v2889_v23, %v2216_v34 }
 0xfa5   : > { %v2218_v37 = vmul.f32 0.5, %v2217_v36  ;;  %v2208_v38 = vpop.xlane.xlu2 %2207 }
 0xfa6   : > { %v2211_v39 = vmul.f32 0.03125, %v2208_v38 }
 0xfa7   : > { %v2219_v40 = vsub.f32 1.5, %v2218_v37 }
 0xfa8   : > { %v2891_v41 = vpop.eup %2890  ;;  %v2214_v43 = vadd.f32 1e-05, %v2211_v39 }
 0xfa9   : > { %v2220_v44 = vmul.f32 %v2889_v23, %v2219_v40  ;;  %v2226_v52 = vmul.f32 %v2891_v41, %v2213_v33  ;;  %vm2232_vm5 = vweird.f32 %v2891_v41 }
 0xfaa   : > { %2892 = vrsqrt.f32 %v2214_v43  ;;  %vm2233_vm7 = vmor %vm2231_vm6, %vm2232_vm5  ;;  %vm2241_vm9 = vweird.f32 %v2214_v43 }
 0xfab   : > { %v2224_v54 = vsel %vm2223_vm3, %v2889_v23, %v2220_v44  ;;  %v2227_v59 = vmul.f32 %v2891_v41, %v2226_v52 }
 0xfac   : > { %v2245_v47 = vmul.f32 %v2224_v54, %v2194_v11 }
 0xfad   : > { %v2228_v49 = vmul.f32 0.5, %v2227_v59 }
 0xfae   : > { %v2251_v50 = vmul.f32 %v2886_v46, %v2245_v47 }
 0xfaf   : > { %v2229_v51 = vsub.f32 1.5, %v2228_v49 }
 0xfb0   : > { %v2893_v53 = vpop.eup %2892  ;;  %v2257_v31 = vadd.f32 %v2887_v48, %v2251_v50 }
 0xfb1   : > { %v2230_v55 = vmul.f32 %v2891_v41, %v2229_v51  ;;  %v2236_v56 = vmul.f32 %v2893_v53, %v2214_v43  ;;  %vm2242_vm8 = vweird.f32 %v2893_v53 }
 0xfb2   : > { %2260 = vst.msk [vmem:[%s4091_s8] sm:$0xff] %vm1073_vm4, %v2257_v31  ;;  %vm2243_vm10 = vmor %vm2241_vm9, %vm2242_vm8 }
 0xfb3   : > { %v2234_v1 = vsel %vm2233_vm7, %v2891_v41, %v2230_v55  ;;  %v2237_v4 = vmul.f32 %v2893_v53, %v2236_v56 }
 0xfb4   : > { %v2246_v57 = vmul.f32 %v2234_v1, %v2195_v17 }
 0xfb5   : > { %v2238_v58 = vmul.f32 0.5, %v2237_v4 }
 0xfb6   : > { %v2252_v60 = vmul.f32 %v2886_v46, %v2246_v57 }
 0xfb7   : > { %v2239_v62 = vsub.f32 1.5, %v2238_v58 }
 0xfb8   : > { %v2258_v63 = vadd.f32 %v2887_v48, %v2252_v60 }
 0xfb9   : > { %v2240_v25 = vmul.f32 %v2893_v53, %v2239_v62 }
 0xfba   : > { %2261 = vst.msk [vmem:[%s4091_s8 + $0x8] sm:$0xff] %vm1073_vm4, %v2258_v63 }
 0xfbb   : > { %v2244_v42 = vsel %vm2243_vm10, %v2893_v53, %v2240_v25 }
 0xfbc   : > { %v2247_v0 = vmul.f32 %v2244_v42, %v2196_v18 }
 0xfbe   : > { %v2253_v2 = vmul.f32 %v2886_v46, %v2247_v0 }
 0xfc0   : > { %v2259_v3 = vadd.f32 %v2887_v48, %v2253_v2 }
 0xfc2   : > { %2262 = vst.msk [vmem:[%s4091_s8 + $0x10] sm:$0x3] %vm1080_vm0, %v2259_v3 }
 0xfc3 PF: > { %s32_s22 = sadd.s32 1, %s3320_s22   ;;  %s4092_s23 = sld [smem:[#allocation23_spill]] }
 0xfc4   : > { %p29_p5 = scmp.ge.s32.totalorder %s32_s22, 4   ;;  %s4093_s20 = sld [smem:[#allocation25_spill]] }
 0xfc5   : > { %s4094_s7 = sld [smem:[#allocation24_spill]]  ;;  %s4095_s0 = smov %s3304_s30 }
 0xfc6   : > { %s4097_s21 = smov %s3316_s1 }
 0xfc7   :  { %31 = sbr.rel (!%p29_p5) target bundleno = 20 (0x14), region = 255 }
 0xfc9   : > { %s4096_s30 = smov %s4092_s23 }
 0xfcb   : > { %s4098_s1 = smov %s4094_s7 }
 0xfcc   :  { %2284 = vsyncpa [#allocation4], 1 }
 0xfcd   :  { %2286 = vsyncpa [#allocation4 + $0x1], 1 }
 0xfce   :  { %2287 = vsyncpa [#allocation6], 1 }
 0xfcf   :  { %2288 = vsyncpa [#allocation17], 1 }

// kernel: mm_transformer_base_forward.4
= control target key start
LH: loop header
LB: loop body
LE: loop exit
PB: predicated region body
PF: predicated region fallthrough
CT: control target
= control target key end

     0   :  { %s4032_s0 = inlined_call_operand.vmem [shape: f32[1,16,40], index: 0, kind: input, shape index: {}]   ;;  %s4033_s1 = inlined_call_operand.vmem [shape: bf16[40,32], index: 1, kind: input, shape index: {}]   ;;  %s4034_s2 = inlined_call_operand.vmem [shape: f32[1,32], index: 2, kind: input, shape index: {}]   ;;  %s4035_s3 = inlined_call_operand.hbm [shape: f32[1,32], index: 3, kind: input, shape index: {}]   ;;  %s4036_s4 = inlined_call_operand.hbm [shape: f32[9,32], index: 4, kind: input, shape index: {}]   ;;  %s4037_s5 = inlined_call_operand.hbm [shape: f32[2,1,32], index: 5, kind: input, shape index: {}]   ;;  %s4038_s6 = inlined_call_operand.hbm [shape: f32[2,1,32], index: 6, kind: input, shape index: {}]   ;;  %s4039_s7 = inlined_call_operand.vmem [shape: bf16[2,32,96], index: 7, kind: input, shape index: {}]   ;;  %s4040_s8 = inlined_call_operand.hbm [shape: f32[2,1,96], index: 8, kind: input, shape index: {}]   ;;  %s4041_s9 = inlined_call_operand.vmem [shape: bf16[2,32,32], index: 9, kind: input, shape index: {}]   ;;  %s4042_s10 = inlined_call_operand.hbm [shape: f32[2,1,32], index: 10, kind: input, shape index: {}]   ;;  %s4043_s11 = inlined_call_operand.hbm [shape: f32[2,1,32], index: 11, kind: input, shape index: {}]   ;;  %s4044_s12 = inlined_call_operand.hbm [shape: f32[2,1,32], index: 12, kind: input, shape index: {}]   ;;  %s4045_s13 = inlined_call_operand.vmem [shape: bf16[2,32,64], index: 13, kind: input, shape index: {}]   ;;  %s4046_s14 = inlined_call_operand.hbm [shape: f32[2,1,64], index: 14, kind: input, shape index: {}]   ;;  %s4047_s15 = inlined_call_operand.vmem [shape: bf16[2,64,32], index: 15, kind: input, shape index: {}]   ;;  %s4048_s16 = inlined_call_operand.hbm [shape: f32[2,1,32], index: 16, kind: input, shape index: {}]   ;;  %s4049_s17 = inlined_call_operand.hbm [shape: f32[1,32], index: 17, kind: input, shape index: {}]   ;;  %s4050_s18 = inlined_call_operand.hbm [shape: f32[1,32], index: 18, kind: input, shape index: {}]   ;;  %s4051_s19 = inlined_call_operand.vmem [shape: f32[1,18,32], index: 19, kind: output, shape index: {}]  }
   0x1   :  { %4062 = sst [smem:[#allocation27_spill]] %s4032_s0 }
   0x2   :  { %4063 = sst [smem:[#allocation28_spill]] %s4033_s1 }
   0x3   :  { %4064 = sst [smem:[#allocation29_spill]] %s4034_s2 }
   0x4   :  { %4065 = sst [smem:[#allocation30_spill]] %s4035_s3 }
   0x5   :  { %4066 = sst [smem:[#allocation31_spill]] %s4036_s4 }
   0x6   :  { %4067 = sst [smem:[#allocation32_spill]] %s4037_s5 }
   0x7   :  { %4068 = sst [smem:[#allocation33_spill]] %s4038_s6 }
   0x8   :  { %4069 = sst [smem:[#allocation34_spill]] %s4039_s7 }
   0x9   :  { %4070 = sst [smem:[#allocation35_spill]] %s4040_s8 }
   0xa   :  { %4071 = sst [smem:[#allocation36_spill]] %s4041_s9 }
   0xb   :  { %4072 = sst [smem:[#allocation37_spill]] %s4045_s13 }
   0xc   :  { %4073 = sst [smem:[#allocation38_spill]] %s4047_s15 }
   0xd   :  { %4074 = sst [smem:[#allocation39_spill]] %s4051_s19 }
   0xe   :  { %24 = vsyncpa [#allocation4], 0 }
   0xf   :  { %25 = vsyncpa [#allocation6], 0 }
  0x10   :  { %26 = vsyncpa [#allocation17], 0  ;;  %s3457_s0 = smov 0   ;;  %s3459_s30 = smov 0  }
  0x11   :  { %s3461_s20 = smov 0   ;;  %s3463_s21 = smov 0  }
  0x12   :  { %s3465_s1 = smov 0   ;;  %s3467_s22 = smov 0  }
  0x13 LB: > { %4075 = sst [smem:[#allocation23_spill]] %s3325_s20  ;;  %s4054_s2 = sadd.s32 4294967295, %s3337_s22   ;;  %s3337_s22 = sphi %s3467_s22, %s32_s22   ;;  %s3333_s1 = sphi %s3465_s1, %s4119_s1   ;;  %s3329_s21 = sphi %s3463_s21, %s4118_s21   ;;  %s3325_s20 = sphi %s3461_s20, %s4114_s20   ;;  %s3321_s30 = sphi %s3459_s30, %s4117_s30   ;;  %s3317_s0 = sphi %s3457_s0, %s4116_s0  }
  0x14   : > { %4076 = sst [smem:[#allocation24_spill]] %s3329_s21  ;;  %s41_s23 = sadd.s32 1, %s3333_s1 }
  0x15   : > { %p42_p0 = scmp.ge.s32.totalorder %s41_s23, 2  ;;  %s161_s24 = sadd.s32 1, %s3325_s20 }
  0x16   : > { %p168_p1 = scmp.ne.s32.totalorder %s3325_s20, %s3321_s30  ;;  %p169_p2 = scmp.eq.s32.totalorder %s3337_s22, 0 }
  0x17   : > { %s4121_s23 = smov (%p42_p0, %s41_s23), 0  ;;  %p174_p4 = scmp.ne.s32.totalorder %s3321_s30, %s3317_s0 }
  0x18   : > { %4077 = sst [smem:[#allocation25_spill]] %s4121_s23  ;;  %p3493_p3 = por %p169_p2, %p168_p1 }
  0x19   : > { %s158_s3 = ssub.s32 %s3333_s1, %s4121_s23  ;;  %p3502_p5 = scmp.eq.s32.totalorder %s4054_s2, 0 }
  0x1a   : > { %p159_p6 = scmp.eq.s32.totalorder %s158_s3, 0  ;;  %p2555_p7 = scmp.ge.s32.totalorder %s3337_s22, 1 }
  0x1b   : > { %p3509_p8 = por %p3502_p5, %p174_p4  ;;  %p539_p9 = scmp.lt.s32.totalorder %s3337_s22, 3 }
  0x1c   : > { %s3515_s28 = scalar_select %p159_p6, %s3325_s20, %s161_s24  }
  0x1d   : > { %p3517_p10 = pnand %p2555_p7, %p539_p9  ;;  %s4083_s23 = sld [smem:[#allocation30_spill]] }
  0x1e   : > { %4081 = sst [smem:[#allocation26_spill]] %s3515_s28  ;;  %s3339_s19 = smov [#allocation3]  }
  0x1f   : > { %p2698_p11 = pneg %p3517_p10  ;;  %s567_s15 = sshll.u32 %s3339_s19, 4  ;;  %s568_s15 = int_to_ptr.vmem [resolvable:$true] %s567_s15 }
  0x20   : > { %p2740_p13 = scmp.lt.s32.totalorder %s3337_s22, 2  ;;  %s616_s28 = sand.u32 1, %s3337_s22  }
  0x21   : > { %p3528_p12 = pnand %p2698_p11, %p3502_p5  ;;  %s3543_s19 = sand.u32 1, %s3325_s20  }
  0x22   : > { %p3538_p0 = pnand %p2740_p13, %p3493_p3  ;;  %s4086_s5 = sld [smem:[#allocation32_spill]] }
  0x23   : > { %s565_s3 = sshll.u32 %s4083_s23, 4  ;;  %s4087_s6 = sld [smem:[#allocation33_spill]]  ;;  %s566_s3 = int_to_ptr.hbm [resolvable:$true] %s565_s3 }
  0x24   : > { %2701 = dma.hbm_to_vmem [thread:$0]  (!%p3528_p12), %s566_s3, 16, %s568_s15, [#allocation4]  }
  0x25   : > { %s619_s15 = scalar_lea.vmem [#allocation7], %s3543_s19  ;;  %s3550_s3 = scalar_lea.sflag [#allocation4], %s616_s28 }
  0x26   : > { %s626_s25 = sshll.u32 %s619_s15, 4  ;;  %s636_s20 = scalar_lea.vmem [#allocation8], %s3543_s19  ;;  %s627_s25 = int_to_ptr.vmem [resolvable:$true] %s626_s25 }
  0x27   : > { %s4088_s8 = sld [smem:[#allocation35_spill]]  ;;  %s686_s0 = scalar_lea.vmem [#allocation10], %s3543_s19 }
  0x28   : > { %s622_s13 = scalar_lea.hbm %s4086_s5, %s3333_s1  ;;  %s4089_s4 = sld [smem:[#allocation31_spill]] }
  0x29   : > { %s624_s9 = sshll.u32 %s622_s13, 4  ;;  %s639_s5 = scalar_lea.hbm %s4087_s6, %s3333_s1  ;;  %s625_s9 = int_to_ptr.hbm [resolvable:$true] %s624_s9 }
  0x2a   : > { %2714 = dma.hbm_to_vmem [thread:$0]  (!%p3538_p0), %s625_s9, 16, %s627_s25, %s3550_s3  }
  0x2b   : > { %s643_s13 = sshll.u32 %s636_s20, 4  ;;  %s641_s7 = sshll.u32 %s639_s5, 4  ;;  %s644_s13 = int_to_ptr.vmem [resolvable:$true] %s643_s13  ;;  %s642_s7 = int_to_ptr.hbm [resolvable:$true] %s641_s7 }
  0x2c   : > { %2717 = dma.hbm_to_vmem [thread:$0]  (!%p3538_p0), %s642_s7, 16, %s644_s13, %s3550_s3  }
  0x2d   : > { %s664_s9 = scalar_lea.hbm %s4088_s8, %s3333_s1  ;;  %s661_s25 = scalar_lea.vmem [#allocation9], %s3543_s19 }
  0x2e   : > { %s668_s21 = sshll.u32 %s661_s25, 4  ;;  %s666_s23 = sshll.u32 %s664_s9, 4  ;;  %s669_s21 = int_to_ptr.vmem [resolvable:$true] %s668_s21  ;;  %s667_s23 = int_to_ptr.hbm [resolvable:$true] %s666_s23 }
  0x2f   : > { %2720 = dma.hbm_to_vmem [thread:$0]  (!%p3538_p0), %s667_s23, 16, %s669_s21, %s3550_s3  }
  0x30   : > { %s689_s7 = scalar_lea.hbm %s4042_s10, %s3333_s1  ;;  %s693_s13 = sshll.u32 %s686_s0, 4  ;;  %s694_s13 = int_to_ptr.vmem [resolvable:$true] %s693_s13 }
  0x31   : > { %s691_s28 = sshll.u32 %s689_s7, 4  ;;  %s706_s25 = scalar_lea.hbm %s4043_s11, %s3333_s1  ;;  %s692_s28 = int_to_ptr.hbm [resolvable:$true] %s691_s28 }
  0x32   : > { %2723 = dma.hbm_to_vmem [thread:$0]  (!%p3538_p0), %s692_s28, 16, %s694_s13, %s3550_s3  }
  0x33   : > { %s703_s6 = scalar_lea.vmem [#allocation11], %s3543_s19  ;;  %s708_s23 = sshll.u32 %s706_s25, 4  ;;  %s709_s23 = int_to_ptr.hbm [resolvable:$true] %s708_s23 }
  0x34   : > { %s710_s21 = sshll.u32 %s703_s6, 4  ;;  %s723_s7 = scalar_lea.hbm %s4044_s12, %s3333_s1  ;;  %s711_s21 = int_to_ptr.vmem [resolvable:$true] %s710_s21 }
  0x35   : > { %2726 = dma.hbm_to_vmem [thread:$0]  (!%p3538_p0), %s709_s23, 16, %s711_s21, %s3550_s3  }
  0x36   : > { %s720_s0 = scalar_lea.vmem [#allocation12], %s3543_s19  ;;  %s725_s28 = sshll.u32 %s723_s7, 4  ;;  %s726_s28 = int_to_ptr.hbm [resolvable:$true] %s725_s28 }
  0x37   : > { %s727_s13 = sshll.u32 %s720_s0, 4  ;;  %s576_s6 = sshll.u32 %s4089_s4, 4  ;;  %s728_s13 = int_to_ptr.vmem [resolvable:$true] %s727_s13  ;;  %s577_s6 = int_to_ptr.hbm [resolvable:$true] %s576_s6 }
  0x38   : > { %2729 = dma.hbm_to_vmem [thread:$0]  (!%p3538_p0), %s726_s28, 16, %s728_s13, %s3550_s3  }
  0x39   : > { %s3340_s25 = smov [#allocation5]   ;;  %s3341_s23 = smov 128  }
  0x3a   : > { %s578_s21 = sshll.u32 %s3340_s25, 4  ;;  %s3342_s5 = smov 8   ;;  %s579_s21 = int_to_ptr.vmem [resolvable:$true] %s578_s21 }
  0x3b   : > { %2704 = dma.hbm_to_vmem [thread:$0]  (!%p3528_p12), %s577_s6, 256, %s579_s21, [#allocation6], %s3341_s23, %s3341_s23, %s3342_s5  }
  0x3c   : > { %s748_s0 = scalar_lea.hbm %s4046_s14, %s3333_s1  ;;  %s745_s15 = scalar_lea.vmem [#allocation13], %s3543_s19 }
  0x3d   : > { %s750_s8 = sshll.u32 %s748_s0, 4  ;;  %s752_s9 = sshll.u32 %s745_s15, 4  ;;  %s751_s8 = int_to_ptr.hbm [resolvable:$true] %s750_s8  ;;  %s753_s9 = int_to_ptr.vmem [resolvable:$true] %s752_s9 }
  0x3e   : > { %2732 = dma.hbm_to_vmem [thread:$0]  (!%p3538_p0), %s751_s8, 16, %s753_s9, %s3550_s3  }
  0x3f   : > { %s591_s25 = sshll.u32 %s4049_s17, 4  ;;  %s3343_s6 = smov [#allocation15]   ;;  %s592_s25 = int_to_ptr.hbm [resolvable:$true] %s591_s25 }
  0x40   : > { %s593_s21 = sshll.u32 %s3343_s6, 4  ;;  %s603_s20 = sshll.u32 %s4050_s18, 4  ;;  %s594_s21 = int_to_ptr.vmem [resolvable:$true] %s593_s21  ;;  %s604_s20 = int_to_ptr.hbm [resolvable:$true] %s603_s20 }
  0x41   : > { %2707 = dma.hbm_to_vmem [thread:$0]  (!%p3528_p12), %s592_s25, 16, %s594_s21, [#allocation6]  }
  0x42   : > { %s3344_s7 = smov [#allocation16]   ;;  %s773_s9 = scalar_lea.hbm %s4048_s16, %s3333_s1 }
  0x43   : > { %s605_s0 = sshll.u32 %s3344_s7, 4  ;;  %s775_s13 = sshll.u32 %s773_s9, 4  ;;  %s606_s0 = int_to_ptr.vmem [resolvable:$true] %s605_s0  ;;  %s776_s13 = int_to_ptr.hbm [resolvable:$true] %s775_s13 }
  0x44   : > { %2710 = dma.hbm_to_vmem [thread:$0]  (!%p3528_p12), %s604_s20, 16, %s606_s0, [#allocation17]  }
  0x45   : > { %s770_s28 = scalar_lea.vmem [#allocation14], %s3543_s19  ;;  %786 = sbr.rel (%p3517_p10) target bundleno = 4047 (0xfcf), region = 96 }
  0x46   : > { %s777_s6 = sshll.u32 %s770_s28, 4  ;;  %s778_s6 = int_to_ptr.vmem [resolvable:$true] %s777_s6 }
  0x47   : > { %2735 = dma.hbm_to_vmem [thread:$0]  (!%p3538_p0), %s776_s13, 16, %s778_s6, %s3550_s3  }
  0x4a   : > { %3296 = dma.done.wait (%p3502_p5), [#allocation4], 16  }
  0x4b   : > { %3298 = vsyncadd (%p3502_p5), [#allocation4], 4294967280 }
  0x4c   : > { %3300 = dma.done.wait (%p3502_p5), [#allocation6], 256  }
  0x4d   : > { %3302 = vsyncadd (%p3502_p5), [#allocation6], 4294967040  ;;  %s4090_s24 = sadd.s32 4294967295, %s3337_s22   ;;  %s3639_s19 = sand.u32 1, %s3321_s30  }
  0x4e   : > { %s798_s2 = sand.u32 1, %s4090_s24  }
  0x4f   : > { %s799_s29 = scalar_lea.sflag [#allocation4], %s798_s2 }
  0x50   : > { %3304 = dma.done.wait (%p3509_p8), %s799_s29, 128  }
  0x51   : > { %3306 = vsyncadd (%p3509_p8), %s799_s29, 4294967168 }
  0x52   : > { %3308 = dma.done.wait (%p3502_p5), [#allocation6], 16  }
  0x53   : > { %3310 = vsyncadd (%p3502_p5), [#allocation6], 4294967280 }
  0x54   : > { %3312 = dma.done.wait (%p3502_p5), [#allocation17], 16  }
  0x55   : > { %3314 = vsyncadd (%p3502_p5), [#allocation17], 4294967280  ;;  %s4091_s27 = sld [smem:[#allocation24_spill]] }
  0x56   : > { %s4092_s6 = sld [smem:[#allocation34_spill]] }
  0x57   : > { %s4093_s0 = sld [smem:[#allocation36_spill]] }
  0x58   : > { %s4094_s26 = sld [smem:[#allocation37_spill]] }
  0x59   : > { %s4095_s3 = sld [smem:[#allocation38_spill]] }
  0x5b   : > { %p987_p1 = scmp.lt.s32.totalorder %s4091_s27, 1  ;;  %p2575_p2 = scmp.ne.s32.totalorder %s4091_s27, 0 }
  0x5c   : > { %s4096_s28 = sld [smem:[#allocation28_spill]] (!%p2575_p2) }
  0x5d   : > { %s988_s8 = scalar_select %p987_p1, %s4091_s27, 1 }
  0x5e   : > { %1016 = sbr.rel (%p2575_p2) target bundleno = 255 (0xff), region = 148  ;;  %s4097_s27 = sld [smem:[#allocation27_spill]] (!%p2575_p2) }
  0x5f   : > { %s2652_s15 = sshll.u32 %s988_s8, 4  ;;  %s2655_s9 = sshll.u32 %s988_s8, 5 }
  0x60   : > { %s3666_s24 = scalar_lea.vmem %s4092_s6, %s2652_s15  ;;  %s3671_s7 = scalar_lea.vmem %s4093_s0, %s2652_s15 }
  0x61   : > { %s3676_s23 = scalar_lea.vmem %s4094_s26, %s2652_s15  ;;  %s3681_s4 = scalar_lea.vmem %s4095_s3, %s2655_s9 }
  0x62   : > { %s4098_s29 = sld [smem:[#allocation39_spill]] (!%p2575_p2) }
  0x63   : > { %v1024_v0 = vld [vmem:[%s4096_s28 + $0x10] sm:$0xf]  ;;  %vm1048_vm0 = vcmask 1043456   ;;  %v2657_v4 = vld [vmem:[%s4096_s28 + $0x8] sm:$0xff]  ;;  %v2656_v5 = vld [vmem:[%s4096_s28] sm:$0xff]  ;;  %vm1044_vm1 = vcmask 326656  }
  0x64   : > { %v1038_v1 = vunpack.c.l.b16 %v1024_v0  ;;  %v1017_v6 = vld [vmem:[%s4097_s27] sm:$0xff]  ;;  %v1018_v7 = vld [vmem:[%s4097_s27 + $0x8] sm:$0xff]  ;;  %v1066_v9 = vld [vmem:[#allocation3] sm:$0x1]  ;;  %vm1070_vm2 = vcmask 253952   ;;  %s4099_s20 = sld [smem:[#allocation29_spill]] }
  0x65   : > { %v1019_v8 = vpack.c.bf16 %v1018_v7, %v1017_v6  ;;  %v1067_v10 = vld [vmem:[#allocation5] sm:$0x1]  ;;  %v1069_v14 = vld [vmem:[#allocation5 + $0x1] sm:$0xff]  ;;  %vm1073_vm3 = vcmask 261120  }
  0x66   : > { %v1041_v2 = vpack.c.b16 %v1038_v1, %v1038_v1  ;;  %v1068_v11 = vadd.f32 %v1067_v10, %v1066_v9 }
  0x68   : > { %v1050_v3 = vsel %vm1048_vm0, %v1041_v2, 0  ;;  %1071 = vst.msk [vmem:[%s4098_s29] sm:$0x1] %vm1070_vm2, %v1068_v11 }
  0x69   : > { %1057 = vmatpush.bf16.msra.mxu0 %v1050_v3  ;;  %1075 = vst.msk [vmem:[%s4098_s29 + $0x9] sm:$0x1] %vm1070_vm2, %v1068_v11 }
  0x6a   : > { %v2811_v12 = vld [vmem:[%s4099_s20] ss:$0 sm:$0xff] }
  0x6d   : > { %1058 = vmatpush.bf16.msra.mxu0 %v2657_v4 }
  0x71   : > { %1059 = vmatpush.bf16.msra.mxu0 %v2656_v5 }
  0x74   : > { %2584 = vmatmul.msk.bf16.vlgmr.msra.gmra.mxu0 %vm1044_vm1, %v1019_v8 }
  0xf1   : > { %v1061_v13 = vpop.f32.mrf.mxu0 }
  0xf2   : > { %v1062_v15 = vadd.f32 %v2811_v12, %v1061_v13 }
  0xf4   : > { %v1072_v16 = vadd.f32 %v1069_v14, %v1062_v15 }
  0xf6   : > { %1074 = vst.msk [vmem:[%s4098_s29 + $0x1] sm:$0xff] %vm1073_vm3, %v1072_v16 }
  0xf9   : > { %v1063_v17 = vpop.f32.mrf.mxu0 }
  0xfa   : > { %v1064_v18 = vadd.f32 %v2811_v12, %v1063_v17 }
  0xfc   : > { %v1076_v19 = vadd.f32 %v1069_v14, %v1064_v18 }
  0xfe   : > { %1077 = vst.msk [vmem:[%s4098_s29 + $0xa] sm:$0xff] %vm1073_vm3, %v1076_v19 }
  0xff PF: > { %s4100_s6 = sld [smem:[#allocation39_spill]]  ;;  %vm1083_vm4 = vcmask 261120   ;;  %v2659_v34 = vld [vmem:[%s3666_s24 + $0x8] sm:$0xff]  ;;  %v2658_v36 = vld [vmem:[%s3666_s24] sm:$0xff]  ;;  %s4101_s24 = scalar_lea.vmem [#allocation7], %s3639_s19  ;;  %vm1217_vm11 = vcmask 64512  }
 0x100   : > { %1197 = vmatpush.bf16.msra.mxu0 %v2659_v34  ;;  %v3732_v55 = vld [vmem:[%s4101_s24] ss:$0 sm:$0xff]  ;;  %s4102_s29 = scalar_lea.vmem [#allocation8], %s3639_s19  ;;  %s4103_s8 = scalar_lea.vmem [#allocation9], %s3639_s19  ;;  %vm1238_vm12 = vcmask 72704   ;;  %vm1242_vm13 = vcmask 65536  }
 0x101   : > { %v3737_v60 = vld [vmem:[%s4102_s29] ss:$0 sm:$0xff]  ;;  %s3345_s13 = smov 120   ;;  %s3346_s5 = smov 96   ;;  %vm1268_vm14 = vcmask 1043456   ;;  %vm1269_vm15 = vcmask 1044480  }
 0x102   : > { %v3745_v2 = vld [vmem:[%s4103_s8] ss:$0 sm:$0xff]  ;;  %s3347_s20 = smov 88   ;;  %s3348_s25 = smov 64   ;;  %vm1090_vm0 = vcmask 254976  }
 0x103   : > { %s3349_s3 = smov 112   ;;  %s3350_s21 = smov 56  }
 0x104   : > { %1198 = vmatpush.bf16.msra.mxu0 %v2658_v36  ;;  %s3352_s0 = smov 80   ;;  %s3353_s2 = smov 104  }
 0x105   : > { %v3717_v20 = vld [vmem:[%s4100_s6] sm:$0xff]  ;;  %v1079_v22 = vld [vmem:[%s4100_s6 + $0x8] sm:$0xff]  ;;  %s3354_s26 = smov 48   ;;  %s3355_s24 = smov 72  }
 0x106   : > { %v1084_v21 = vsel %vm1083_vm4, %v3717_v20, 0.0  ;;  %v1087_v23 = vsel %vm1083_vm4, %v1079_v22, 0.0  ;;  %s3356_s29 = smov 40  }
 0x107   : > { %1085 = vadd.xlane.f32.xlu0 %v1084_v21 }
 0x10f   : > { %1088 = vadd.xlane.f32.xlu0 %v1087_v23 }
 0x17a   : > { %v1086_v24 = vpop.xlane.xlu0 %1085 }
 0x17b   : > { %v1094_v25 = vmul.f32 0.03125, %v1086_v24 }
 0x17d   : > { %v1097_v26 = vsub.f32 %v3717_v20, %v1094_v25 }
 0x17f   : > { %v1100_v27 = vmul.f32 %v1097_v26, %v1097_v26 }
 0x181   : > { %v1103_v28 = vsel %vm1083_vm4, %v1100_v27, 0.0 }
 0x182   : > { %1104 = vadd.xlane.f32.xlu1 %v1103_v28  ;;  %v1089_v29 = vpop.xlane.xlu0 %1088 }
 0x183   : > { %v1095_v30 = vmul.f32 0.03125, %v1089_v29 }
 0x185   : > { %v1098_v31 = vsub.f32 %v1079_v22, %v1095_v30 }
 0x187   : > { %v1101_v32 = vmul.f32 %v1098_v31, %v1098_v31 }
 0x189   : > { %v1106_v33 = vsel %vm1083_vm4, %v1101_v32, 0.0 }
 0x18a   : > { %1107 = vadd.xlane.f32.xlu1 %v1106_v33 }
 0x1f5   : > { %v1105_v35 = vpop.xlane.xlu1 %1104 }
 0x1f6   : > { %v1112_v37 = vmul.f32 0.03125, %v1105_v35 }
 0x1f8   : > { %v1115_v38 = vadd.f32 1e-05, %v1112_v37 }
 0x1fa   : > { %2820 = vrsqrt.f32 %v1115_v38  ;;  %vm1124_vm6 = vweird.f32 %v1115_v38 }
 0x1fd   : > { %v1108_v39 = vpop.xlane.xlu1 %1107 }
 0x1fe   : > { %v1113_v40 = vmul.f32 0.03125, %v1108_v39 }
 0x200   : > { %v2821_v41 = vpop.eup %2820  ;;  %v1116_v42 = vadd.f32 1e-05, %v1113_v40 }
 0x201   : > { %v1119_v43 = vmul.f32 %v2821_v41, %v1115_v38  ;;  %vm1125_vm5 = vweird.f32 %v2821_v41 }
 0x202   : > { %2822 = vrsqrt.f32 %v1116_v42  ;;  %vm1126_vm7 = vmor %vm1124_vm6, %vm1125_vm5  ;;  %vm1134_vm9 = vweird.f32 %v1116_v42  ;;  %vm1585_vm5 = vcmask 253952  }
 0x203   : > { %v1120_v44 = vmul.f32 %v2821_v41, %v1119_v43 }
 0x205   : > { %v1121_v45 = vmul.f32 0.5, %v1120_v44 }
 0x207   : > { %v1122_v46 = vsub.f32 1.5, %v1121_v45 }
 0x208   : > { %v2823_v47 = vpop.eup %2822 }
 0x209   : > { %v1123_v48 = vmul.f32 %v2821_v41, %v1122_v46  ;;  %v1129_v49 = vmul.f32 %v2823_v47, %v1116_v42  ;;  %vm1135_vm8 = vweird.f32 %v2823_v47  ;;  %v3788_v46 = vld [vmem:[%s4100_s6 + $0x10] sm:$0x3] }
 0x20a   : > { %vm1136_vm10 = vmor %vm1134_vm9, %vm1135_vm8 }
 0x20b   : > { %v1130_v50 = vmul.f32 %v2823_v47, %v1129_v49  ;;  %v1127_v51 = vsel %vm1126_vm7, %v2821_v41, %v1123_v48  ;;  %v3351_v41 = vmov 65535  }
 0x20c   : > { %v1148_v54 = vmul.f32 %v1127_v51, %v1097_v26  ;;  %v1270_v42 = vsel %vm1268_vm14, 4294967295, %v3351_v41 }
 0x20d   : > { %v1131_v52 = vmul.f32 0.5, %v1130_v50  ;;  %v3780_v43 = vsel %vm1269_vm15, %v1270_v42, 0  ;;  %vm2151_vm15 = vcmask 523264  }
 0x20e   : > { %v1154_v59 = vmul.f32 %v3732_v55, %v1148_v54 }
 0x20f   : > { %v1132_v53 = vsub.f32 1.5, %v1131_v52 }
 0x210   : > { %v1160_v62 = vadd.f32 %v3737_v60, %v1154_v59 }
 0x211   : > { %v1133_v56 = vmul.f32 %v2823_v47, %v1132_v53 }
 0x213   : > { %v1137_v57 = vsel %vm1136_vm10, %v2823_v47, %v1133_v56  ;;  %v1091_v47 = vsel %vm1090_vm0, %v3788_v46, 0.0 }
 0x214   : > { %v1149_v58 = vmul.f32 %v1137_v57, %v1098_v31 }
 0x216   : > { %v1155_v61 = vmul.f32 %v3732_v55, %v1149_v58  ;;  %v1210_v58 = vld [vmem:[%s3671_s7 + $0x4] sm:$0xf] }
 0x218   : > { %v1161_v63 = vadd.f32 %v3737_v60, %v1155_v61 }
 0x21a   : > { %v1163_v0 = vpack.c.bf16 %v1161_v63, %v1160_v62  ;;  %v3796_v62 = vsel %vm1268_vm14, %v1210_v58, 0 }
 0x21c   : > { %2593 = vmatmul.msk.bf16.vlgmr.msra.gmra.mxu0 %vm1083_vm4, %v1163_v0 }
 0x299   : > { %v1200_v1 = vpop.f32.mrf.mxu0 }
 0x29a   : > { %v1201_v4 = vadd.f32 %v3745_v2, %v1200_v1 }
 0x2a1   : > { %v1202_v3 = vpop.f32.mrf.mxu0 }
 0x2a2   : > { %v3749_v5 = vadd.f32 %v3745_v2, %v1202_v3 }
 0x2a4   : > { %v3752_v6 = vpack.c.bf16 %v3749_v5, %v1201_v4 }
 0x2a6   : > { %1290 = vrot.lane.b32.xlu0 %v3752_v6, %s3345_s13  ;;  %1215 = vrot.lane.b32.xlu2 %v3752_v6, %s3346_s5 }
 0x2ae   : > { %1292 = vrot.lane.b32.xlu2 %v3752_v6, %s3347_s20 }
 0x300   : > { %v1216_v7 = vpop.permute.xlu2 %1215 }
 0x301   : > { %v1222_v8 = vsel %vm1217_vm11, %v1216_v7, 0 }
 0x302   : > { %1231 = vmatpush.bf16.xpose.msra.mxu1 %v1222_v8 }
 0x308   : > { %v1293_v9 = vpop.permute.xlu2 %1292 }
 0x309   : > { %2595 = vmatmul.msk.bf16.vlgmr.msra.gmra.mxu1 %vm1217_vm11, %v3752_v6  ;;  %v1298_v10 = vsel %vm1217_vm11, %v1293_v9, 0 }
 0x30a   : > { %1307 = vmatpush.bf16.xpose.msra.mxu3 %v1298_v10 }
 0x318   : > { %v1291_v11 = vpop.permute.xlu0 %1290 }
 0x319   : > { %2597 = vmatmul.msk.bf16.vlgmr.msra.gmra.mxu3 %vm1217_vm11, %v1291_v11 }
 0x386   : > { %v1233_v12 = vpop.f32.mrf.mxu1 }
 0x387   : > { %v1239_v13 = vsel %vm1238_vm12, %v1233_v12, -inf }
 0x388   : > { %1240 = vmax.xlane.f32.xlu1 %v1239_v13 }
 0x38e   : > { %v1235_v14 = vpop.f32.mrf.mxu1 }
 0x38f   : > { %v1243_v15 = vsel %vm1242_vm13, %v1235_v14, -inf }
 0x390   : > { %1244 = vmax.xlane.f32.xlu2 %v1243_v15 }
 0x39c   : > { %v1309_v16 = vpop.f32.mrf.mxu3 }
 0x39d   : > { %v1314_v17 = vsel %vm1238_vm12, %v1309_v16, -inf }
 0x39e   : > { %1315 = vmax.xlane.f32.xlu1 %v1314_v17 }
 0x3a4   : > { %v1311_v18 = vpop.f32.mrf.mxu3 }
 0x3a5   : > { %v1317_v19 = vsel %vm1242_vm13, %v1311_v18, -inf }
 0x3a6   : > { %1318 = vmax.xlane.f32.xlu1 %v1317_v19 }
 0x3bf   : > { %1263 = vrot.lane.b32.xlu1 %v3752_v6, %s3348_s25 }
 0x3fb   : > { %v1241_v21 = vpop.xlane.xlu1 %1240 }
 0x3fc   : > { %v1246_v22 = vsub.f32 %v1233_v12, %v1241_v21 }
 0x3fe   : > { %v1248_v23 = vmul.f32 1.442695, %v1246_v22 }
 0x400   : > { %2824 = vpow2.f32 %v1248_v23 }
 0x403   : > { %v1245_v24 = vpop.xlane.xlu2 %1244 }
 0x404   : > { %v1247_v25 = vsub.f32 %v1235_v14, %v1245_v24  ;;  %v1209_v14 = vld [vmem:[%s3671_s7] sm:$0xf] }
 0x405   : > { %v3805_v15 = vsel %vm1268_vm14, %v1209_v14, 0 }
 0x406   : > { %v2825_v26 = vpop.eup %2824  ;;  %v1250_v27 = vmul.f32 1.442695, %v1247_v25  ;;  %1393 = vmatpush.bf16.msrb.mxu3 %v3805_v15 }
 0x407   : > { %v1252_v28 = vsel %vm1238_vm12, %v2825_v26, 0.0 }
 0x408   : > { %2826 = vpow2.f32 %v1250_v27  ;;  %1253 = vadd.xlane.f32.xlu0 %v1252_v28 }
 0x40e   : > { %v2827_v29 = vpop.eup %2826 }
 0x40f   : > { %v1255_v30 = vsel %vm1242_vm13, %v2827_v29, 0.0 }
 0x410   : > { %1256 = vadd.xlane.f32.xlu1 %v1255_v30 }
 0x411   : > { %v1316_v31 = vpop.xlane.xlu1 %1315 }
 0x412   : > { %v1320_v32 = vsub.f32 %v1309_v16, %v1316_v31 }
 0x414   : > { %v1322_v33 = vmul.f32 1.442695, %v1320_v32 }
 0x416   : > { %2828 = vpow2.f32 %v1322_v33 }
 0x419   : > { %v1319_v34 = vpop.xlane.xlu1 %1318 }
 0x41a   : > { %v1321_v35 = vsub.f32 %v1311_v18, %v1319_v34 }
 0x41c   : > { %v2829_v36 = vpop.eup %2828  ;;  %v1324_v37 = vmul.f32 1.442695, %v1321_v35  ;;  %1400 = vrot.lane.b32.xlu0 %v3752_v6, %s3349_s3 }
 0x41d   : > { %v1326_v38 = vsel %vm1238_vm12, %v2829_v36, 0.0 }
 0x41e   : > { %2830 = vpow2.f32 %v1324_v37  ;;  %1327 = vadd.xlane.f32.xlu2 %v1326_v38 }
 0x424   : > { %v2831_v39 = vpop.eup %2830 }
 0x425   : > { %v1329_v40 = vsel %vm1242_vm13, %v2831_v39, 0.0 }
 0x426   : > { %1330 = vadd.xlane.f32.xlu2 %v1329_v40 }
 0x429   : > { %1337 = vrot.lane.b32.xlu1 %v3752_v6, %s3350_s21 }
 0x431   : > { %v1264_v44 = vpop.permute.xlu1 %1263 }
 0x432   : > { %v1273_v45 = vand.u32 %v3780_v43, %v1264_v44 }
 0x434   : > { %1282 = vmatpush.bf16.msra.mxu2 %v1273_v45 }
 0x43e   : > { %1402 = vrot.lane.b32.xlu2 %v3752_v6, %s3352_s0 }
 0x453   : > { %1092 = vadd.xlane.f32.xlu1 %v1091_v47 }
 0x47b   : > { %v1254_v48 = vpop.xlane.xlu0 %1253 }
 0x47c   : > { %2832 = vrcp.f32 %v1254_v48 }
 0x482   : > { %v2833_v50 = vpop.eup %2832 }
 0x483   : > { %v1257_v49 = vpop.xlane.xlu1 %1256  ;;  %v1260_v52 = vmul.f32 %v2833_v50, %v2825_v26 }
 0x484   : > { %2834 = vrcp.f32 %v1257_v49 }
 0x48a   : > { %v2835_v51 = vpop.eup %2834 }
 0x48b   : > { %v1261_v53 = vmul.f32 %v2835_v51, %v2827_v29 }
 0x48d   : > { %v1262_v54 = vpack.c.bf16 %v1261_v53, %v1260_v52 }
 0x48e   : > { %v1401_v24 = vpop.permute.xlu0 %1400 }
 0x48f   : > { %2596 = vmatmul.msk.bf16.vlgmr.msra.gmra.mxu2 %vm1238_vm12, %v1262_v54  ;;  %v1211_v54 = vld [vmem:[%s3671_s7 + $0x8] sm:$0xf] }
 0x491   : > { %v1328_v56 = vpop.xlane.xlu2 %1327 }
 0x492   : > { %2836 = vrcp.f32 %v1328_v56 }
 0x498   : > { %v2837_v63 = vpop.eup %2836 }
 0x499   : > { %v1331_v57 = vpop.xlane.xlu2 %1330  ;;  %v1334_v1 = vmul.f32 %v2837_v63, %v2829_v36 }
 0x49a   : > { %2838 = vrcp.f32 %v1331_v57  ;;  %v1474_v57 = vsel %vm1268_vm14, %v1211_v54, 0 }
 0x49b   : > { %v1338_v59 = vpop.permute.xlu1 %1337  ;;  %1483 = vmatpush.bf16.msrb.mxu1 %v1474_v57 }
 0x49c   : > { %v1343_v61 = vand.u32 %v1338_v59, %v3780_v43 }
 0x49e   : > { %1352 = vmatpush.bf16.msrb.mxu2 %v1343_v61 }
 0x4a0   : > { %v2839_v0 = vpop.eup %2838 }
 0x4a1   : > { %v1335_v3 = vmul.f32 %v2839_v0, %v2831_v39  ;;  %v1403_v4 = vpop.permute.xlu2 %1402 }
 0x4a2   : > { %1373 = vmatpush.bf16.msra.mxu2 %v3796_v62  ;;  %v1408_v8 = vsel %vm1217_vm11, %v1403_v4, 0 }
 0x4a3   : > { %v1336_v7 = vpack.c.bf16 %v1335_v3, %v1334_v1 }
 0x4a5   : > { %2598 = vmatmul.msk.bf16.vlgmr.msrb.gmra.mxu2 %vm1238_vm12, %v1336_v7 }
 0x4a6   : > { %1417 = vmatpush.bf16.xpose.msrb.mxu2 %v1408_v8 }
 0x4c6   : > { %v1093_v9 = vpop.xlane.xlu1 %1092 }
 0x4c7   : > { %v1096_v10 = vmul.f32 0.03125, %v1093_v9 }
 0x4c9   : > { %v1099_v11 = vsub.f32 %v3788_v46, %v1096_v10 }
 0x4cb   : > { %v1102_v12 = vmul.f32 %v1099_v11, %v1099_v11 }
 0x4cd   : > { %v1109_v13 = vsel %vm1090_vm0, %v1102_v12, 0.0 }
 0x4ce   : > { %1110 = vadd.xlane.f32.xlu1 %v1109_v13 }
 0x512   : > { %v1284_v16 = vpop.f32.mrf.mxu2 }
 0x51a   : > { %v1286_v17 = vpop.f32.mrf.mxu2 }
 0x51b   : > { %v1289_v18 = vpack.c.bf16 %v1286_v17, %v1284_v16 }
 0x51d   : > { %2600 = vmatmul.msk.bf16.vlgmr.msrb.gmra.mxu3 %vm1217_vm11, %v1289_v18 }
 0x528   : > { %v1354_v19 = vpop.f32.mrf.mxu2 }
 0x530   : > { %v1356_v21 = vpop.f32.mrf.mxu2 }
 0x531   : > { %v1359_v22 = vpack.c.bf16 %v1356_v21, %v1354_v19 }
 0x533   : > { %2599 = vmatmul.msk.bf16.vlgmr.msra.gmra.mxu2 %vm1217_vm11, %v1359_v22 }
 0x541   : > { %v1111_v23 = vpop.xlane.xlu1 %1110 }
 0x542   : > { %v1114_v25 = vmul.f32 0.03125, %v1111_v23 }
 0x543   : > { %2601 = vmatmul.msk.bf16.vlgmr.msrb.gmra.mxu2 %vm1217_vm11, %v1401_v24 }
 0x544   : > { %v1117_v26 = vadd.f32 1e-05, %v1114_v25 }
 0x546   : > { %2840 = vrsqrt.f32 %v1117_v26  ;;  %vm1144_vm1 = vweird.f32 %v1117_v26 }
 0x54c   : > { %v2841_v27 = vpop.eup %2840 }
 0x54d   : > { %v1139_v28 = vmul.f32 %v2841_v27, %v1117_v26  ;;  %vm1145_vm2 = vweird.f32 %v2841_v27 }
 0x54e   : > { %vm1146_vm3 = vmor %vm1144_vm1, %vm1145_vm2 }
 0x54f   : > { %v1140_v29 = vmul.f32 %v2841_v27, %v1139_v28 }
 0x551   : > { %v1141_v30 = vmul.f32 0.5, %v1140_v29 }
 0x553   : > { %v1142_v31 = vsub.f32 1.5, %v1141_v30 }
 0x555   : > { %v1143_v32 = vmul.f32 %v2841_v27, %v1142_v31 }
 0x557   : > { %v1147_v33 = vsel %vm1146_vm3, %v2841_v27, %v1143_v32 }
 0x558   : > { %v1150_v34 = vmul.f32 %v1147_v33, %v1099_v11 }
 0x55a   : > { %v1156_v35 = vmul.f32 %v3732_v55, %v1150_v34 }
 0x55c   : > { %v1162_v36 = vadd.f32 %v3737_v60, %v1156_v35 }
 0x55e   : > { %v1164_v37 = vpack.c.bf16 %v1162_v36, %v1162_v36 }
 0x560   : > { %2594 = vmatmul.msk.bf16.gmra.mxu0 %vm1083_vm4, %v1164_v37 }
 0x5a0   : > { %v1395_v38 = vpop.f32.mrf.mxu3 }
 0x5a8   : > { %v1397_v27 = vpop.f32.mrf.mxu3 }
 0x5b6   : > { %v1375_v39 = vpop.f32.mrf.mxu2 }
 0x5b7   : > { %v3814_v40 = vadd.f32 %v1395_v38, %v1375_v39 }
 0x5be   : > { %v3816_v41 = vpop.f32.mrf.mxu2 }
 0x5bf   : > { %v1398_v28 = vadd.f32 %v1397_v27, %v3816_v41 }
 0x5c6   : > { %v1419_v42 = vpop.f32.mrf.mxu2 }
 0x5c7   : > { %v1424_v44 = vsel %vm1238_vm12, %v1419_v42, -inf }
 0x5c8   : > { %1425 = vmax.xlane.f32.xlu2 %v1424_v44 }
 0x5ce   : > { %v1421_v45 = vpop.f32.mrf.mxu2 }
 0x5cf   : > { %v1427_v47 = vsel %vm1242_vm13, %v1421_v45, -inf }
 0x5d0   : > { %1428 = vmax.xlane.f32.xlu0 %v1427_v47 }
 0x5dd   : > { %v1205_v55 = vpop.f32.mrf.mxu0 }
 0x5de   : > { %v1206_v60 = vadd.f32 %v3745_v2, %v1205_v55 }
 0x5e0   : > { %v1587_v48 = vpack.c.bf16 %v1206_v60, %v3749_v5 }
 0x5e2   : > { %v1591_v49 = vshll.u32 %v1587_v48, 16  ;;  %v1589_v50 = vshrl.u32 %v1587_v48, 16 }
 0x5e4   : > { %v1593_v51 = vrot.slane %v1591_v49, 1 }
 0x5e5   : > { %v1207_v52 = vpop.f32.mrf.mxu0 }
 0x5e6   : > { %v3822_v53 = vor.u32 %v1593_v51, %v1589_v50 }
 0x5e8   : > { %1595 = vrot.lane.b32.xlu0 %v3822_v53, %s3346_s5  ;;  %s4107_s5 = scalar_lea.vmem [#allocation13], %s3639_s19 }
 0x5f0   : > { %1492 = vrot.lane.b32.xlu0 %v3752_v6, %s3353_s2 }
 0x63b   : > { %v1426_v56 = vpop.xlane.xlu2 %1425 }
 0x63c   : > { %v1430_v2 = vsub.f32 %v1419_v42, %v1426_v56 }
 0x63e   : > { %v1432_v5 = vmul.f32 1.442695, %v1430_v2 }
 0x640   : > { %2842 = vpow2.f32 %v1432_v5 }
 0x643   : > { %v1429_v58 = vpop.xlane.xlu0 %1428 }
 0x644   : > { %v1431_v59 = vsub.f32 %v1421_v45, %v1429_v58 }
 0x646   : > { %v2843_v61 = vpop.eup %2842  ;;  %v1434_v63 = vmul.f32 1.442695, %v1431_v59 }
 0x647   : > { %v1436_v0 = vsel %vm1238_vm12, %v2843_v61, 0.0 }
 0x648   : > { %2844 = vpow2.f32 %v1434_v63  ;;  %1437 = vadd.xlane.f32.xlu1 %v1436_v0 }
 0x64e   : > { %v2845_v1 = vpop.eup %2844 }
 0x64f   : > { %v1439_v3 = vsel %vm1242_vm13, %v2845_v1, 0.0 }
 0x650   : > { %1440 = vadd.xlane.f32.xlu2 %v1439_v3 }
 0x65a   : > { %v1596_v4 = vpop.permute.xlu0 %1595 }
 0x65b   : > { %v1601_v7 = vsel %vm1217_vm11, %v1596_v4, 0 }
 0x65c   : > { %1610 = vmatpush.bf16.xpose.msra.mxu1 %v1601_v7 }
 0x661   : > { %1447 = vrot.lane.b32.xlu1 %v3752_v6, %s3354_s26 }
 0x662   : > { %v1493_v14 = vpop.permute.xlu0 %1492 }
 0x668   : > { %1494 = vrot.lane.b32.xlu2 %v3752_v6, %s3355_s24 }
 0x6bb   : > { %v1438_v9 = vpop.xlane.xlu1 %1437 }
 0x6c3   : > { %v1441_v8 = vpop.xlane.xlu2 %1440 }
 0x6c4   : > { %2846 = vrcp.f32 %v1441_v8 }
 0x6c5   : > { %2848 = vrcp.f32 %v1438_v9 }
 0x6ca   : > { %v2847_v12 = vpop.eup %2846 }
 0x6cb   : > { %v1495_v10 = vpop.permute.xlu2 %1494  ;;  %v2849_v13 = vpop.eup %2848  ;;  %v1445_v16 = vmul.f32 %v2847_v12, %v2845_v1 }
 0x6cc   : > { %v1500_v11 = vsel %vm1217_vm11, %v1495_v10, 0  ;;  %v1444_v19 = vmul.f32 %v2849_v13, %v2843_v61 }
 0x6cd   : > { %1509 = vmatpush.bf16.xpose.msra.mxu3 %v1500_v11 }
 0x6ce   : > { %v1446_v21 = vpack.c.bf16 %v1445_v16, %v1444_v19 }
 0x6d3   : > { %v1448_v17 = vpop.permute.xlu1 %1447 }
 0x6d4   : > { %v1453_v18 = vand.u32 %v1448_v17, %v3780_v43  ;;  %2604 = vmatmul.msk.bf16.vlgmr.msra.gmra.mxu3 %vm1217_vm11, %v1493_v14 }
 0x6d6   : > { %1462 = vmatpush.bf16.msrb.mxu0 %v1453_v18 }
 0x6d9   : > { %2602 = vmatmul.msk.bf16.vlgmr.msrb.gmra.mxu0 %vm1238_vm12, %v1446_v21 }
 0x756   : > { %v1464_v22 = vpop.f32.mrf.mxu0 }
 0x757   : > { %v1511_v42 = vpop.f32.mrf.mxu3 }
 0x758   : > { %v1516_v45 = vsel %vm1238_vm12, %v1511_v42, -inf }
 0x75e   : > { %v1466_v23 = vpop.f32.mrf.mxu0 }
 0x75f   : > { %v1469_v24 = vpack.c.bf16 %v1466_v23, %v1464_v22  ;;  %v1513_v55 = vpop.f32.mrf.mxu3 }
 0x760   : > { %v1519_v49 = vsel %vm1242_vm13, %v1513_v55, -inf }
 0x761   : > { %2603 = vmatmul.msk.bf16.vlgmr.msrb.gmra.mxu1 %vm1217_vm11, %v1469_v24 }
 0x762   : > { %1743 = vmatpush.bf16.msrb.mxu1 %v3796_v62 }
 0x771   : > { %2607 = vmatmul.msk.bf16.vlgmr.msra.gmra.mxu1 %vm1217_vm11, %v3822_v53 }
 0x772   : > { %1847 = vmatpush.bf16.msra.mxu1 %v1474_v57 }
 0x7de   : > { %v1485_v25 = vpop.f32.mrf.mxu1 }
 0x7df   : > { %v3846_v26 = vadd.f32 %v1485_v25, %v3814_v40 }
 0x7e6   : > { %v1487_v29 = vpop.f32.mrf.mxu1 }
 0x7e7   : > { %v3849_v30 = vadd.f32 %v1487_v29, %v1398_v28 }
 0x7ee   : > { %v1612_v31 = vpop.f32.mrf.mxu1 }
 0x7ef   : > { %v1617_v32 = vsel %vm1238_vm12, %v1612_v31, -inf }
 0x7f0   : > { %1618 = vmax.xlane.f32.xlu1 %v1617_v32 }
 0x7f6   : > { %v1614_v33 = vpop.f32.mrf.mxu1 }
 0x7f7   : > { %v1620_v62 = vsel %vm1242_vm13, %v1614_v33, -inf }
 0x7f8   : > { %1621 = vmax.xlane.f32.xlu0 %v1620_v62 }
 0x80c   : > { %1640 = vrot.lane.b32.xlu0 %v3822_v53, %s3348_s25 }
 0x814   : > { %1665 = vrot.lane.b32.xlu0 %v3822_v53, %s3347_s20  ;;  %s4109_s20 = sld [smem:[#allocation24_spill]] }
 0x81a   : > { %p2647_p3 = scmp.ge.s32.totalorder %s4109_s20, 1 }
 0x81c   : > { %1858 = vrot.lane.b32.xlu0 %v3822_v53, %s3355_s24 }
 0x824   : > { %1769 = vrot.lane.b32.xlu0 %v3822_v53, %s3352_s0 }
 0x82c   : > { %1767 = vrot.lane.b32.xlu0 %v3822_v53, %s3349_s3  ;;  %s4110_s3 = sld [smem:[#allocation39_spill]] (!%p2647_p3) }
 0x863   : > { %v1619_v34 = vpop.xlane.xlu1 %1618 }
 0x864   : > { %v1623_v35 = vsub.f32 %v1612_v31, %v1619_v34  ;;  %v1212_v31 = vld [vmem:[%s3671_s7 + $0xc] sm:$0xf]  ;;  %s4104_s7 = scalar_lea.vmem [#allocation10], %s3639_s19 }
 0x865   : > { %v3889_v32 = vsel %vm1268_vm14, %v1212_v31, 0 }
 0x866   : > { %v1625_v36 = vmul.f32 1.442695, %v1623_v35  ;;  %1575 = vmatpush.bf16.msra.mxu0 %v3889_v32 }
 0x868   : > { %2850 = vpow2.f32 %v1625_v36 }
 0x86b   : > { %v1622_v37 = vpop.xlane.xlu0 %1621 }
 0x86c   : > { %v1624_v38 = vsub.f32 %v1614_v33, %v1622_v37 }
 0x86e   : > { %v2851_v39 = vpop.eup %2850  ;;  %v1627_v40 = vmul.f32 1.442695, %v1624_v38 }
 0x86f   : > { %v1629_v41 = vsel %vm1238_vm12, %v2851_v39, 0.0 }
 0x870   : > { %2852 = vpow2.f32 %v1627_v40  ;;  %1630 = vadd.xlane.f32.xlu2 %v1629_v41 }
 0x876   : > { %v2853_v44 = vpop.eup %2852 }
 0x877   : > { %v1632_v47 = vsel %vm1242_vm13, %v2853_v44, 0.0 }
 0x878   : > { %1517 = vmax.xlane.f32.xlu2 %v1516_v45  ;;  %1633 = vadd.xlane.f32.xlu1 %v1632_v47 }
 0x87e   : > { %v1641_v60 = vpop.permute.xlu0 %1640 }
 0x87f   : > { %v1646_v48 = vand.u32 %v1641_v60, %v3780_v43 }
 0x880   : > { %1520 = vmax.xlane.f32.xlu1 %v1519_v49 }
 0x881   : > { %1655 = vmatpush.bf16.msrb.mxu3 %v1646_v48 }
 0x885   : > { %1760 = vmatpush.bf16.msra.mxu3 %v3805_v15 }
 0x886   : > { %v1666_v51 = vpop.permute.xlu0 %1665 }
 0x887   : > { %v1671_v14 = vsel %vm1217_vm11, %v1666_v51, 0 }
 0x88e   : > { %v1859_v63 = vpop.permute.xlu0 %1858 }
 0x88f   : > { %v1864_v15 = vsel %vm1217_vm11, %v1859_v63, 0 }
 0x896   : > { %v1770_v21 = vpop.permute.xlu0 %1769 }
 0x897   : > { %v1775_v23 = vsel %vm1217_vm11, %v1770_v21, 0 }
 0x89e   : > { %v1768_v29 = vpop.permute.xlu0 %1767 }
 0x8e3   : > { %v1631_v50 = vpop.xlane.xlu2 %1630 }
 0x8e4   : > { %2854 = vrcp.f32 %v1631_v50 }
 0x8ea   : > { %v2855_v2 = vpop.eup %2854 }
 0x8eb   : > { %v1518_v52 = vpop.xlane.xlu2 %1517  ;;  %v1634_v54 = vpop.xlane.xlu1 %1633  ;;  %v1637_v58 = vmul.f32 %v2855_v2, %v2851_v39 }
 0x8ec   : > { %v1522_v56 = vsub.f32 %v1511_v42, %v1518_v52  ;;  %2856 = vrcp.f32 %v1634_v54 }
 0x8ee   : > { %v1524_v57 = vmul.f32 1.442695, %v1522_v56 }
 0x8f0   : > { %2858 = vpow2.f32 %v1524_v57 }
 0x8f2   : > { %v2857_v5 = vpop.eup %2856 }
 0x8f3   : > { %v1638_v59 = vmul.f32 %v2857_v5, %v2853_v44  ;;  %v1521_v61 = vpop.xlane.xlu1 %1520 }
 0x8f4   : > { %v1523_v0 = vsub.f32 %v1513_v55, %v1521_v61 }
 0x8f5   : > { %v1639_v1 = vpack.c.bf16 %v1638_v59, %v1637_v58 }
 0x8f6   : > { %v2859_v3 = vpop.eup %2858  ;;  %v1526_v4 = vmul.f32 1.442695, %v1523_v0 }
 0x8f7   : > { %2608 = vmatmul.msk.bf16.vlgmr.msrb.gmra.mxu3 %vm1238_vm12, %v1639_v1  ;;  %v1528_v7 = vsel %vm1238_vm12, %v2859_v3, 0.0 }
 0x8f8   : > { %2860 = vpow2.f32 %v1526_v4  ;;  %1873 = vmatpush.bf16.xpose.msrb.mxu3 %v1864_v15  ;;  %1529 = vadd.xlane.f32.xlu2 %v1528_v7 }
 0x8fe   : > { %v2861_v8 = vpop.eup %2860 }
 0x8ff   : > { %v1531_v9 = vsel %vm1242_vm13, %v2861_v8, 0.0 }
 0x900   : > { %1532 = vadd.xlane.f32.xlu1 %v1531_v9 }
 0x910   : > { %1539 = vrot.lane.b32.xlu2 %v3752_v6, %s3356_s29 }
 0x918   : > { %1856 = vrot.lane.b32.xlu2 %v3822_v53, %s3353_s2 }
 0x919   : > { %1663 = vrot.lane.b32.xlu1 %v3822_v53, %s3345_s13 }
 0x96b   : > { %v1530_v10 = vpop.xlane.xlu2 %1529 }
 0x96c   : > { %2862 = vrcp.f32 %v1530_v10 }
 0x972   : > { %v2863_v16 = vpop.eup %2862 }
 0x973   : > { %v1540_v11 = vpop.permute.xlu2 %1539  ;;  %v1533_v12 = vpop.xlane.xlu1 %1532  ;;  %v1536_v18 = vmul.f32 %v2863_v16, %v2859_v3 }
 0x974   : > { %v1545_v13 = vand.u32 %v1540_v11, %v3780_v43  ;;  %2864 = vrcp.f32 %v1533_v12 }
 0x976   : > { %1554 = vmatpush.bf16.msra.mxu2 %v1545_v13 }
 0x97a   : > { %1680 = vmatpush.bf16.xpose.msrb.mxu2 %v1671_v14  ;;  %v2865_v17 = vpop.eup %2864  ;;  %v1657_v6 = vpop.f32.mrf.mxu3 }
 0x97b   : > { %v1537_v19 = vmul.f32 %v2865_v17, %v2861_v8  ;;  %v1857_v28 = vpop.permute.xlu2 %1856 }
 0x97d   : > { %v1538_v22 = vpack.c.bf16 %v1537_v19, %v1536_v18 }
 0x97f   : > { %2605 = vmatmul.msk.bf16.vlgmr.msra.gmra.mxu2 %vm1238_vm12, %v1538_v22 }
 0x982   : > { %1784 = vmatpush.bf16.xpose.msra.mxu2 %v1775_v23  ;;  %v1659_v24 = vpop.f32.mrf.mxu3 }
 0x983   : > { %v1662_v25 = vpack.c.bf16 %v1659_v24, %v1657_v6  ;;  %v3920_v24 = vld [vmem:[%s4104_s7] ss:$0 sm:$0xff] }
 0x985   : > { %2612 = vmatmul.msk.bf16.vlgmr.msra.gmra.mxu3 %vm1217_vm11, %v1662_v25 }
 0x98b   : > { %v1664_v27 = vpop.permute.xlu1 %1663 }
 0x98f   : > { %2609 = vmatmul.msk.bf16.vlgmr.msrb.gmra.mxu2 %vm1217_vm11, %v1664_v27 }
 0x995   : > { %2616 = vmatmul.msk.bf16.vlgmr.msrb.gmra.mxu3 %vm1217_vm11, %v1857_v28 }
 0x99f   : > { %2613 = vmatmul.msk.bf16.vlgmr.msra.gmra.mxu2 %vm1217_vm11, %v1768_v29 }
 0xa02   : > { %v1556_v33 = vpop.f32.mrf.mxu2 }
 0xa08   : > { %v3892_v62 = vpop.f32.mrf.mxu3 }
 0xa0a   : > { %v1558_v34 = vpop.f32.mrf.mxu2 }
 0xa0b   : > { %v1561_v35 = vpack.c.bf16 %v1558_v34, %v1556_v33 }
 0xa0d   : > { %2606 = vmatmul.msk.bf16.vlgmr.msra.gmra.mxu0 %vm1217_vm11, %v1561_v35 }
 0xa10   : > { %v3895_v36 = vpop.f32.mrf.mxu3 }
 0xa12   : > { %v1682_v37 = vpop.f32.mrf.mxu2 }
 0xa13   : > { %v1687_v38 = vsel %vm1238_vm12, %v1682_v37, -inf }
 0xa14   : > { %1688 = vmax.xlane.f32.xlu1 %v1687_v38 }
 0xa18   : > { %v1875_v39 = vpop.f32.mrf.mxu3 }
 0xa19   : > { %v1880_v40 = vsel %vm1238_vm12, %v1875_v39, -inf }
 0xa1a   : > { %v1684_v41 = vpop.f32.mrf.mxu2  ;;  %1881 = vmax.xlane.f32.xlu0 %v1880_v40 }
 0xa1b   : > { %v1690_v42 = vsel %vm1242_vm13, %v1684_v41, -inf }
 0xa1c   : > { %1691 = vmax.xlane.f32.xlu2 %v1690_v42 }
 0xa20   : > { %v1877_v44 = vpop.f32.mrf.mxu3 }
 0xa21   : > { %v1883_v45 = vsel %vm1242_vm13, %v1877_v44, -inf }
 0xa22   : > { %1884 = vmax.xlane.f32.xlu1 %v1883_v45  ;;  %v1786_v47 = vpop.f32.mrf.mxu2 }
 0xa23   : > { %v1791_v55 = vsel %vm1238_vm12, %v1786_v47, -inf }
 0xa24   : > { %1792 = vmax.xlane.f32.xlu2 %v1791_v55 }
 0xa2a   : > { %v1788_v60 = vpop.f32.mrf.mxu2 }
 0xa2b   : > { %v1794_v48 = vsel %vm1242_vm13, %v1788_v60, -inf }
 0xa2c   : > { %1795 = vmax.xlane.f32.xlu0 %v1794_v48 }
 0xa40   : > { %1710 = vrot.lane.b32.xlu0 %v3822_v53, %s3350_s21 }
 0xa48   : > { %1814 = vrot.lane.b32.xlu0 %v3822_v53, %s3354_s26 }
 0xa87   : > { %v1689_v49 = vpop.xlane.xlu1 %1688 }
 0xa88   : > { %v1693_v50 = vsub.f32 %v1682_v37, %v1689_v49 }
 0xa8a   : > { %v1695_v51 = vmul.f32 1.442695, %v1693_v50  ;;  %v1577_v52 = vpop.f32.mrf.mxu0 }
 0xa8b   : > { %v1582_v54 = vadd.f32 %v1577_v52, %v3846_v26 }
 0xa8c   : > { %2866 = vpow2.f32 %v1695_v51 }
 0xa8d   : > { %1584 = vst.msk [vmem:[#allocation2] sm:$0xff] %vm1083_vm4, %v1582_v54  ;;  %v1882_v26 = vpop.xlane.xlu0 %1881 }
 0xa8e   : > { %v1886_v7 = vsub.f32 %v1875_v39, %v1882_v26 }
 0xa8f   : > { %v1692_v56 = vpop.xlane.xlu2 %1691 }
 0xa90   : > { %v1694_v57 = vsub.f32 %v1684_v41, %v1692_v56 }
 0xa92   : > { %v2867_v2 = vpop.eup %2866  ;;  %v1697_v5 = vmul.f32 1.442695, %v1694_v57  ;;  %v1579_v58 = vpop.f32.mrf.mxu0 }
 0xa93   : > { %v1583_v59 = vadd.f32 %v1579_v58, %v3849_v30  ;;  %v1699_v61 = vsel %vm1238_vm12, %v2867_v2, 0.0  ;;  %v1888_v30 = vmul.f32 1.442695, %v1886_v7 }
 0xa94   : > { %2868 = vpow2.f32 %v1697_v5  ;;  %1700 = vadd.xlane.f32.xlu1 %v1699_v61  ;;  %v1947_v18 = vld [vmem:[#allocation2] sm:$0xff] }
 0xa95   : > { %1586 = vst.msk [vmem:[#allocation2 + $0x8] sm:$0x1] %vm1585_vm5, %v1583_v59  ;;  %v1885_v63 = vpop.xlane.xlu1 %1884  ;;  %v1950_v23 = vadd.f32 %v1947_v18, %v3717_v20 }
 0xa96   : > { %v1887_v0 = vsub.f32 %v1877_v44, %v1885_v63 }
 0xa97   : > { %v1793_v1 = vpop.xlane.xlu2 %1792  ;;  %v3923_v25 = vadd.f32 %v3920_v24, %v1950_v23 }
 0xa98   : > { %v1890_v3 = vmul.f32 1.442695, %v1887_v0  ;;  %v1797_v4 = vsub.f32 %v1786_v47, %v1793_v1 }
 0xa99   : > { %v1962_v29 = vsel %vm1083_vm4, %v3923_v25, 0.0 }
 0xa9a   : > { %v2869_v15 = vpop.eup %2868  ;;  %2870 = vpow2.f32 %v1890_v3  ;;  %v1799_v8 = vmul.f32 1.442695, %v1797_v4 }
 0xa9b   : > { %v1702_v9 = vsel %vm1242_vm13, %v2869_v15, 0.0 }
 0xa9c   : > { %2872 = vpow2.f32 %v1799_v8  ;;  %1703 = vadd.xlane.f32.xlu2 %v1702_v9 }
 0xa9d   : > { %2874 = vpow2.f32 %v1888_v30 }
 0xa9f   : > { %v1796_v10 = vpop.xlane.xlu0 %1795 }
 0xaa0   : > { %v2871_v11 = vpop.eup %2870  ;;  %v1798_v12 = vsub.f32 %v1788_v60, %v1796_v10 }
 0xaa1   : > { %v1895_v16 = vsel %vm1242_vm13, %v2871_v11, 0.0 }
 0xaa2   : > { %v2873_v13 = vpop.eup %2872  ;;  %v1801_v14 = vmul.f32 1.442695, %v1798_v12 }
 0xaa3   : > { %v1803_v17 = vsel %vm1238_vm12, %v2873_v13, 0.0  ;;  %v2875_v6 = vpop.eup %2874 }
 0xaa4   : > { %2876 = vpow2.f32 %v1801_v14  ;;  %1896 = vadd.xlane.f32.xlu2 %v1895_v16  ;;  %1804 = vadd.xlane.f32.xlu1 %v1803_v17  ;;  %v1892_v21 = vsel %vm1238_vm12, %v2875_v6, 0.0  ;;  %v2902_v14 = vld [vmem:[%s4100_s6 + $0x8] sm:$0xff]  ;;  %s4106_s6 = scalar_lea.vmem [#allocation12], %s3639_s19 }
 0xaaa   : > { %v2877_v19 = vpop.eup %2876 }
 0xaab   : > { %v1806_v22 = vsel %vm1242_vm13, %v2877_v19, 0.0 }
 0xaac   : > { %1893 = vadd.xlane.f32.xlu1 %v1892_v21  ;;  %1807 = vadd.xlane.f32.xlu2 %v1806_v22 }
 0xab2   : > { %v1711_v27 = vpop.permute.xlu0 %1710 }
 0xab3   : > { %v1716_v28 = vand.u32 %v1711_v27, %v3780_v43 }
 0xab4   : > { %1963 = vadd.xlane.f32.xlu2 %v1962_v29 }
 0xab5   : > { %1725 = vmatpush.bf16.msrb.mxu0 %v1716_v28 }
 0xaba   : > { %v1815_v31 = vpop.permute.xlu0 %1814 }
 0xabb   : > { %v1820_v33 = vand.u32 %v1815_v31, %v3780_v43 }
 0xabd   : > { %1829 = vmatpush.bf16.msra.mxu0 %v1820_v33 }
 0xac5   : > { %1903 = vrot.lane.b32.xlu1 %v3822_v53, %s3356_s29 }
 0xb07   : > { %v1701_v20 = vpop.xlane.xlu1 %1700 }
 0xb08   : > { %2878 = vrcp.f32 %v1701_v20 }
 0xb0e   : > { %v2879_v35 = vpop.eup %2878 }
 0xb0f   : > { %v1704_v34 = vpop.xlane.xlu2 %1703  ;;  %v1707_v38 = vmul.f32 %v2879_v35, %v2867_v2 }
 0xb10   : > { %2880 = vrcp.f32 %v1704_v34 }
 0xb16   : > { %v2881_v37 = vpop.eup %2880 }
 0xb17   : > { %v1708_v39 = vmul.f32 %v2881_v37, %v2869_v15  ;;  %v1897_v40 = vpop.xlane.xlu2 %1896  ;;  %v1805_v42 = vpop.xlane.xlu1 %1804 }
 0xb18   : > { %2882 = vrcp.f32 %v1805_v42  ;;  %v2661_v42 = vld [vmem:[%s3676_s23 + $0x8] sm:$0xff] }
 0xb19   : > { %v1709_v41 = vpack.c.bf16 %v1708_v39, %v1707_v38 }
 0xb1b   : > { %2610 = vmatmul.msk.bf16.vlgmr.msrb.gmra.mxu0 %vm1238_vm12, %v1709_v41 }
 0xb1c   : > { %1936 = vmatpush.bf16.msrb.mxu0 %v3889_v32 }
 0xb1e   : > { %v2883_v45 = vpop.eup %2882 }
 0xb1f   : > { %v1808_v44 = vpop.xlane.xlu2 %1807  ;;  %v1811_v47 = vmul.f32 %v2883_v45, %v2873_v13  ;;  %v1894_v48 = vpop.xlane.xlu1 %1893  ;;  %v2660_v45 = vld [vmem:[%s3676_s23] sm:$0xff]  ;;  %s4105_s23 = scalar_lea.vmem [#allocation11], %s3639_s19 }
 0xb20   : > { %2884 = vrcp.f32 %v1808_v44 }
 0xb21   : > { %2886 = vrcp.f32 %v1894_v48 }
 0xb22   : > { %2888 = vrcp.f32 %v1897_v40 }
 0xb26   : > { %v2885_v53 = vpop.eup %2884 }
 0xb27   : > { %v1812_v55 = vmul.f32 %v2885_v53, %v2877_v19  ;;  %v2887_v49 = vpop.eup %2886 }
 0xb28   : > { %v2889_v50 = vpop.eup %2888  ;;  %v1900_v51 = vmul.f32 %v2887_v49, %v2875_v6  ;;  %v1964_v6 = vpop.xlane.xlu2 %1963 }
 0xb29   : > { %v1813_v60 = vpack.c.bf16 %v1812_v55, %v1811_v47  ;;  %v1901_v32 = vmul.f32 %v2889_v50, %v2871_v11  ;;  %v1971_v18 = vmul.f32 0.03125, %v1964_v6 }
 0xb2b   : > { %2614 = vmatmul.msk.bf16.vlgmr.msra.gmra.mxu0 %vm1238_vm12, %v1813_v60  ;;  %v1902_v56 = vpack.c.bf16 %v1901_v32, %v1900_v51  ;;  %v1974_v22 = vsub.f32 %v3923_v25, %v1971_v18  ;;  %v2665_v18 = vld [vmem:[%s3681_s4 + $0x18] sm:$0xff] }
 0xb2c   : > { %2162 = vmatpush.bf16.msra.mxu3 %v2665_v18 }
 0xb2d   : > { %v1977_v27 = vmul.f32 %v1974_v22, %v1974_v22 }
 0xb2f   : > { %v1980_v28 = vsel %vm1083_vm4, %v1977_v27, 0.0 }
 0xb37   : > { %v1904_v52 = vpop.permute.xlu1 %1903 }
 0xb38   : > { %v1909_v54 = vand.u32 %v1904_v52, %v3780_v43 }
 0xb3a   : > { %1918 = vmatpush.bf16.msrb.mxu2 %v1909_v54 }
 0xb3d   : > { %2617 = vmatmul.msk.bf16.vlgmr.msrb.gmra.mxu2 %vm1238_vm12, %v1902_v56 }
 0xb98   : > { %v1727_v57 = vpop.f32.mrf.mxu0 }
 0xba0   : > { %v1729_v2 = vpop.f32.mrf.mxu0 }
 0xba1   : > { %v1732_v5 = vpack.c.bf16 %v1729_v2, %v1727_v57 }
 0xba3   : > { %2611 = vmatmul.msk.bf16.vlgmr.msrb.gmra.mxu1 %vm1217_vm11, %v1732_v5 }
 0xba4   : > { %2074 = vmatpush.bf16.msrb.mxu1 %v2661_v42 }
 0xba8   : > { %v1831_v58 = vpop.f32.mrf.mxu0  ;;  %2075 = vmatpush.bf16.msrb.mxu1 %v2660_v45 }
 0xbb0   : > { %v1833_v59 = vpop.f32.mrf.mxu0 }
 0xbb1   : > { %v1836_v61 = vpack.c.bf16 %v1833_v59, %v1831_v58 }
 0xbb3   : > { %2615 = vmatmul.msk.bf16.vlgmr.msra.gmra.mxu1 %vm1217_vm11, %v1836_v61 }
 0xbc0   : > { %v1920_v63 = vpop.f32.mrf.mxu2 }
 0xbc8   : > { %v1922_v0 = vpop.f32.mrf.mxu2 }
 0xbc9   : > { %v1925_v26 = vpack.c.bf16 %v1922_v0, %v1920_v63  ;;  %v2816_v63 = vld [vmem:[%s4105_s23] ss:$0 sm:$0xff] }
 0xbcb   : > { %2618 = vmatmul.msk.bf16.vlgmr.msrb.gmra.mxu0 %vm1217_vm11, %v1925_v26 }
 0xc20   : > { %v1745_v43 = vpop.f32.mrf.mxu1 }
 0xc21   : > { %v1763_v4 = vadd.f32 %v3892_v62, %v1745_v43 }
 0xc28   : > { %v1747_v1 = vpop.f32.mrf.mxu1 }
 0xc29   : > { %v1765_v30 = vadd.f32 %v3895_v36, %v1747_v1 }
 0xc30   : > { %v1849_v3 = vpop.f32.mrf.mxu1 }
 0xc31   : > { %v1854_v15 = vadd.f32 %v1849_v3, %v1763_v4  ;;  %v2817_v4 = vld [vmem:[%s4106_s6] ss:$0 sm:$0xff] }
 0xc38   : > { %v1851_v9 = vpop.f32.mrf.mxu1 }
 0xc39   : > { %v1855_v10 = vadd.f32 %v1851_v9, %v1765_v30 }
 0xc48   : > { %v1938_v7 = vpop.f32.mrf.mxu0 }
 0xc49   : > { %v1943_v8 = vadd.f32 %v1938_v7, %v1854_v15 }
 0xc4b   : > { %1945 = vst.msk [vmem:[#allocation2 + $0x9] sm:$0xff] %vm1083_vm4, %v1943_v8 }
 0xc50   : > { %v1940_v11 = vpop.f32.mrf.mxu0 }
 0xc51   : > { %v1944_v12 = vadd.f32 %v1940_v11, %v1855_v10 }
 0xc52   : > { %v1948_v13 = vld [vmem:[#allocation2 + $0x8] sm:$0xff] }
 0xc53   : > { %1946 = vst.msk [vmem:[#allocation2 + $0x11] sm:$0x1] %vm1585_vm5, %v1944_v12  ;;  %v1951_v16 = vadd.f32 %v2902_v14, %v1948_v13 }
 0xc55   : > { %v3947_v62 = vadd.f32 %v3920_v24, %v1951_v16 }
 0xc57   : > { %v1965_v17 = vsel %vm1083_vm4, %v3947_v62, 0.0 }
 0xc58   : > { %1966 = vadd.xlane.f32.xlu0 %v1965_v17 }
 0xc5a   : > { %v1949_v36 = vld [vmem:[#allocation2 + $0x10] sm:$0x3] }
 0xc5b   : > { %v1952_v19 = vadd.f32 %v1949_v36, %v3788_v46 }
 0xc5d   : > { %v3953_v21 = vadd.f32 %v3920_v24, %v1952_v19  ;;  %v2664_v19 = vld [vmem:[%s3681_s4 + $0x10] sm:$0xff] }
 0xc5e   : > { %2163 = vmatpush.bf16.msra.mxu3 %v2664_v19 }
 0xc5f   : > { %v1968_v23 = vsel %vm1090_vm0, %v3953_v21, 0.0 }
 0xc60   : > { %1969 = vadd.xlane.f32.xlu2 %v1968_v23  ;;  %v2818_v23 = vld [vmem:[%s4107_s5] ss:$0 sm:$0xff] }
 0xc68   : > { %1981 = vadd.xlane.f32.xlu2 %v1980_v28  ;;  %v2662_v28 = vld [vmem:[%s3681_s4] sm:$0xff] }
 0xccb   : > { %v1967_v29 = vpop.xlane.xlu0 %1966 }
 0xccc   : > { %v1972_v31 = vmul.f32 0.03125, %v1967_v29 }
 0xcce   : > { %v1975_v33 = vsub.f32 %v3947_v62, %v1972_v31 }
 0xcd0   : > { %v1978_v20 = vmul.f32 %v1975_v33, %v1975_v33 }
 0xcd2   : > { %v1983_v46 = vsel %vm1083_vm4, %v1978_v20, 0.0 }
 0xcd3   : > { %1984 = vadd.xlane.f32.xlu1 %v1983_v46  ;;  %v1970_v24 = vpop.xlane.xlu2 %1969 }
 0xcd4   : > { %v1973_v34 = vmul.f32 0.03125, %v1970_v24 }
 0xcd6   : > { %v1976_v35 = vsub.f32 %v3953_v21, %v1973_v34 }
 0xcd8   : > { %v1979_v37 = vmul.f32 %v1976_v35, %v1976_v35 }
 0xcda   : > { %v1986_v38 = vsel %vm1090_vm0, %v1979_v37, 0.0 }
 0xcdb   : > { %1987 = vadd.xlane.f32.xlu2 %v1986_v38  ;;  %v1982_v39 = vpop.xlane.xlu2 %1981 }
 0xcdc   : > { %v1989_v40 = vmul.f32 0.03125, %v1982_v39 }
 0xcde   : > { %v1992_v41 = vadd.f32 1e-05, %v1989_v40 }
 0xce0   : > { %2890 = vrsqrt.f32 %v1992_v41  ;;  %vm2001_vm7 = vweird.f32 %v1992_v41 }
 0xce6   : > { %v2891_v44 = vpop.eup %2890 }
 0xce7   : > { %v1996_v53 = vmul.f32 %v2891_v44, %v1992_v41  ;;  %vm2002_vm6 = vweird.f32 %v2891_v44 }
 0xce8   : > { %vm2003_vm8 = vmor %vm2001_vm7, %vm2002_vm6 }
 0xce9   : > { %v1997_v47 = vmul.f32 %v2891_v44, %v1996_v53 }
 0xceb   : > { %v1998_v49 = vmul.f32 0.5, %v1997_v47 }
 0xced   : > { %v1999_v50 = vsub.f32 1.5, %v1998_v49 }
 0xcef   : > { %v2000_v56 = vmul.f32 %v2891_v44, %v1999_v50 }
 0xcf1   : > { %v2004_v5 = vsel %vm2003_vm8, %v2891_v44, %v2000_v56 }
 0xcf2   : > { %v2025_v0 = vmul.f32 %v2004_v5, %v1974_v22  ;;  %v2663_v22 = vld [vmem:[%s3681_s4 + $0x8] sm:$0xff]  ;;  %s4108_s4 = scalar_lea.vmem [#allocation14], %s3639_s19 }
 0xcf3   : > { %2164 = vmatpush.bf16.msra.mxu3 %v2663_v22 }
 0xcf4   : > { %v2031_v15 = vmul.f32 %v2816_v63, %v2025_v0  ;;  %v2819_v0 = vld [vmem:[%s4108_s4] ss:$0 sm:$0xff] }
 0xcf6   : > { %v2037_v10 = vadd.f32 %v2817_v4, %v2031_v15 }
 0xcf7   : > { %2165 = vmatpush.bf16.msra.mxu3 %v2662_v28 }
 0xd46   : > { %v1985_v55 = vpop.xlane.xlu1 %1984 }
 0xd47   : > { %v1990_v60 = vmul.f32 0.03125, %v1985_v55 }
 0xd49   : > { %v1993_v48 = vadd.f32 1e-05, %v1990_v60 }
 0xd4b   : > { %2892 = vrsqrt.f32 %v1993_v48  ;;  %vm2011_vm10 = vweird.f32 %v1993_v48 }
 0xd4e   : > { %v1988_v51 = vpop.xlane.xlu2 %1987 }
 0xd4f   : > { %v1991_v52 = vmul.f32 0.03125, %v1988_v51 }
 0xd51   : > { %v2893_v54 = vpop.eup %2892  ;;  %v1994_v32 = vadd.f32 1e-05, %v1991_v52 }
 0xd52   : > { %v2006_v57 = vmul.f32 %v2893_v54, %v1993_v48  ;;  %vm2012_vm9 = vweird.f32 %v2893_v54 }
 0xd53   : > { %2894 = vrsqrt.f32 %v1994_v32  ;;  %vm2013_vm11 = vmor %vm2011_vm10, %vm2012_vm9  ;;  %vm2021_vm13 = vweird.f32 %v1994_v32 }
 0xd54   : > { %v2007_v2 = vmul.f32 %v2893_v54, %v2006_v57 }
 0xd56   : > { %v2008_v58 = vmul.f32 0.5, %v2007_v2 }
 0xd58   : > { %v2009_v59 = vsub.f32 1.5, %v2008_v58 }
 0xd59   : > { %v2895_v61 = vpop.eup %2894 }
 0xd5a   : > { %v2010_v26 = vmul.f32 %v2893_v54, %v2009_v59  ;;  %v2016_v43 = vmul.f32 %v2895_v61, %v1994_v32  ;;  %vm2022_vm12 = vweird.f32 %v2895_v61 }
 0xd5b   : > { %vm2023_vm14 = vmor %vm2021_vm13, %vm2022_vm12 }
 0xd5c   : > { %v2014_v1 = vsel %vm2013_vm11, %v2893_v54, %v2010_v26  ;;  %v2017_v3 = vmul.f32 %v2895_v61, %v2016_v43 }
 0xd5d   : > { %v2026_v7 = vmul.f32 %v2014_v1, %v1975_v33 }
 0xd5e   : > { %v2018_v8 = vmul.f32 0.5, %v2017_v3 }
 0xd5f   : > { %v2032_v9 = vmul.f32 %v2816_v63, %v2026_v7 }
 0xd60   : > { %v2019_v30 = vsub.f32 1.5, %v2018_v8 }
 0xd61   : > { %v2038_v11 = vadd.f32 %v2817_v4, %v2032_v9 }
 0xd62   : > { %v2020_v12 = vmul.f32 %v2895_v61, %v2019_v30 }
 0xd63   : > { %v2040_v13 = vpack.c.bf16 %v2038_v11, %v2037_v10 }
 0xd64   : > { %v2024_v14 = vsel %vm2023_vm14, %v2895_v61, %v2020_v12 }
 0xd65   : > { %2627 = vmatmul.msk.bf16.vlgmr.msrb.gmra.mxu1 %vm1083_vm4, %v2040_v13  ;;  %v2027_v16 = vmul.f32 %v2024_v14, %v1976_v35 }
 0xd67   : > { %v2033_v17 = vmul.f32 %v2816_v63, %v2027_v16 }
 0xd69   : > { %v2039_v6 = vadd.f32 %v2817_v4, %v2033_v17 }
 0xd6b   : > { %v2041_v36 = vpack.c.bf16 %v2039_v6, %v2039_v6 }
 0xd75   : > { %2628 = vmatmul.msk.bf16.gmra.mxu1 %vm1083_vm4, %v2041_v36 }
 0xde2   : > { %v2077_v27 = vpop.f32.mrf.mxu1 }
 0xde3   : > { %v2078_v29 = vadd.f32 %v2818_v23, %v2077_v27 }
 0xde5   : > { %v2086_v31 = vmul.f32 %v2078_v29, %v2078_v29 }
 0xde7   : > { %v2089_v33 = vmul.f32 %v2086_v31, %v2078_v29 }
 0xde9   : > { %v2092_v20 = vmul.f32 0.044715, %v2089_v33 }
 0xdea   : > { %v2079_v46 = vpop.f32.mrf.mxu1 }
 0xdeb   : > { %v2095_v24 = vadd.f32 %v2092_v20, %v2078_v29  ;;  %v2080_v34 = vadd.f32 %v2818_v23, %v2079_v46 }
 0xded   : > { %v2098_v35 = vmul.f32 0.7978846, %v2095_v24  ;;  %v2087_v37 = vmul.f32 %v2080_v34, %v2080_v34 }
 0xdef   : > { %v2090_v38 = vmul.f32 %v2087_v37, %v2080_v34  ;;  %2896 = vtanh.f32 %v2098_v35 }
 0xdf1   : > { %v2093_v39 = vmul.f32 0.044715, %v2090_v38 }
 0xdf2   : > { %v2082_v40 = vpop.f32.mrf.mxu1 }
 0xdf3   : > { %v2096_v41 = vadd.f32 %v2093_v39, %v2080_v34  ;;  %v2083_v42 = vadd.f32 %v2818_v23, %v2082_v40 }
 0xdf5   : > { %v2099_v44 = vmul.f32 0.7978846, %v2096_v41  ;;  %v2088_v45 = vmul.f32 %v2083_v42, %v2083_v42  ;;  %v2897_v53 = vpop.eup %2896 }
 0xdf6   : > { %v2104_v60 = vadd.f32 1.0, %v2897_v53 }
 0xdf7   : > { %2898 = vtanh.f32 %v2099_v44  ;;  %v2091_v47 = vmul.f32 %v2088_v45, %v2083_v42 }
 0xdf8   : > { %v2107_v52 = vmul.f32 0.5, %v2104_v60 }
 0xdf9   : > { %v2094_v55 = vmul.f32 0.044715, %v2091_v47 }
 0xdfa   : > { %v2084_v48 = vpop.f32.mrf.mxu1  ;;  %v2110_v56 = vmul.f32 %v2107_v52, %v2078_v29 }
 0xdfb   : > { %v2097_v49 = vadd.f32 %v2094_v55, %v2083_v42 }
 0xdfd   : > { %v2899_v50 = vpop.eup %2898  ;;  %v2100_v51 = vmul.f32 0.7978846, %v2097_v49 }
 0xdfe   : > { %v2105_v54 = vadd.f32 1.0, %v2899_v50 }
 0xdff   : > { %2900 = vtanh.f32 %v2100_v51 }
 0xe00   : > { %v2108_v32 = vmul.f32 0.5, %v2105_v54 }
 0xe02   : > { %v2111_v57 = vmul.f32 %v2108_v32, %v2080_v34 }
 0xe04   : > { %v2113_v2 = vpack.c.bf16 %v2111_v57, %v2110_v56 }
 0xe05   : > { %v2901_v5 = vpop.eup %2900 }
 0xe06   : > { %2645 = vmatmul.msk.bf16.vlgmr.msra.gmra.mxu3 %vm2151_vm15, %v2113_v2  ;;  %v2106_v58 = vadd.f32 1.0, %v2901_v5 }
 0xe08   : > { %v2109_v59 = vmul.f32 0.5, %v2106_v58 }
 0xe0a   : > { %v2112_v61 = vmul.f32 %v2109_v59, %v2083_v42 }
 0xe0c   : > { %v2114_v63 = vpack.c.bf16 %v2112_v61, %v2112_v61 }
 0xe16   : > { %2646 = vmatmul.msk.bf16.gmra.mxu3 %vm2151_vm15, %v2114_v63 }
 0xe89   : > { %v2167_v26 = vpop.f32.mrf.mxu3 }
 0xe8a   : > { %v2168_v43 = vadd.f32 %v2819_v0, %v2167_v26 }
 0xe8c   : > { %v2176_v1 = vadd.f32 %v2168_v43, %v3923_v25 }
 0xe91   : > { %v2169_v3 = vpop.f32.mrf.mxu3 }
 0xe92   : > { %v2170_v4 = vadd.f32 %v2819_v0, %v2169_v3 }
 0xe94   : > { %v2177_v15 = vadd.f32 %v2170_v4, %v3947_v62 }
 0xe99   : > { %v2172_v7 = vpop.f32.mrf.mxu3 }
 0xe9a   : > { %v2173_v8 = vadd.f32 %v2819_v0, %v2172_v7 }
 0xe9c   : > { %v2178_v9 = vadd.f32 %v2173_v8, %v3953_v21 }
 0xe9d   : > { %2182 = sbr.rel (%p2647_p3) target bundleno = 3749 (0xea5), region = 152 }
 0xea1   : > { %v2174_v30 = vpop.f32.mrf.mxu3 }
 0xea2   : > { %2183 = vst.msk [vmem:[%s4110_s3] sm:$0xff] %vm1083_vm4, %v2176_v1 }
 0xea3   : > { %2184 = vst.msk [vmem:[%s4110_s3 + $0x8] sm:$0xff] %vm1083_vm4, %v2177_v15 }
 0xea4   : > { %2185 = vst.msk [vmem:[%s4110_s3 + $0x10] sm:$0x3] %vm1090_vm0, %v2178_v9 }
 0xea5 PF: > { %s4111_s2 = sld [smem:[#allocation24_spill]] }
 0xeab   : > { %p2648_p4 = scmp.ne.s32.totalorder %s4111_s2, 1 }
 0xeac   : > { %s4112_s29 = sld [smem:[#allocation39_spill]] (!%p2648_p4) }
 0xead   : > { %2189 = sbr.rel (%p2648_p4) target bundleno = 4047 (0xfcf), region = 156 }
 0xeb2   : > { %v2192_v25 = vsel %vm1083_vm4, %v2176_v1, 0.0  ;;  %v2198_v62 = vsel %vm1090_vm0, %v2178_v9, 0.0  ;;  %v2195_v21 = vsel %vm1083_vm4, %v2177_v15, 0.0  ;;  %v2903_v47 = vld [vmem:[#allocation15] ss:$0 sm:$0xff] }
 0xeb3   : > { %2193 = vadd.xlane.f32.xlu0 %v2192_v25  ;;  %2199 = vadd.xlane.f32.xlu1 %v2198_v62  ;;  %v2904_v49 = vld [vmem:[#allocation16] ss:$0 sm:$0xff] }
 0xebb   : > { %2196 = vadd.xlane.f32.xlu0 %v2195_v21 }
 0xf26   : > { %v2194_v10 = vpop.xlane.xlu0 %2193  ;;  %v2200_v14 = vpop.xlane.xlu1 %2199 }
 0xf27   : > { %v2201_v11 = vmul.f32 0.03125, %v2194_v10  ;;  %v2203_v36 = vmul.f32 0.03125, %v2200_v14 }
 0xf29   : > { %v2204_v12 = vsub.f32 %v2176_v1, %v2201_v11  ;;  %v2206_v19 = vsub.f32 %v2178_v9, %v2203_v36 }
 0xf2b   : > { %v2207_v13 = vmul.f32 %v2204_v12, %v2204_v12  ;;  %v2209_v27 = vmul.f32 %v2206_v19, %v2206_v19 }
 0xf2d   : > { %v2210_v16 = vsel %vm1083_vm4, %v2207_v13, 0.0  ;;  %v2216_v28 = vsel %vm1090_vm0, %v2209_v27, 0.0 }
 0xf2e   : > { %2211 = vadd.xlane.f32.xlu1 %v2210_v16  ;;  %v2197_v17 = vpop.xlane.xlu0 %2196 }
 0xf2f   : > { %v2202_v6 = vmul.f32 0.03125, %v2197_v17 }
 0xf31   : > { %v2205_v18 = vsub.f32 %v2177_v15, %v2202_v6 }
 0xf33   : > { %v2208_v22 = vmul.f32 %v2205_v18, %v2205_v18 }
 0xf35   : > { %v2213_v23 = vsel %vm1083_vm4, %v2208_v22, 0.0 }
 0xf36   : > { %2214 = vadd.xlane.f32.xlu2 %v2213_v23 }
 0xf3e   : > { %2217 = vadd.xlane.f32.xlu2 %v2216_v28 }
 0xfa1   : > { %v2212_v29 = vpop.xlane.xlu1 %2211 }
 0xfa2   : > { %v2219_v31 = vmul.f32 0.03125, %v2212_v29 }
 0xfa4   : > { %v2222_v33 = vadd.f32 1e-05, %v2219_v31 }
 0xfa6   : > { %2905 = vrsqrt.f32 %v2222_v33  ;;  %vm2231_vm2 = vweird.f32 %v2222_v33 }
 0xfa9   : > { %v2215_v20 = vpop.xlane.xlu2 %2214 }
 0xfaa   : > { %v2220_v46 = vmul.f32 0.03125, %v2215_v20 }
 0xfac   : > { %v2906_v24 = vpop.eup %2905  ;;  %v2223_v34 = vadd.f32 1e-05, %v2220_v46 }
 0xfad   : > { %v2226_v35 = vmul.f32 %v2906_v24, %v2222_v33  ;;  %vm2232_vm1 = vweird.f32 %v2906_v24 }
 0xfae   : > { %2907 = vrsqrt.f32 %v2223_v34  ;;  %vm2233_vm3 = vmor %vm2231_vm2, %vm2232_vm1  ;;  %vm2241_vm6 = vweird.f32 %v2223_v34 }
 0xfaf   : > { %v2227_v37 = vmul.f32 %v2906_v24, %v2226_v35 }
 0xfb1   : > { %v2228_v38 = vmul.f32 0.5, %v2227_v37  ;;  %v2218_v39 = vpop.xlane.xlu2 %2217 }
 0xfb2   : > { %v2221_v40 = vmul.f32 0.03125, %v2218_v39 }
 0xfb3   : > { %v2229_v41 = vsub.f32 1.5, %v2228_v38 }
 0xfb4   : > { %v2908_v42 = vpop.eup %2907  ;;  %v2224_v44 = vadd.f32 1e-05, %v2221_v40 }
 0xfb5   : > { %v2230_v45 = vmul.f32 %v2906_v24, %v2229_v41  ;;  %v2236_v53 = vmul.f32 %v2908_v42, %v2223_v34  ;;  %vm2242_vm5 = vweird.f32 %v2908_v42 }
 0xfb6   : > { %2909 = vrsqrt.f32 %v2224_v44  ;;  %vm2243_vm7 = vmor %vm2241_vm6, %vm2242_vm5  ;;  %vm2251_vm9 = vweird.f32 %v2224_v44 }
 0xfb7   : > { %v2234_v55 = vsel %vm2233_vm3, %v2906_v24, %v2230_v45  ;;  %v2237_v60 = vmul.f32 %v2908_v42, %v2236_v53 }
 0xfb8   : > { %v2255_v48 = vmul.f32 %v2234_v55, %v2204_v12 }
 0xfb9   : > { %v2238_v50 = vmul.f32 0.5, %v2237_v60 }
 0xfba   : > { %v2261_v51 = vmul.f32 %v2903_v47, %v2255_v48 }
 0xfbb   : > { %v2239_v52 = vsub.f32 1.5, %v2238_v50 }
 0xfbc   : > { %v2910_v54 = vpop.eup %2909  ;;  %v2267_v32 = vadd.f32 %v2904_v49, %v2261_v51 }
 0xfbd   : > { %v2240_v56 = vmul.f32 %v2908_v42, %v2239_v52  ;;  %v2246_v57 = vmul.f32 %v2910_v54, %v2224_v44  ;;  %vm2252_vm8 = vweird.f32 %v2910_v54 }
 0xfbe   : > { %2270 = vst.msk [vmem:[%s4112_s29] sm:$0xff] %vm1083_vm4, %v2267_v32  ;;  %vm2253_vm10 = vmor %vm2251_vm9, %vm2252_vm8 }
 0xfbf   : > { %v2244_v2 = vsel %vm2243_vm7, %v2908_v42, %v2240_v56  ;;  %v2247_v5 = vmul.f32 %v2910_v54, %v2246_v57 }
 0xfc0   : > { %v2256_v58 = vmul.f32 %v2244_v2, %v2205_v18 }
 0xfc1   : > { %v2248_v59 = vmul.f32 0.5, %v2247_v5 }
 0xfc2   : > { %v2262_v61 = vmul.f32 %v2903_v47, %v2256_v58 }
 0xfc3   : > { %v2249_v63 = vsub.f32 1.5, %v2248_v59 }
 0xfc4   : > { %v2268_v0 = vadd.f32 %v2904_v49, %v2262_v61 }
 0xfc5   : > { %v2250_v26 = vmul.f32 %v2910_v54, %v2249_v63 }
 0xfc6   : > { %2271 = vst.msk [vmem:[%s4112_s29 + $0x8] sm:$0xff] %vm1083_vm4, %v2268_v0 }
 0xfc7   : > { %v2254_v43 = vsel %vm2253_vm10, %v2910_v54, %v2250_v26 }
 0xfc8   : > { %v2257_v1 = vmul.f32 %v2254_v43, %v2206_v19 }
 0xfca   : > { %v2263_v3 = vmul.f32 %v2903_v47, %v2257_v1 }
 0xfcc   : > { %v2269_v4 = vadd.f32 %v2904_v49, %v2263_v3 }
 0xfce   : > { %2272 = vst.msk [vmem:[%s4112_s29 + $0x10] sm:$0x3] %vm1090_vm0, %v2269_v4 }
 0xfcf PF: > { %s32_s22 = sadd.s32 1, %s3337_s22   ;;  %s4113_s6 = sld [smem:[#allocation23_spill]] }
 0xfd0   : > { %p29_p5 = scmp.ge.s32.totalorder %s32_s22, 4   ;;  %s4114_s20 = sld [smem:[#allocation26_spill]] }
 0xfd1   : > { %s4115_s5 = sld [smem:[#allocation25_spill]]  ;;  %s4116_s0 = smov %s3321_s30 }
 0xfd2   : > { %s4118_s21 = smov %s3333_s1 }
 0xfd3   :  { %31 = sbr.rel (!%p29_p5) target bundleno = 19 (0x13), region = 255 }
 0xfd5   : > { %s4117_s30 = smov %s4113_s6 }
 0xfd7   : > { %s4119_s1 = smov %s4115_s5 }
 0xfd8   :  { %2294 = vsyncpa [#allocation4], 1 }
 0xfd9   :  { %2296 = vsyncpa [#allocation4 + $0x1], 1 }
 0xfda   :  { %2297 = vsyncpa [#allocation6], 1 }
 0xfdb   :  { %2298 = vsyncpa [#allocation17], 1 }

</bundles_post_ra>
